<compile_context>
chip_gen: v7x
topology: tpu7x:2x2x1
jax: 0.10.0
libtpu: 0.0.40
codegen_flags: <defaults>
</compile_context>

<pallas_src>
import functools

import jax
import jax.numpy as jnp
from jax.experimental import pallas as pl
from jax.experimental.pallas import tpu as pltpu

_EPS = 1e-5


# ----------------------------- VMEM / tiling -------------------------------- #

def _vmem_capacity_bytes():
    try:
        return int(pltpu.get_tpu_info().vmem_capacity_bytes)
    except Exception:
        return 64 << 20  # conservative fallback (v7x per-core VMEM)


def _pick_row_tile(N, H, W, Cin, c4, nf, act_isz, weight_bytes):
    """Largest H-row tile whose per-step working set (double-buffered activation
    tiles + double-buffered weights + in-kernel f32 intermediates) fits a
    generation-aware VMEM budget with 25% headroom, keeping >= 2 grid steps."""
    cap = _vmem_capacity_bytes()
    budget = (cap * 3) // 4                        # ~48 MiB on v7x, ~96 MiB on v5e/v6e
    fixed = 2 * weight_bytes + 2 * W * Cin * act_isz + (1 << 20)
    per_row = (
        2 * W * Cin * act_isz                      # input tile (double buffered)
        + 2 * 4 * W * nf * act_isz                 # output tile, 4 phases (double buffered)
        + W * c4 * (4 + 2 * act_isz)               # y (f32) + y (bf16) + col-shifted copy
        + W * c4 * 4 + W * nf * 4                  # live per-phase f32 accumulators
    )
    th = max(int((budget - fixed) // per_row), 1)
    th = min(th, H)
    n_steps = N * ((H + th - 1) // th)
    if n_steps < 2 and H >= 2:                     # keep both v7x TensorCores busy
        th = (H + 1) // 2
    return th, int(budget)


# ------------------------------ fused kernel -------------------------------- #

def _fused_decoder_kernel(x_ref, xh_ref, w1_ref, b1_ref, wU_ref, bU_ref,
                          w3_ref, b3_ref, o_ref, *, H, compute_dtype):
    th, W, Cin = x_ref.shape[1], x_ref.shape[2], x_ref.shape[3]
    c4 = w1_ref.shape[1]
    nf = w3_ref.shape[1]
    i = pl.program_id(1)

    # ---- conv1 (1x1, BN folded) + ReLU on the row tile and its +1-row halo ----
    x_all = jnp.concatenate(
        [x_ref[0].reshape(th * W, Cin), xh_ref[0].reshape(W, Cin)], axis=0)
    y = jnp.dot(x_all, w1_ref[...], preferred_element_type=jnp.float32)
    y = jnp.maximum(y + b1_ref[...], 0.0).reshape(th + 1, W, c4)

    # Zero rows at/below the image bottom: deconv bottom padding (clamped halo)
    # and any ragged-tail garbage before it can contaminate valid rows.
    row = i * th + jax.lax.broadcasted_iota(jnp.int32, (th + 1, 1, 1), 0)
    y = jnp.where(row < H, y, 0.0).astype(compute_dtype)

    # +1-column shifted copy (zero past the last column = deconv right padding).
    y_c = jnp.concatenate(
        [y[:, 1:, :], jnp.zeros((th + 1, 1, c4), y.dtype)], axis=1)

    t00 = y[:th].reshape(th * W, c4)      # y(r,   s)
    t01 = y_c[:th].reshape(th * W, c4)    # y(r,   s+1)
    t10 = y[1:].reshape(th * W, c4)       # y(r+1, s)
    t11 = y_c[1:].reshape(th * W, c4)     # y(r+1, s+1)

    def tap(t, kh, kw):  # one (th*W, c4) x (c4, c4) tap matmul, f32 accumulation
        return jnp.dot(t, wU_ref[kh * 3 + kw], preferred_element_type=jnp.float32)

    def finish(z, phase):  # deconv BN-folded bias + ReLU, then per-phase conv3 + ReLU
        z = jnp.maximum(z + bU_ref[...], 0.0).astype(w3_ref.dtype)
        o = jnp.dot(z, w3_ref[...], preferred_element_type=jnp.float32)
        o = jnp.maximum(o + b3_ref[...], 0.0)
        o_ref[0, phase] = o.astype(o_ref.dtype).reshape(th, W, nf)

    # 9 contributing tap blocks (the remaining 7 of 16 are structural zeros).
    finish(tap(t00, 1, 1), 0)                                               # (even, even)
    finish(tap(t00, 1, 2) + tap(t01, 1, 0), 1)                              # (even, odd)
    finish(tap(t00, 2, 1) + tap(t10, 0, 1), 2)                              # (odd,  even)
    finish(tap(t00, 2, 2) + tap(t01, 2, 0) + tap(t10, 0, 2)
           + tap(t11, 0, 0), 3)                                             # (odd,  odd)


# ------------------------------ module wrapper ------------------------------- #

def _bn_fold(gamma, beta, mean, var):
    scale = gamma / jnp.sqrt(var + _EPS)
    return scale, beta - mean * scale


def decoder_bottleneck_forward(x_nchw, p, *, compute_dtype=jnp.bfloat16,
                               out_dtype=jnp.float32):
    """Pallas implementation of DecoderBottleneckLayer.forward (use_transpose=True)."""
    N, Cin, H, W = x_nchw.shape
    c4 = p["w1"].shape[1]
    nf = p["w3"].shape[1]

    # ---- fold eval-mode BatchNorm into conv weights / biases (tiny one-time ops) ----
    sc1, sh1 = _bn_fold(*p["bn1"])
    w1f = (p["w1"] * sc1[None, :]).astype(compute_dtype)
    b1f = (p["b1"] * sc1 + sh1).reshape(1, c4)

    scU, shU = _bn_fold(*p["bn_up"])
    wUf = p["w_up"] * scU[None, :, None, None]            # (c4_in, c4_out, 3, 3)
    wU9 = jnp.transpose(wUf, (2, 3, 0, 1)).reshape(9, c4, c4).astype(compute_dtype)
    bUf = (p["b_up"] * scU + shU).reshape(1, c4)

    sc3, sh3 = _bn_fold(*p["bn3"])
    w3f = (p["w3"] * sc3[None, :]).astype(compute_dtype)
    b3f = (p["b3"] * sc3 + sh3).reshape(1, nf)

    # NCHW -> NHWC + bf16 cast (single fused XLA op).
    x = jnp.transpose(x_nchw, (0, 2, 3, 1)).astype(compute_dtype)

    act_isz = jnp.dtype(compute_dtype).itemsize
    weight_bytes = ((Cin * c4 + 9 * c4 * c4 + c4 * nf) * act_isz
                    + (2 * c4 + nf) * 4)
    th, vmem_limit = _pick_row_tile(N, H, W, Cin, c4, nf, act_isz, weight_bytes)

    kernel = functools.partial(_fused_decoder_kernel, H=H,
                               compute_dtype=compute_dtype)

    # NOTE: lane dims are c4 / nf (model hyper-params); they are lane-dense and
    # fill the 256-wide MXU whenever c4, nf >= 128 (always true for real decoders).
    o = pl.pallas_call(
        kernel,
        out_shape=jax.ShapeDtypeStruct((N, 4, H, W, nf), compute_dtype),
        grid=(N, pl.cdiv(H, th)),
        in_specs=[
            pl.BlockSpec((1, th, W, Cin), lambda n, i: (n, i, 0, 0)),
            # +1-row halo: same array, clamped row index (zeroed in-kernel when OOB).
            pl.BlockSpec((1, 1, W, Cin),
                         lambda n, i: (n, jnp.minimum((i + 1) * th, H - 1), 0, 0)),
            pl.BlockSpec((Cin, c4), lambda n, i: (0, 0)),
            pl.BlockSpec((1, c4), lambda n, i: (0, 0)),
            pl.BlockSpec((9, c4, c4), lambda n, i: (0, 0, 0)),
            pl.BlockSpec((1, c4), lambda n, i: (0, 0)),
            pl.BlockSpec((c4, nf), lambda n, i: (0, 0)),
            pl.BlockSpec((1, nf), lambda n, i: (0, 0)),
        ],
        out_specs=pl.BlockSpec((1, 4, th, W, nf), lambda n, i: (n, 0, i, 0, 0)),
        compiler_params=pltpu.CompilerParams(
            dimension_semantics=("parallel", "parallel"),
            vmem_limit_bytes=vmem_limit),
    )(x, x, w1f, b1f, wU9, bUf, w3f, b3f)

    # Single fused epilogue: phase interleave + NHWC -> NCHW + cast to out_dtype.
    # o[:, 2*dr+dc, r, s, c] -> out[:, c, 2*r+dr, 2*s+dc]
    o = o.reshape(N, 2, 2, H, W, nf)
    o = jnp.transpose(o, (0, 5, 3, 1, 4, 2)).reshape(N, nf, 2 * H, 2 * W)
    return o.astype(out_dtype)


# --------------------- deterministic parameter init -------------------------- #

def init_params(key, in_channels, n_filters):
    c4 = in_channels // 4
    ks = jax.random.split(key, 12)

    def u(k, shape, a=0.3):
        return jax.random.uniform(k, shape, jnp.float32, -a, a)

    def bn(k, c):
        k1, k2, k3, k4 = jax.random.split(k, 4)
        gamma = 1.0 + u(k1, (c,), 0.2)
        beta = u(k2, (c,), 0.2)
        mean = u(k3, (c,), 0.2)
        var = 0.5 + jax.random.uniform(k4, (c,), jnp.float32, 0.0, 1.0)
        return (gamma, beta, mean, var)

    return {
        "w1": u(ks[0], (in_channels, c4)),     # 1x1 conv, (Cin, Cout)
        "b1": u(ks[1], (c4,)),
        "bn1": bn(ks[2], c4),
        "w_up": u(ks[3], (c4, c4, 3, 3)),      # torch ConvTranspose2d layout (Cin, Cout, kh, kw)
        "b_up": u(ks[4], (c4,)),
        "bn_up": bn(ks[5], c4),
        "w3": u(ks[6], (c4, n_filters)),       # 1x1 conv, (Cin, Cout)
        "b3": u(ks[7], (n_filters,)),
        "bn3": bn(ks[8], n_filters),
    }


# ------------------------- independent XLA reference ------------------------- #

def reference_forward(x_nchw, p):
    def bn(x, g, b, m, v):
        g, b, m, v = (t[None, :, None, None] for t in (g, b, m, v))
        return (x - m) / jnp.sqrt(v + _EPS) * g + b

    dn = ("NCHW", "OIHW", "NCHW")
    w1 = jnp.transpose(p["w1"], (1, 0))[:, :, None, None]
    y = jax.lax.conv_general_dilated(x_nchw, w1, (1, 1), "VALID",
                                     dimension_numbers=dn)
    y = jnp.maximum(bn(y + p["b1"][None, :, None, None], *p["bn1"]), 0.0)

    wt = p["w_up"]
    w_eq = jnp.transpose(jnp.flip(wt, (2, 3)), (1, 0, 2, 3))  # OIHW
    z = jax.lax.conv_general_dilated(y, w_eq, (1, 1), ((1, 2), (1, 2)),
                                     lhs_dilation=(2, 2),
                                     dimension_numbers=dn)
    z = jnp.maximum(bn(z + p["b_up"][None, :, None, None], *p["bn_up"]), 0.0)

    w3 = jnp.transpose(p["w3"], (1, 0))[:, :, None, None]
    o = jax.lax.conv_general_dilated(z, w3, (1, 1), "VALID",
                                     dimension_numbers=dn)
    o = jnp.maximum(bn(o + p["b3"][None, :, None, None], *p["bn3"]), 0.0)
    return o


# ----------------------------------- main ------------------------------------ #

if __name__ == "__main__":
    key = jax.random.PRNGKey(0)
    N, Cin, H, W = 2, 16, 16, 16
    n_filters = 8
    kx, kp = jax.random.split(key)
    x = jax.random.normal(kx, (N, Cin, H, W), jnp.float32)
    params = init_params(kp, Cin, n_filters)

    fwd = jax.jit(decoder_bottleneck_forward)
    out = jax.block_until_ready(fwd(x, params))
    assert out.shape == (N, n_filters, 2 * H, 2 * W), out.shape

    ref = reference_forward(x, params)
    max_err = float(jnp.max(jnp.abs(out - ref)))
    # bf16 matmul inputs (f32 accumulation) vs f32 reference -> loosened tolerance.
    assert jnp.allclose(out, ref, atol=5e-2, rtol=5e-2), max_err

    print("KERNEL_OK")
</pallas_src>

<mosaic_0001>
module attributes {stable_mosaic.version = 11 : i64} {
  func.func @_fused_decoder_kernel(%arg0: i32, %arg1: i32, %arg2: memref<1x16x16x16xbf16, #tpu.memory_space<vmem>>, %arg3: memref<1x1x16x16xbf16, #tpu.memory_space<vmem>>, %arg4: memref<16x4xbf16, #tpu.memory_space<vmem>>, %arg5: memref<1x4xf32, #tpu.memory_space<vmem>>, %arg6: memref<9x4x4xbf16, #tpu.memory_space<vmem>>, %arg7: memref<1x4xf32, #tpu.memory_space<vmem>>, %arg8: memref<4x8xbf16, #tpu.memory_space<vmem>>, %arg9: memref<1x8xf32, #tpu.memory_space<vmem>>, %arg10: memref<1x4x16x16x8xbf16, #tpu.memory_space<vmem>>) attributes {dimension_semantics = [#tpu.dimension_semantics<parallel>, #tpu.dimension_semantics<parallel>], iteration_bounds = array<i64: 2, 1>, scalar_prefetch = 0 : i64, scratch_operands = 0 : i64, tpu.core_type = #tpu.core_type<tc>, window_params = [{transform_indices = @transform_0, window_bounds = array<i64: 1, 16, 16, 16>}, {transform_indices = @transform_1, window_bounds = array<i64: 1, 1, 16, 16>}, {pipeline_mode = #tpu.pipeline_mode<synchronous>, transform_indices = @transform_2, window_bounds = array<i64: 16, 4>}, {pipeline_mode = #tpu.pipeline_mode<synchronous>, transform_indices = @transform_3, window_bounds = array<i64: 1, 4>}, {pipeline_mode = #tpu.pipeline_mode<synchronous>, transform_indices = @transform_4, window_bounds = array<i64: 9, 4, 4>}, {pipeline_mode = #tpu.pipeline_mode<synchronous>, transform_indices = @transform_5, window_bounds = array<i64: 1, 4>}, {pipeline_mode = #tpu.pipeline_mode<synchronous>, transform_indices = @transform_6, window_bounds = array<i64: 4, 8>}, {pipeline_mode = #tpu.pipeline_mode<synchronous>, transform_indices = @transform_7, window_bounds = array<i64: 1, 8>}, {transform_indices = @transform_8, window_bounds = array<i64: 1, 4, 16, 16, 8>}]} {
    %c0 = arith.constant 0 : index
    %c0_0 = arith.constant 0 : index
    %c0_1 = arith.constant 0 : index
    %c0_2 = arith.constant 0 : index
    %0 = vector.load %arg2[%c0, %c0_0, %c0_1, %c0_2] : memref<1x16x16x16xbf16, #tpu.memory_space<vmem>>, vector<1x16x16x16xbf16>
    %1 = vector.shape_cast %0 : vector<1x16x16x16xbf16> to vector<16x16x16xbf16>
    %2 = vector.shape_cast %1 : vector<16x16x16xbf16> to vector<256x16xbf16>
    %c0_3 = arith.constant 0 : index
    %c0_4 = arith.constant 0 : index
    %c0_5 = arith.constant 0 : index
    %c0_6 = arith.constant 0 : index
    %3 = vector.load %arg3[%c0_3, %c0_4, %c0_5, %c0_6] : memref<1x1x16x16xbf16, #tpu.memory_space<vmem>>, vector<1x1x16x16xbf16>
    %4 = vector.shape_cast %3 : vector<1x1x16x16xbf16> to vector<1x16x16xbf16>
    %5 = vector.shape_cast %4 : vector<1x16x16xbf16> to vector<16x16xbf16>
    %6 = tpu.concatenate %2, %5 in 0 : vector<256x16xbf16>, vector<16x16xbf16> -> vector<272x16xbf16>
    %c0_7 = arith.constant 0 : index
    %c0_8 = arith.constant 0 : index
    %7 = vector.load %arg4[%c0_7, %c0_8] : memref<16x4xbf16, #tpu.memory_space<vmem>>, vector<16x4xbf16>
    %cst = arith.constant dense<0.000000e+00> : vector<272x4xf32>
    %8 = tpu.matmul %6, %7, %cst {dimension_numbers = #tpu.dot_dimension_numbers<[1], [0], [0], [1], [0, 0, 1, 1], [], []>} : vector<272x16xbf16>, vector<16x4xbf16>, vector<272x4xf32> -> vector<272x4xf32>
    %c0_9 = arith.constant 0 : index
    %c0_10 = arith.constant 0 : index
    %9 = vector.load %arg5[%c0_9, %c0_10] : memref<1x4xf32, #tpu.memory_space<vmem>>, vector<1x4xf32>
    %10 = vector.broadcast %9 : vector<1x4xf32> to vector<272x4xf32>
    %11 = arith.addf %8, %10 : vector<272x4xf32>
    %cst_11 = arith.constant 0.000000e+00 : f32
    %12 = vector.broadcast %cst_11 : f32 to vector<272x4xf32>
    %13 = arith.maximumf %11, %12 : vector<272x4xf32>
    %14 = vector.shape_cast %13 : vector<272x4xf32> to vector<17x16x4xf32>
    %c16_i32 = arith.constant 16 : i32
    %15 = arith.muli %arg1, %c16_i32 : i32
    %16 = tpu.iota {dimensions = array<i32: 0>} : vector<17x1x1xi32>
    %17 = vector.broadcast %15 : i32 to vector<17x1x1xi32>
    %18 = arith.addi %17, %16 : vector<17x1x1xi32>
    %c16_i32_12 = arith.constant 16 : i32
    %19 = vector.broadcast %c16_i32_12 : i32 to vector<17x1x1xi32>
    %20 = arith.cmpi slt, %18, %19 : vector<17x1x1xi32>
    %cst_13 = arith.constant 0.000000e+00 : f32
    %21 = vector.shape_cast %20 : vector<17x1x1xi1> to vector<17x1x1xi1>
    %22 = vector.broadcast %21 : vector<17x1x1xi1> to vector<17x16x4xi1>
    %23 = vector.broadcast %cst_13 : f32 to vector<17x16x4xf32>
    %24 = arith.select %22, %14, %23 : vector<17x16x4xi1>, vector<17x16x4xf32>
    %25 = arith.truncf %24 : vector<17x16x4xf32> to vector<17x16x4xbf16>
    %26 = vector.extract_strided_slice %25 {offsets = [0, 1, 0], sizes = [17, 15, 4], strides = [1, 1, 1]} : vector<17x16x4xbf16> to vector<17x15x4xbf16>
    %cst_14 = arith.constant 0.000000e+00 : bf16
    %27 = vector.broadcast %cst_14 : bf16 to vector<17x1x4xbf16>
    %28 = tpu.concatenate %26, %27 in 1 : vector<17x15x4xbf16>, vector<17x1x4xbf16> -> vector<17x16x4xbf16>
    %29 = vector.extract_strided_slice %25 {offsets = [0, 0, 0], sizes = [16, 16, 4], strides = [1, 1, 1]} : vector<17x16x4xbf16> to vector<16x16x4xbf16>
    %30 = vector.shape_cast %29 : vector<16x16x4xbf16> to vector<256x4xbf16>
    %31 = vector.extract_strided_slice %28 {offsets = [0, 0, 0], sizes = [16, 16, 4], strides = [1, 1, 1]} : vector<17x16x4xbf16> to vector<16x16x4xbf16>
    %32 = vector.shape_cast %31 : vector<16x16x4xbf16> to vector<256x4xbf16>
    %33 = vector.extract_strided_slice %25 {offsets = [1, 0, 0], sizes = [16, 16, 4], strides = [1, 1, 1]} : vector<17x16x4xbf16> to vector<16x16x4xbf16>
    %34 = vector.shape_cast %33 : vector<16x16x4xbf16> to vector<256x4xbf16>
    %35 = vector.extract_strided_slice %28 {offsets = [1, 0, 0], sizes = [16, 16, 4], strides = [1, 1, 1]} : vector<17x16x4xbf16> to vector<16x16x4xbf16>
    %36 = vector.shape_cast %35 : vector<16x16x4xbf16> to vector<256x4xbf16>
    %c4 = arith.constant 4 : index
    %c0_15 = arith.constant 0 : index
    %c0_16 = arith.constant 0 : index
    %37 = vector.load %arg6[%c4, %c0_15, %c0_16] : memref<9x4x4xbf16, #tpu.memory_space<vmem>>, vector<1x4x4xbf16>
    %38 = vector.shape_cast %37 : vector<1x4x4xbf16> to vector<4x4xbf16>
    %cst_17 = arith.constant dense<0.000000e+00> : vector<256x4xf32>
    %39 = tpu.matmul %30, %38, %cst_17 {dimension_numbers = #tpu.dot_dimension_numbers<[1], [0], [0], [1], [0, 0, 1, 1], [], []>} : vector<256x4xbf16>, vector<4x4xbf16>, vector<256x4xf32> -> vector<256x4xf32>
    %c0_18 = arith.constant 0 : index
    %c0_19 = arith.constant 0 : index
    %40 = vector.load %arg7[%c0_18, %c0_19] : memref<1x4xf32, #tpu.memory_space<vmem>>, vector<1x4xf32>
    %41 = vector.broadcast %40 : vector<1x4xf32> to vector<256x4xf32>
    %42 = arith.addf %39, %41 : vector<256x4xf32>
    %cst_20 = arith.constant 0.000000e+00 : f32
    %43 = vector.broadcast %cst_20 : f32 to vector<256x4xf32>
    %44 = arith.maximumf %42, %43 : vector<256x4xf32>
    %45 = arith.truncf %44 : vector<256x4xf32> to vector<256x4xbf16>
    %c0_21 = arith.constant 0 : index
    %c0_22 = arith.constant 0 : index
    %46 = vector.load %arg8[%c0_21, %c0_22] : memref<4x8xbf16, #tpu.memory_space<vmem>>, vector<4x8xbf16>
    %cst_23 = arith.constant dense<0.000000e+00> : vector<256x8xf32>
    %47 = tpu.matmul %45, %46, %cst_23 {dimension_numbers = #tpu.dot_dimension_numbers<[1], [0], [0], [1], [0, 0, 1, 1], [], []>} : vector<256x4xbf16>, vector<4x8xbf16>, vector<256x8xf32> -> vector<256x8xf32>
    %c0_24 = arith.constant 0 : index
    %c0_25 = arith.constant 0 : index
    %48 = vector.load %arg9[%c0_24, %c0_25] : memref<1x8xf32, #tpu.memory_space<vmem>>, vector<1x8xf32>
    %49 = vector.broadcast %48 : vector<1x8xf32> to vector<256x8xf32>
    %50 = arith.addf %47, %49 : vector<256x8xf32>
    %cst_26 = arith.constant 0.000000e+00 : f32
    %51 = vector.broadcast %cst_26 : f32 to vector<256x8xf32>
    %52 = arith.maximumf %50, %51 : vector<256x8xf32>
    %53 = arith.truncf %52 : vector<256x8xf32> to vector<256x8xbf16>
    %54 = vector.shape_cast %53 : vector<256x8xbf16> to vector<16x16x8xbf16>
    %c0_27 = arith.constant 0 : index
    %c0_28 = arith.constant 0 : index
    %c0_29 = arith.constant 0 : index
    %c0_30 = arith.constant 0 : index
    %c0_31 = arith.constant 0 : index
    %55 = vector.load %arg10[%c0_27, %c0_28, %c0_29, %c0_30, %c0_31] : memref<1x4x16x16x8xbf16, #tpu.memory_space<vmem>>, vector<1x1x16x16x8xbf16>
    %56 = vector.shape_cast %55 : vector<1x1x16x16x8xbf16> to vector<16x16x8xbf16>
    %57 = vector.shape_cast %54 : vector<16x16x8xbf16> to vector<1x1x16x16x8xbf16>
    tpu.vector_store %arg10[%c0_27, %c0_28, %c0_29, %c0_30, %c0_31], %57 {strides = array<i32>} : memref<1x4x16x16x8xbf16, #tpu.memory_space<vmem>>, vector<1x1x16x16x8xbf16>,
    %c5 = arith.constant 5 : index
    %c0_32 = arith.constant 0 : index
    %c0_33 = arith.constant 0 : index
    %58 = vector.load %arg6[%c5, %c0_32, %c0_33] : memref<9x4x4xbf16, #tpu.memory_space<vmem>>, vector<1x4x4xbf16>
    %59 = vector.shape_cast %58 : vector<1x4x4xbf16> to vector<4x4xbf16>
    %cst_34 = arith.constant dense<0.000000e+00> : vector<256x4xf32>
    %60 = tpu.matmul %30, %59, %cst_34 {dimension_numbers = #tpu.dot_dimension_numbers<[1], [0], [0], [1], [0, 0, 1, 1], [], []>} : vector<256x4xbf16>, vector<4x4xbf16>, vector<256x4xf32> -> vector<256x4xf32>
    %c3 = arith.constant 3 : index
    %c0_35 = arith.constant 0 : index
    %c0_36 = arith.constant 0 : index
    %61 = vector.load %arg6[%c3, %c0_35, %c0_36] : memref<9x4x4xbf16, #tpu.memory_space<vmem>>, vector<1x4x4xbf16>
    %62 = vector.shape_cast %61 : vector<1x4x4xbf16> to vector<4x4xbf16>
    %cst_37 = arith.constant dense<0.000000e+00> : vector<256x4xf32>
    %63 = tpu.matmul %32, %62, %cst_37 {dimension_numbers = #tpu.dot_dimension_numbers<[1], [0], [0], [1], [0, 0, 1, 1], [], []>} : vector<256x4xbf16>, vector<4x4xbf16>, vector<256x4xf32> -> vector<256x4xf32>
    %64 = arith.addf %60, %63 : vector<256x4xf32>
    %c0_38 = arith.constant 0 : index
    %c0_39 = arith.constant 0 : index
    %65 = vector.load %arg7[%c0_38, %c0_39] : memref<1x4xf32, #tpu.memory_space<vmem>>, vector<1x4xf32>
    %66 = vector.broadcast %65 : vector<1x4xf32> to vector<256x4xf32>
    %67 = arith.addf %64, %66 : vector<256x4xf32>
    %cst_40 = arith.constant 0.000000e+00 : f32
    %68 = vector.broadcast %cst_40 : f32 to vector<256x4xf32>
    %69 = arith.maximumf %67, %68 : vector<256x4xf32>
    %70 = arith.truncf %69 : vector<256x4xf32> to vector<256x4xbf16>
    %c0_41 = arith.constant 0 : index
    %c0_42 = arith.constant 0 : index
    %71 = vector.load %arg8[%c0_41, %c0_42] : memref<4x8xbf16, #tpu.memory_space<vmem>>, vector<4x8xbf16>
    %cst_43 = arith.constant dense<0.000000e+00> : vector<256x8xf32>
    %72 = tpu.matmul %70, %71, %cst_43 {dimension_numbers = #tpu.dot_dimension_numbers<[1], [0], [0], [1], [0, 0, 1, 1], [], []>} : vector<256x4xbf16>, vector<4x8xbf16>, vector<256x8xf32> -> vector<256x8xf32>
    %c0_44 = arith.constant 0 : index
    %c0_45 = arith.constant 0 : index
    %73 = vector.load %arg9[%c0_44, %c0_45] : memref<1x8xf32, #tpu.memory_space<vmem>>, vector<1x8xf32>
    %74 = vector.broadcast %73 : vector<1x8xf32> to vector<256x8xf32>
    %75 = arith.addf %72, %74 : vector<256x8xf32>
    %cst_46 = arith.constant 0.000000e+00 : f32
    %76 = vector.broadcast %cst_46 : f32 to vector<256x8xf32>
    %77 = arith.maximumf %75, %76 : vector<256x8xf32>
    %78 = arith.truncf %77 : vector<256x8xf32> to vector<256x8xbf16>
    %79 = vector.shape_cast %78 : vector<256x8xbf16> to vector<16x16x8xbf16>
    %c0_47 = arith.constant 0 : index
    %c1 = arith.constant 1 : index
    %c0_48 = arith.constant 0 : index
    %c0_49 = arith.constant 0 : index
    %c0_50 = arith.constant 0 : index
    %80 = vector.load %arg10[%c0_47, %c1, %c0_48, %c0_49, %c0_50] : memref<1x4x16x16x8xbf16, #tpu.memory_space<vmem>>, vector<1x1x16x16x8xbf16>
    %81 = vector.shape_cast %80 : vector<1x1x16x16x8xbf16> to vector<16x16x8xbf16>
    %82 = vector.shape_cast %79 : vector<16x16x8xbf16> to vector<1x1x16x16x8xbf16>
    tpu.vector_store %arg10[%c0_47, %c1, %c0_48, %c0_49, %c0_50], %82 {strides = array<i32>} : memref<1x4x16x16x8xbf16, #tpu.memory_space<vmem>>, vector<1x1x16x16x8xbf16>,
    %c7 = arith.constant 7 : index
    %c0_51 = arith.constant 0 : index
    %c0_52 = arith.constant 0 : index
    %83 = vector.load %arg6[%c7, %c0_51, %c0_52] : memref<9x4x4xbf16, #tpu.memory_space<vmem>>, vector<1x4x4xbf16>
    %84 = vector.shape_cast %83 : vector<1x4x4xbf16> to vector<4x4xbf16>
    %cst_53 = arith.constant dense<0.000000e+00> : vector<256x4xf32>
    %85 = tpu.matmul %30, %84, %cst_53 {dimension_numbers = #tpu.dot_dimension_numbers<[1], [0], [0], [1], [0, 0, 1, 1], [], []>} : vector<256x4xbf16>, vector<4x4xbf16>, vector<256x4xf32> -> vector<256x4xf32>
    %c1_54 = arith.constant 1 : index
    %c0_55 = arith.constant 0 : index
    %c0_56 = arith.constant 0 : index
    %86 = vector.load %arg6[%c1_54, %c0_55, %c0_56] : memref<9x4x4xbf16, #tpu.memory_space<vmem>>, vector<1x4x4xbf16>
    %87 = vector.shape_cast %86 : vector<1x4x4xbf16> to vector<4x4xbf16>
    %cst_57 = arith.constant dense<0.000000e+00> : vector<256x4xf32>
    %88 = tpu.matmul %34, %87, %cst_57 {dimension_numbers = #tpu.dot_dimension_numbers<[1], [0], [0], [1], [0, 0, 1, 1], [], []>} : vector<256x4xbf16>, vector<4x4xbf16>, vector<256x4xf32> -> vector<256x4xf32>
    %89 = arith.addf %85, %88 : vector<256x4xf32>
    %c0_58 = arith.constant 0 : index
    %c0_59 = arith.constant 0 : index
    %90 = vector.load %arg7[%c0_58, %c0_59] : memref<1x4xf32, #tpu.memory_space<vmem>>, vector<1x4xf32>
    %91 = vector.broadcast %90 : vector<1x4xf32> to vector<256x4xf32>
    %92 = arith.addf %89, %91 : vector<256x4xf32>
    %cst_60 = arith.constant 0.000000e+00 : f32
    %93 = vector.broadcast %cst_60 : f32 to vector<256x4xf32>
    %94 = arith.maximumf %92, %93 : vector<256x4xf32>
    %95 = arith.truncf %94 : vector<256x4xf32> to vector<256x4xbf16>
    %c0_61 = arith.constant 0 : index
    %c0_62 = arith.constant 0 : index
    %96 = vector.load %arg8[%c0_61, %c0_62] : memref<4x8xbf16, #tpu.memory_space<vmem>>, vector<4x8xbf16>
    %cst_63 = arith.constant dense<0.000000e+00> : vector<256x8xf32>
    %97 = tpu.matmul %95, %96, %cst_63 {dimension_numbers = #tpu.dot_dimension_numbers<[1], [0], [0], [1], [0, 0, 1, 1], [], []>} : vector<256x4xbf16>, vector<4x8xbf16>, vector<256x8xf32> -> vector<256x8xf32>
    %c0_64 = arith.constant 0 : index
    %c0_65 = arith.constant 0 : index
    %98 = vector.load %arg9[%c0_64, %c0_65] : memref<1x8xf32, #tpu.memory_space<vmem>>, vector<1x8xf32>
    %99 = vector.broadcast %98 : vector<1x8xf32> to vector<256x8xf32>
    %100 = arith.addf %97, %99 : vector<256x8xf32>
    %cst_66 = arith.constant 0.000000e+00 : f32
    %101 = vector.broadcast %cst_66 : f32 to vector<256x8xf32>
    %102 = arith.maximumf %100, %101 : vector<256x8xf32>
    %103 = arith.truncf %102 : vector<256x8xf32> to vector<256x8xbf16>
    %104 = vector.shape_cast %103 : vector<256x8xbf16> to vector<16x16x8xbf16>
    %c0_67 = arith.constant 0 : index
    %c2 = arith.constant 2 : index
    %c0_68 = arith.constant 0 : index
    %c0_69 = arith.constant 0 : index
    %c0_70 = arith.constant 0 : index
    %105 = vector.load %arg10[%c0_67, %c2, %c0_68, %c0_69, %c0_70] : memref<1x4x16x16x8xbf16, #tpu.memory_space<vmem>>, vector<1x1x16x16x8xbf16>
    %106 = vector.shape_cast %105 : vector<1x1x16x16x8xbf16> to vector<16x16x8xbf16>
    %107 = vector.shape_cast %104 : vector<16x16x8xbf16> to vector<1x1x16x16x8xbf16>
    tpu.vector_store %arg10[%c0_67, %c2, %c0_68, %c0_69, %c0_70], %107 {strides = array<i32>} : memref<1x4x16x16x8xbf16, #tpu.memory_space<vmem>>, vector<1x1x16x16x8xbf16>,
    %c8 = arith.constant 8 : index
    %c0_71 = arith.constant 0 : index
    %c0_72 = arith.constant 0 : index
    %108 = vector.load %arg6[%c8, %c0_71, %c0_72] : memref<9x4x4xbf16, #tpu.memory_space<vmem>>, vector<1x4x4xbf16>
    %109 = vector.shape_cast %108 : vector<1x4x4xbf16> to vector<4x4xbf16>
    %cst_73 = arith.constant dense<0.000000e+00> : vector<256x4xf32>
    %110 = tpu.matmul %30, %109, %cst_73 {dimension_numbers = #tpu.dot_dimension_numbers<[1], [0], [0], [1], [0, 0, 1, 1], [], []>} : vector<256x4xbf16>, vector<4x4xbf16>, vector<256x4xf32> -> vector<256x4xf32>
    %c6 = arith.constant 6 : index
    %c0_74 = arith.constant 0 : index
    %c0_75 = arith.constant 0 : index
    %111 = vector.load %arg6[%c6, %c0_74, %c0_75] : memref<9x4x4xbf16, #tpu.memory_space<vmem>>, vector<1x4x4xbf16>
    %112 = vector.shape_cast %111 : vector<1x4x4xbf16> to vector<4x4xbf16>
    %cst_76 = arith.constant dense<0.000000e+00> : vector<256x4xf32>
    %113 = tpu.matmul %32, %112, %cst_76 {dimension_numbers = #tpu.dot_dimension_numbers<[1], [0], [0], [1], [0, 0, 1, 1], [], []>} : vector<256x4xbf16>, vector<4x4xbf16>, vector<256x4xf32> -> vector<256x4xf32>
    %114 = arith.addf %110, %113 : vector<256x4xf32>
    %c2_77 = arith.constant 2 : index
    %c0_78 = arith.constant 0 : index
    %c0_79 = arith.constant 0 : index
    %115 = vector.load %arg6[%c2_77, %c0_78, %c0_79] : memref<9x4x4xbf16, #tpu.memory_space<vmem>>, vector<1x4x4xbf16>
    %116 = vector.shape_cast %115 : vector<1x4x4xbf16> to vector<4x4xbf16>
    %cst_80 = arith.constant dense<0.000000e+00> : vector<256x4xf32>
    %117 = tpu.matmul %34, %116, %cst_80 {dimension_numbers = #tpu.dot_dimension_numbers<[1], [0], [0], [1], [0, 0, 1, 1], [], []>} : vector<256x4xbf16>, vector<4x4xbf16>, vector<256x4xf32> -> vector<256x4xf32>
    %118 = arith.addf %114, %117 : vector<256x4xf32>
    %c0_81 = arith.constant 0 : index
    %c0_82 = arith.constant 0 : index
    %c0_83 = arith.constant 0 : index
    %119 = vector.load %arg6[%c0_81, %c0_82, %c0_83] : memref<9x4x4xbf16, #tpu.memory_space<vmem>>, vector<1x4x4xbf16>
    %120 = vector.shape_cast %119 : vector<1x4x4xbf16> to vector<4x4xbf16>
    %cst_84 = arith.constant dense<0.000000e+00> : vector<256x4xf32>
    %121 = tpu.matmul %36, %120, %cst_84 {dimension_numbers = #tpu.dot_dimension_numbers<[1], [0], [0], [1], [0, 0, 1, 1], [], []>} : vector<256x4xbf16>, vector<4x4xbf16>, vector<256x4xf32> -> vector<256x4xf32>
    %122 = arith.addf %118, %121 : vector<256x4xf32>
    %c0_85 = arith.constant 0 : index
    %c0_86 = arith.constant 0 : index
    %123 = vector.load %arg7[%c0_85, %c0_86] : memref<1x4xf32, #tpu.memory_space<vmem>>, vector<1x4xf32>
    %124 = vector.broadcast %123 : vector<1x4xf32> to vector<256x4xf32>
    %125 = arith.addf %122, %124 : vector<256x4xf32>
    %cst_87 = arith.constant 0.000000e+00 : f32
    %126 = vector.broadcast %cst_87 : f32 to vector<256x4xf32>
    %127 = arith.maximumf %125, %126 : vector<256x4xf32>
    %128 = arith.truncf %127 : vector<256x4xf32> to vector<256x4xbf16>
    %c0_88 = arith.constant 0 : index
    %c0_89 = arith.constant 0 : index
    %129 = vector.load %arg8[%c0_88, %c0_89] : memref<4x8xbf16, #tpu.memory_space<vmem>>, vector<4x8xbf16>
    %cst_90 = arith.constant dense<0.000000e+00> : vector<256x8xf32>
    %130 = tpu.matmul %128, %129, %cst_90 {dimension_numbers = #tpu.dot_dimension_numbers<[1], [0], [0], [1], [0, 0, 1, 1], [], []>} : vector<256x4xbf16>, vector<4x8xbf16>, vector<256x8xf32> -> vector<256x8xf32>
    %c0_91 = arith.constant 0 : index
    %c0_92 = arith.constant 0 : index
    %131 = vector.load %arg9[%c0_91, %c0_92] : memref<1x8xf32, #tpu.memory_space<vmem>>, vector<1x8xf32>
    %132 = vector.broadcast %131 : vector<1x8xf32> to vector<256x8xf32>
    %133 = arith.addf %130, %132 : vector<256x8xf32>
    %cst_93 = arith.constant 0.000000e+00 : f32
    %134 = vector.broadcast %cst_93 : f32 to vector<256x8xf32>
    %135 = arith.maximumf %133, %134 : vector<256x8xf32>
    %136 = arith.truncf %135 : vector<256x8xf32> to vector<256x8xbf16>
    %137 = vector.shape_cast %136 : vector<256x8xbf16> to vector<16x16x8xbf16>
    %c0_94 = arith.constant 0 : index
    %c3_95 = arith.constant 3 : index
    %c0_96 = arith.constant 0 : index
    %c0_97 = arith.constant 0 : index
    %c0_98 = arith.constant 0 : index
    %138 = vector.load %arg10[%c0_94, %c3_95, %c0_96, %c0_97, %c0_98] : memref<1x4x16x16x8xbf16, #tpu.memory_space<vmem>>, vector<1x1x16x16x8xbf16>
    %139 = vector.shape_cast %138 : vector<1x1x16x16x8xbf16> to vector<16x16x8xbf16>
    %140 = vector.shape_cast %137 : vector<16x16x8xbf16> to vector<1x1x16x16x8xbf16>
    tpu.vector_store %arg10[%c0_94, %c3_95, %c0_96, %c0_97, %c0_98], %140 {strides = array<i32>} : memref<1x4x16x16x8xbf16, #tpu.memory_space<vmem>>, vector<1x1x16x16x8xbf16>,
    return
  }
  func.func @transform_0(%arg0: i32, %arg1: i32) -> (i32, i32, i32, i32) {
    %c0_i32 = arith.constant 0 : i32
    %c0_i32_0 = arith.constant 0 : i32
    %c0_i32_1 = arith.constant 0 : i32
    return %arg0, %arg1, %c0_i32, %c0_i32_0 : i32, i32, i32, i32
  }
  func.func @transform_1(%arg0: i32, %arg1: i32) -> (i32, i32, i32, i32) {
    %c1_i32 = arith.constant 1 : i32
    %0 = arith.addi %arg1, %c1_i32 : i32
    %c16_i32 = arith.constant 16 : i32
    %1 = arith.muli %0, %c16_i32 : i32
    %c15_i32 = arith.constant 15 : i32
    %2 = arith.minsi %1, %c15_i32 : i32
    %c0_i32 = arith.constant 0 : i32
    %c0_i32_0 = arith.constant 0 : i32
    %c0_i32_1 = arith.constant 0 : i32
    return %arg0, %2, %c0_i32, %c0_i32_0 : i32, i32, i32, i32
  }
  func.func @transform_2(%arg0: i32, %arg1: i32) -> (i32, i32) {
    %c0_i32 = arith.constant 0 : i32
    %c0_i32_0 = arith.constant 0 : i32
    %c0_i32_1 = arith.constant 0 : i32
    return %c0_i32, %c0_i32_0 : i32, i32
  }
  func.func @transform_3(%arg0: i32, %arg1: i32) -> (i32, i32) {
    %c0_i32 = arith.constant 0 : i32
    %c0_i32_0 = arith.constant 0 : i32
    %c0_i32_1 = arith.constant 0 : i32
    return %c0_i32, %c0_i32_0 : i32, i32
  }
  func.func @transform_4(%arg0: i32, %arg1: i32) -> (i32, i32, i32) {
    %c0_i32 = arith.constant 0 : i32
    %c0_i32_0 = arith.constant 0 : i32
    %c0_i32_1 = arith.constant 0 : i32
    %c0_i32_2 = arith.constant 0 : i32
    return %c0_i32, %c0_i32_0, %c0_i32_1 : i32, i32, i32
  }
  func.func @transform_5(%arg0: i32, %arg1: i32) -> (i32, i32) {
    %c0_i32 = arith.constant 0 : i32
    %c0_i32_0 = arith.constant 0 : i32
    %c0_i32_1 = arith.constant 0 : i32
    return %c0_i32, %c0_i32_0 : i32, i32
  }
  func.func @transform_6(%arg0: i32, %arg1: i32) -> (i32, i32) {
    %c0_i32 = arith.constant 0 : i32
    %c0_i32_0 = arith.constant 0 : i32
    %c0_i32_1 = arith.constant 0 : i32
    return %c0_i32, %c0_i32_0 : i32, i32
  }
  func.func @transform_7(%arg0: i32, %arg1: i32) -> (i32, i32) {
    %c0_i32 = arith.constant 0 : i32
    %c0_i32_0 = arith.constant 0 : i32
    %c0_i32_1 = arith.constant 0 : i32
    return %c0_i32, %c0_i32_0 : i32, i32
  }
  func.func @transform_8(%arg0: i32, %arg1: i32) -> (i32, i32, i32, i32, i32) {
    %c0_i32 = arith.constant 0 : i32
    %c0_i32_0 = arith.constant 0 : i32
    %c0_i32_1 = arith.constant 0 : i32
    %c0_i32_2 = arith.constant 0 : i32
    return %arg0, %c0_i32, %arg1, %c0_i32_0, %c0_i32_1 : i32, i32, i32, i32, i32
  }
}

</mosaic_0001>

<bundles_post_ra>
// kernel: decoder_bottleneck_forward.1
= control target key start
LH: loop header
LB: loop body
LE: loop exit
PB: predicated region body
PF: predicated region fallthrough
CT: control target
= control target key end

     0   :  { %s6482_s27 = smov 0   ;;  %s6484_s28 = smov 0   ;;  %s7738_s0 = inlined_call_operand.vmem [shape: bf16[2,16,16,16], index: 0, kind: input, shape index: {}, may-alias: {0,1}]   ;;  %s7739_s1 = inlined_call_operand.vmem [shape: bf16[2,16,16,16], index: 1, kind: input, shape index: {}, may-alias: {0,1}]   ;;  %s7740_s2 = inlined_call_operand.vmem [shape: bf16[16,4], index: 2, kind: input, shape index: {}]   ;;  %s7741_s3 = inlined_call_operand.vmem [shape: f32[1,4], index: 3, kind: input, shape index: {}]   ;;  %s7742_s4 = inlined_call_operand.vmem [shape: bf16[9,4,4], index: 4, kind: input, shape index: {}]   ;;  %s7743_s5 = inlined_call_operand.vmem [shape: f32[1,4], index: 5, kind: input, shape index: {}]   ;;  %s7744_s6 = inlined_call_operand.vmem [shape: bf16[4,8], index: 6, kind: input, shape index: {}]   ;;  %s7745_s7 = inlined_call_operand.vmem [shape: f32[1,8], index: 7, kind: input, shape index: {}]   ;;  %s7746_s8 = inlined_call_operand.vmem [shape: bf16[2,4,16,16,8], index: 8, kind: output, shape index: {}]  }
   0x1   :  { %s6486_s29 = smov 0  }
   0x2 LB: > { %s30_s30 = sadd.s32 1, %s6427_s28  ;;  %p4811_p0 = scmp.ge.s32.totalorder %s6431_s29, 1  ;;  %s6431_s29 = sphi %s6486_s29, %s18_s29   ;;  %s6427_s28 = sphi %s6484_s28, %s7750_s28   ;;  %s6423_s27 = sphi %s6482_s27, %s7749_s27  }
   0x3   : > { %p32_p1 = scmp.ge.s32.totalorder %s30_s30, 2  ;;  %p316_p2 = scmp.lt.s32.totalorder %s6431_s29, 3 }
   0x5   : > { %s7752_s30 = smov (%p32_p1, %s30_s30), 0  ;;  %p317_p3 = pnand %p4811_p0, %p316_p2 }
   0x6   : > { %v6390_v0 = vld [vmem:[%s7740_s2] sm:$0xff] (!%p317_p3)   ;;  %v6433_v1 = vmov (!%p317_p3), 0.0   ;;  %p374_p4 = scmp.lt.s32.totalorder (!%p317_p3), %s6423_s27, 1  ;;  %v4854_v2 = vld [vmem:[%s7742_s4 + $0x8] sm:$0x3] (!%p317_p3)  ;;  %vm1120_vm0 = vcmask (!%p317_p3), 1041408  }
   0x7   : > { %320 = sbr.rel (%p317_p3) target bundleno = 1980 (0x7bc), region = 52  ;;  %5674 = vmatprep.subr.bf16.mxu0 (!%p317_p3), %v6433_v1  ;;  %vm6434_vm1 = vmmov (!%p317_p3), 0   ;;  %vm547_vm2 = vcmask (!%p317_p3), 130048   ;;  %v1122_v4 = vsel (!%p317_p3), %vm1120_vm0, %v4854_v2, 0  ;;  %v6594_v21 = vld [vmem:[%s7741_s3] ss:$0 sm:$0xff] (!%p317_p3) }
   0x8   : > { %5675 = vmatpush3.bf16.msra.mxu0 (!%p317_p3), %v6390_v0  ;;  %5676 = vmatprep.mubr.msk.bf16.mxu0 (!%p317_p3), %vm6434_vm1, %v6433_v1  ;;  %vm1087_vm3 = vcmask (!%p317_p3), 31744   ;;  %vm1058_vm4 = vcmask (!%p317_p3), 1047552   ;;  %vm1059_vm5 = vsmask.f32 (!%p317_p3), 7424  ;;  %vm1713_vm7 = vcmask (!%p317_p3), 60416  }
   0x9   : > { %6348 = vmatprep.subr.msk.bf16.mxu0 (!%p317_p3), %vm1120_vm0, %v4854_v2  ;;  %vm6769_vm6 = vmand (!%p317_p3), %vm1058_vm4, %vm1059_vm5 }
   0xe   : > { %s7754_s27 = smov (!%p374_p4, %s6423_s27), 1 }
   0xf   : > { %s5302_s13 = sshll.u32 %s7754_s27, 7 }
  0x10   : > { %s6518_s16 = scalar_lea.vmem %s7738_s0, %s5302_s13  ;;  %s5304_s17 = sadd.s32 120, %s5302_s13 }
  0x11   : > { %v6391_v3 = vld [vmem:[%s6518_s16] sm:$0xff]   ;;  %v6392_v5 = vld [vmem:[%s6518_s16 + $0x8] sm:$0xff]   ;;  %v6393_v6 = vld [vmem:[%s6518_s16 + $0x10] sm:$0xff]   ;;  %s396_s20 = scalar_lea.vmem %s7739_s1, %s5304_s17  ;;  %s5305_s17 = sshll.u32 %s7754_s27, 9 }
  0x12   : > { %5677 = vmatmul.mubr.msk.bf16.vlgmr.msra.gmra.mrb[0].mxu0 %vm547_vm2, %v6391_v3  ;;  %v6394_v7 = vld [vmem:[%s6518_s16 + $0x18] sm:$0xff]   ;;  %v6395_v8 = vld [vmem:[%s6518_s16 + $0x20] sm:$0xff]   ;;  %v6396_v9 = vld [vmem:[%s6518_s16 + $0x28] sm:$0xff]  }
  0x13   : > { %5680 = vmatprep.mubr.msk.bf16.mxu0 %vm6434_vm1, %v6433_v1  ;;  %5745 = vmatpush3.bf16.msra.mxu0 %v1122_v4  ;;  %v6397_v10 = vld [vmem:[%s6518_s16 + $0x30] sm:$0xff]   ;;  %v6398_v11 = vld [vmem:[%s6518_s16 + $0x38] sm:$0xff]   ;;  %v6399_v12 = vld [vmem:[%s6518_s16 + $0x40] sm:$0xff]  }
  0x14   : > { %v6400_v13 = vld [vmem:[%s6518_s16 + $0x48] sm:$0xff]   ;;  %v6401_v14 = vld [vmem:[%s6518_s16 + $0x50] sm:$0xff]   ;;  %v6402_v15 = vld [vmem:[%s6518_s16 + $0x58] sm:$0xff]  }
  0x15   : > { %v6403_v16 = vld [vmem:[%s6518_s16 + $0x60] sm:$0xff]   ;;  %v6404_v17 = vld [vmem:[%s6518_s16 + $0x68] sm:$0xff]   ;;  %v6405_v18 = vld [vmem:[%s6518_s16 + $0x70] sm:$0xff]  }
  0x16   : > { %v6406_v19 = vld [vmem:[%s6518_s16 + $0x78] sm:$0xff]   ;;  %v6407_v20 = vld [vmem:[%s396_s20] sm:$0xff]   ;;  %s6936_s20 = scalar_lea.vmem %s7746_s8, %s5305_s17 }
  0x1a   : > { %5681 = vmatmul.mubr.msk.bf16.gmra.mrb[4].mxu0 %vm547_vm2, %v6392_v5 }
  0x1b   : > { %5684 = vmatprep.mubr.msk.bf16.mxu0 %vm6434_vm1, %v6433_v1 }
  0x22   : > { %5685 = vmatmul.mubr.msk.bf16.gmra.mrb[8].mxu0 %vm547_vm2, %v6393_v6 }
  0x23   : > { %5688 = vmatprep.mubr.msk.bf16.mxu0 %vm6434_vm1, %v6433_v1 }
  0x2a   : > { %5689 = vmatmul.mubr.msk.bf16.gmra.mrb[12].mxu0 %vm547_vm2, %v6394_v7 }
  0x2b   : > { %5692 = vmatprep.mubr.msk.bf16.mxu0 %vm6434_vm1, %v6433_v1 }
  0x32   : > { %5693 = vmatmul.mubr.msk.bf16.gmra.mrb[16].mxu0 %vm547_vm2, %v6395_v8 }
  0x33   : > { %5696 = vmatprep.mubr.msk.bf16.mxu0 %vm6434_vm1, %v6433_v1 }
  0x3a   : > { %5697 = vmatmul.mubr.msk.bf16.gmra.mrb[20].mxu0 %vm547_vm2, %v6396_v9 }
  0x3b   : > { %5700 = vmatprep.mubr.msk.bf16.mxu0 %vm6434_vm1, %v6433_v1 }
  0x42   : > { %5701 = vmatmul.mubr.msk.bf16.gmra.mrb[24].mxu0 %vm547_vm2, %v6397_v10 }
  0x43   : > { %5704 = vmatprep.mubr.msk.bf16.mxu0 %vm6434_vm1, %v6433_v1 }
  0x4a   : > { %5705 = vmatmul.mubr.msk.bf16.gmra.mrb[28].mxu0 %vm547_vm2, %v6398_v11 }
  0x4b   : > { %5708 = vmatprep.mubr.msk.bf16.mxu0 %vm6434_vm1, %v6433_v1 }
  0x52   : > { %5709 = vmatmul.mubr.msk.bf16.gmra.mrb[32].mxu0 %vm547_vm2, %v6399_v12 }
  0x53   : > { %5712 = vmatprep.mubr.msk.bf16.mxu0 %vm6434_vm1, %v6433_v1 }
  0x5a   : > { %5713 = vmatmul.mubr.msk.bf16.gmra.mrb[36].mxu0 %vm547_vm2, %v6400_v13 }
  0x5b   : > { %5716 = vmatprep.mubr.msk.bf16.mxu0 %vm6434_vm1, %v6433_v1 }
  0x62   : > { %5717 = vmatmul.mubr.msk.bf16.gmra.mrb[40].mxu0 %vm547_vm2, %v6401_v14 }
  0x63   : > { %5720 = vmatprep.mubr.msk.bf16.mxu0 %vm6434_vm1, %v6433_v1 }
  0x6a   : > { %5721 = vmatmul.mubr.msk.bf16.gmra.mrb[44].mxu0 %vm547_vm2, %v6402_v15 }
  0x6b   : > { %5724 = vmatprep.mubr.msk.bf16.mxu0 %vm6434_vm1, %v6433_v1 }
  0x72   : > { %5725 = vmatmul.mubr.msk.bf16.gmra.mrb[48].mxu0 %vm547_vm2, %v6403_v16 }
  0x73   : > { %5728 = vmatprep.mubr.msk.bf16.mxu0 %vm6434_vm1, %v6433_v1 }
  0x7a   : > { %5729 = vmatmul.mubr.msk.bf16.gmra.mrb[52].mxu0 %vm547_vm2, %v6404_v17 }
  0x7b   : > { %5732 = vmatprep.mubr.msk.bf16.mxu0 %vm6434_vm1, %v6433_v1 }
  0x82   : > { %5733 = vmatmul.mubr.msk.bf16.gmra.mrb[56].mxu0 %vm547_vm2, %v6405_v18 }
  0x83   : > { %5736 = vmatprep.mubr.msk.bf16.mxu0 %vm6434_vm1, %v6433_v1 }
  0x8a   : > { %5737 = vmatmul.mubr.msk.bf16.gmra.mrb[60].mxu0 %vm547_vm2, %v6406_v19 }
  0x8b   : > { %5740 = vmatprep.mubr.msk.bf16.mxu0 %vm6434_vm1, %v6433_v1 }
  0x92   : > { %5741 = vmatmul.mubr.msk.bf16.gmra.mrb[64].mxu0 %vm547_vm2, %v6407_v20 }
  0xe5   : > { %v633_v22 = vpop.f32.mrb[0].mxu0 }
  0xe6   : > { %v634_v23 = vadd.f32 %v6594_v21, %v633_v22  ;;  %v5678_v24 = vpop.f32.mrb[1].mxu0 }
  0xe7   : > { %v636_v25 = vpop.f32.mrb[2].mxu0 }
  0xe8   : > { %v637_v26 = vadd.f32 %v6594_v21, %v636_v25  ;;  %v5679_v27 = vpop.f32.mrb[3].mxu0  ;;  %v768_v28 = vmax.f32 %v634_v23, 0.0 }
  0xea   : > { %v769_v29 = vmax.f32 %v637_v26, 0.0 }
  0xec   : > { %v6598_v30 = vpack.c.bf16 %v769_v29, %v768_v28 }
  0xed   : > { %v641_v31 = vpop.f32.mrb[4].mxu0 }
  0xee   : > { %v642_v32 = vadd.f32 %v6594_v21, %v641_v31  ;;  %v5682_v33 = vpop.f32.mrb[5].mxu0  ;;  %5746 = vmatprep.mubr.msk.bf16.mxu0 %vm1087_vm3, %v6598_v30 }
  0xef   : > { %v644_v34 = vpop.f32.mrb[6].mxu0 }
  0xf0   : > { %v645_v35 = vadd.f32 %v6594_v21, %v644_v34  ;;  %v5683_v36 = vpop.f32.mrb[7].mxu0  ;;  %v770_v37 = vmax.f32 %v642_v32, 0.0 }
  0xf2   : > { %v771_v38 = vmax.f32 %v645_v35, 0.0 }
  0xf4   : > { %v6604_v39 = vpack.c.bf16 %v771_v38, %v770_v37 }
  0xf5   : > { %v649_v40 = vpop.f32.mrb[8].mxu0 }
  0xf6   : > { %v650_v41 = vadd.f32 %v6594_v21, %v649_v40  ;;  %v5686_v42 = vpop.f32.mrb[9].mxu0  ;;  %5747 = vmatmul.mubr.msk.bf16.vlgmr.msra.gmra.mrb[68].mxu0 %vm1087_vm3, %v6604_v39 }
  0xf7   : > { %v652_v43 = vpop.f32.mrb[10].mxu0 }
  0xf8   : > { %v653_v44 = vadd.f32 %v6594_v21, %v652_v43  ;;  %v5687_v45 = vpop.f32.mrb[11].mxu0  ;;  %v772_v46 = vmax.f32 %v650_v41, 0.0 }
  0xfa   : > { %v773_v47 = vmax.f32 %v653_v44, 0.0 }
  0xfc   : > { %v6610_v48 = vpack.c.bf16 %v773_v47, %v772_v46 }
  0xfd   : > { %v657_v49 = vpop.f32.mrb[12].mxu0 }
  0xfe   : > { %v658_v50 = vadd.f32 %v6594_v21, %v657_v49  ;;  %v5690_v51 = vpop.f32.mrb[13].mxu0  ;;  %5750 = vmatprep.mubr.msk.bf16.mxu0 %vm1087_vm3, %v6610_v48 }
  0xff   : > { %v660_v52 = vpop.f32.mrb[14].mxu0 }
 0x100   : > { %v661_v53 = vadd.f32 %v6594_v21, %v660_v52  ;;  %v5691_v54 = vpop.f32.mrb[15].mxu0  ;;  %v774_v55 = vmax.f32 %v658_v50, 0.0 }
 0x102   : > { %v775_v56 = vmax.f32 %v661_v53, 0.0 }
 0x104   : > { %v6616_v57 = vpack.c.bf16 %v775_v56, %v774_v55 }
 0x105   : > { %v665_v58 = vpop.f32.mrb[16].mxu0 }
 0x106   : > { %v666_v59 = vadd.f32 %v6594_v21, %v665_v58  ;;  %v5694_v60 = vpop.f32.mrb[17].mxu0  ;;  %5751 = vmatmul.mubr.msk.bf16.gmra.mrb[72].mxu0 %vm1087_vm3, %v6616_v57 }
 0x107   : > { %v668_v61 = vpop.f32.mrb[18].mxu0 }
 0x108   : > { %v669_v62 = vadd.f32 %v6594_v21, %v668_v61  ;;  %v5695_v63 = vpop.f32.mrb[19].mxu0  ;;  %v776_v0 = vmax.f32 %v666_v59, 0.0 }
 0x10a   : > { %v777_v1 = vmax.f32 %v669_v62, 0.0 }
 0x10c   : > { %v6622_v2 = vpack.c.bf16 %v777_v1, %v776_v0 }
 0x10d   : > { %v673_v3 = vpop.f32.mrb[20].mxu0 }
 0x10e   : > { %v674_v4 = vadd.f32 %v6594_v21, %v673_v3  ;;  %v5698_v5 = vpop.f32.mrb[21].mxu0  ;;  %5754 = vmatprep.mubr.msk.bf16.mxu0 %vm1087_vm3, %v6622_v2 }
 0x10f   : > { %v676_v6 = vpop.f32.mrb[22].mxu0 }
 0x110   : > { %v677_v7 = vadd.f32 %v6594_v21, %v676_v6  ;;  %v5699_v8 = vpop.f32.mrb[23].mxu0  ;;  %v778_v9 = vmax.f32 %v674_v4, 0.0 }
 0x112   : > { %v779_v10 = vmax.f32 %v677_v7, 0.0 }
 0x114   : > { %v6628_v11 = vpack.c.bf16 %v779_v10, %v778_v9 }
 0x115   : > { %v681_v12 = vpop.f32.mrb[24].mxu0 }
 0x116   : > { %v682_v13 = vadd.f32 %v6594_v21, %v681_v12  ;;  %v5702_v14 = vpop.f32.mrb[25].mxu0  ;;  %5755 = vmatmul.mubr.msk.bf16.gmra.mrb[76].mxu0 %vm1087_vm3, %v6628_v11 }
 0x117   : > { %v684_v15 = vpop.f32.mrb[26].mxu0 }
 0x118   : > { %v685_v16 = vadd.f32 %v6594_v21, %v684_v15  ;;  %v5703_v17 = vpop.f32.mrb[27].mxu0  ;;  %v780_v18 = vmax.f32 %v682_v13, 0.0 }
 0x11a   : > { %v781_v19 = vmax.f32 %v685_v16, 0.0 }
 0x11c   : > { %v6634_v20 = vpack.c.bf16 %v781_v19, %v780_v18 }
 0x11d   : > { %v689_v22 = vpop.f32.mrb[28].mxu0 }
 0x11e   : > { %v690_v23 = vadd.f32 %v6594_v21, %v689_v22  ;;  %v5706_v24 = vpop.f32.mrb[29].mxu0  ;;  %5758 = vmatprep.mubr.msk.bf16.mxu0 %vm1087_vm3, %v6634_v20 }
 0x11f   : > { %v692_v25 = vpop.f32.mrb[30].mxu0  ;;  %v1333_v24 = vld [vmem:[%s7744_s6] sm:$0x3] }
 0x120   : > { %v693_v26 = vadd.f32 %v6594_v21, %v692_v25  ;;  %v5707_v27 = vpop.f32.mrb[31].mxu0  ;;  %v782_v28 = vmax.f32 %v690_v23, 0.0  ;;  %6349 = vmatprep.subr.msk.bf16.mxu0 %vm1120_vm0, %v1333_v24  ;;  %6350 = vmatprep.subr.msk.bf16.mxu1 %vm1120_vm0, %v1333_v24 }
 0x121   : > { %v1390_v27 = vsel %vm1120_vm0, %v1333_v24, 0 }
 0x122   : > { %v783_v29 = vmax.f32 %v693_v26, 0.0  ;;  %5779 = vmatpush3.bf16.msra.mxu0 %v1390_v27  ;;  %6187 = vmatpush3.bf16.msra.mxu1 %v1390_v27 }
 0x124   : > { %v6640_v31 = vpack.c.bf16 %v783_v29, %v782_v28 }
 0x125   : > { %v697_v32 = vpop.f32.mrb[32].mxu0 }
 0x126   : > { %v698_v33 = vadd.f32 %v6594_v21, %v697_v32  ;;  %v5710_v34 = vpop.f32.mrb[33].mxu0  ;;  %5759 = vmatmul.mubr.msk.bf16.gmra.mrb[80].mxu0 %vm1087_vm3, %v6640_v31 }
 0x127   : > { %v700_v35 = vpop.f32.mrb[34].mxu0 }
 0x128   : > { %v701_v36 = vadd.f32 %v6594_v21, %v700_v35  ;;  %v5711_v37 = vpop.f32.mrb[35].mxu0  ;;  %v784_v38 = vmax.f32 %v698_v33, 0.0 }
 0x12a   : > { %v785_v40 = vmax.f32 %v701_v36, 0.0 }
 0x12c   : > { %v6646_v41 = vpack.c.bf16 %v785_v40, %v784_v38 }
 0x12d   : > { %v705_v42 = vpop.f32.mrb[36].mxu0 }
 0x12e   : > { %v706_v43 = vadd.f32 %v6594_v21, %v705_v42  ;;  %v5714_v44 = vpop.f32.mrb[37].mxu0  ;;  %5762 = vmatprep.mubr.msk.bf16.mxu0 %vm1087_vm3, %v6646_v41 }
 0x12f   : > { %v708_v45 = vpop.f32.mrb[38].mxu0 }
 0x130   : > { %v709_v46 = vadd.f32 %v6594_v21, %v708_v45  ;;  %v5715_v47 = vpop.f32.mrb[39].mxu0  ;;  %v786_v49 = vmax.f32 %v706_v43, 0.0 }
 0x132   : > { %v787_v50 = vmax.f32 %v709_v46, 0.0 }
 0x134   : > { %v6652_v51 = vpack.c.bf16 %v787_v50, %v786_v49 }
 0x135   : > { %v713_v52 = vpop.f32.mrb[40].mxu0 }
 0x136   : > { %v714_v53 = vadd.f32 %v6594_v21, %v713_v52  ;;  %v5718_v54 = vpop.f32.mrb[41].mxu0  ;;  %5763 = vmatmul.mubr.msk.bf16.gmra.mrb[84].mxu0 %vm1087_vm3, %v6652_v51 }
 0x137   : > { %v716_v55 = vpop.f32.mrb[42].mxu0 }
 0x138   : > { %v717_v56 = vadd.f32 %v6594_v21, %v716_v55  ;;  %v5719_v58 = vpop.f32.mrb[43].mxu0  ;;  %v788_v59 = vmax.f32 %v714_v53, 0.0 }
 0x13a   : > { %v789_v60 = vmax.f32 %v717_v56, 0.0 }
 0x13c   : > { %v6658_v61 = vpack.c.bf16 %v789_v60, %v788_v59  ;;  %v6701_v60 = vld [vmem:[%s7742_s4 + $0x6] sm:$0x3] }
 0x13d   : > { %v721_v62 = vpop.f32.mrb[44].mxu0  ;;  %6351 = vmatprep.subr.msk.bf16.mxu1 %vm1120_vm0, %v6701_v60 }
 0x13e   : > { %v722_v63 = vadd.f32 %v6594_v21, %v721_v62  ;;  %v5722_v0 = vpop.f32.mrb[45].mxu0  ;;  %5766 = vmatprep.mubr.msk.bf16.mxu0 %vm1087_vm3, %v6658_v61 }
 0x13f   : > { %v724_v1 = vpop.f32.mrb[46].mxu0 }
 0x140   : > { %v725_v3 = vadd.f32 %v6594_v21, %v724_v1  ;;  %v5723_v4 = vpop.f32.mrb[47].mxu0  ;;  %v790_v5 = vmax.f32 %v722_v63, 0.0 }
 0x142   : > { %v791_v6 = vmax.f32 %v725_v3, 0.0 }
 0x144   : > { %v6664_v7 = vpack.c.bf16 %v791_v6, %v790_v5 }
 0x145   : > { %v729_v8 = vpop.f32.mrb[48].mxu0 }
 0x146   : > { %v730_v9 = vadd.f32 %v6594_v21, %v729_v8  ;;  %v5726_v10 = vpop.f32.mrb[49].mxu0  ;;  %5767 = vmatmul.mubr.msk.bf16.gmra.mrb[88].mxu0 %vm1087_vm3, %v6664_v7 }
 0x147   : > { %v732_v12 = vpop.f32.mrb[50].mxu0 }
 0x148   : > { %v733_v13 = vadd.f32 %v6594_v21, %v732_v12  ;;  %v5727_v14 = vpop.f32.mrb[51].mxu0  ;;  %v792_v15 = vmax.f32 %v730_v9, 0.0 }
 0x14a   : > { %v793_v16 = vmax.f32 %v733_v13, 0.0 }
 0x14c   : > { %v6670_v17 = vpack.c.bf16 %v793_v16, %v792_v15 }
 0x14d   : > { %v737_v18 = vpop.f32.mrb[52].mxu0 }
 0x14e   : > { %v738_v19 = vadd.f32 %v6594_v21, %v737_v18  ;;  %v5730_v22 = vpop.f32.mrb[53].mxu0  ;;  %5770 = vmatprep.mubr.msk.bf16.mxu0 %vm1087_vm3, %v6670_v17 }
 0x14f   : > { %v740_v23 = vpop.f32.mrb[54].mxu0 }
 0x150   : > { %v741_v25 = vadd.f32 %v6594_v21, %v740_v23  ;;  %v5731_v26 = vpop.f32.mrb[55].mxu0  ;;  %v794_v28 = vmax.f32 %v738_v19, 0.0 }
 0x152   : > { %v795_v29 = vmax.f32 %v741_v25, 0.0 }
 0x154   : > { %v6682_v32 = vpack.c.bf16 %v795_v29, %v794_v28 }
 0x155   : > { %v745_v33 = vpop.f32.mrb[56].mxu0 }
 0x156   : > { %v746_v34 = vadd.f32 %v6594_v21, %v745_v33  ;;  %v5734_v35 = vpop.f32.mrb[57].mxu0  ;;  %5771 = vmatmul.mubr.msk.bf16.gmra.mrb[92].mxu0 %vm1087_vm3, %v6682_v32 }
 0x157   : > { %v748_v36 = vpop.f32.mrb[58].mxu0 }
 0x158   : > { %v749_v37 = vadd.f32 %v6594_v21, %v748_v36  ;;  %v5735_v38 = vpop.f32.mrb[59].mxu0  ;;  %v796_v40 = vmax.f32 %v746_v34, 0.0 }
 0x15a   : > { %v797_v42 = vmax.f32 %v749_v37, 0.0 }
 0x15c   : > { %v6688_v43 = vpack.c.bf16 %v797_v42, %v796_v40 }
 0x15d   : > { %v753_v44 = vpop.f32.mrb[60].mxu0 }
 0x15e   : > { %v754_v45 = vadd.f32 %v6594_v21, %v753_v44  ;;  %v5738_v46 = vpop.f32.mrb[61].mxu0  ;;  %5774 = vmatprep.mubr.msk.bf16.mxu0 %vm1087_vm3, %v6688_v43 }
 0x15f   : > { %v756_v47 = vpop.f32.mrb[62].mxu0 }
 0x160   : > { %v757_v49 = vadd.f32 %v6594_v21, %v756_v47  ;;  %v5739_v50 = vpop.f32.mrb[63].mxu0  ;;  %v798_v52 = vmax.f32 %v754_v45, 0.0  ;;  %v6708_v21 = vld [vmem:[%s7743_s5] ss:$0 sm:$0xff] }
 0x162   : > { %v799_v53 = vmax.f32 %v757_v49, 0.0 }
 0x164   : > { %v6694_v54 = vpack.c.bf16 %v799_v53, %v798_v52 }
 0x165   : > { %v761_v55 = vpop.f32.mrb[64].mxu0 }
 0x166   : > { %5775 = vmatmul.mubr.msk.bf16.gmra.mrb[96].mxu0 %vm1087_vm3, %v6694_v54  ;;  %v5742_v56 = vpop.f32.mrb[65].mxu0 }
 0x167   : > { %v764_v58 = vpop.f32.mrb[66].mxu0 }
 0x168   : > { %v5743_v59 = vpop.f32.mrb[67].mxu0 }
 0x1c9   : > { %v5748_v62 = vpop.f32.mrb[68].mxu0 }
 0x1ca   : > { %v1167_v63 = vadd.f32 %v5748_v62, %v6708_v21  ;;  %v1158_v0 = vpop.f32.mrb[69].mxu0 }
 0x1cb   : > { %v1159_v1 = vadd.f32 %v6708_v21, %v1158_v0  ;;  %v5749_v3 = vpop.f32.mrb[70].mxu0 }
 0x1cc   : > { %v1170_v4 = vadd.f32 %v5749_v3, %v6708_v21  ;;  %v1161_v5 = vpop.f32.mrb[71].mxu0  ;;  %v1287_v8 = vmax.f32 %v1167_v63, 0.0 }
 0x1cd   : > { %v1162_v6 = vadd.f32 %v6708_v21, %v1161_v5  ;;  %v1285_v10 = vmax.f32 %v1159_v1, 0.0 }
 0x1ce   : > { %v1288_v9 = vmax.f32 %v1170_v4, 0.0 }
 0x1cf   : > { %v1286_v12 = vmax.f32 %v1162_v6, 0.0 }
 0x1d0   : > { %v1318_v13 = vpack.c.bf16 %v1288_v9, %v1287_v8 }
 0x1d1   : > { %v1317_v14 = vpack.c.bf16 %v1286_v12, %v1285_v10  ;;  %v1799_v10 = vsel %vm1120_vm0, %v6701_v60, 0  ;;  %v6738_v12 = vld [vmem:[%s7742_s4 + $0xa] sm:$0x3] }
 0x1d3   : > { %5780 = vmatprep.mubr.msk.bf16.mxu0 %vm1087_vm3, %v1317_v14 }
 0x1d4   : > { %5781 = vmatmul.mubr.msk.bf16.vlgmr.msra.gmra.mrb[100].mxu0 %vm1087_vm3, %v1318_v13 }
 0x1d9   : > { %v5752_v15 = vpop.f32.mrb[72].mxu0 }
 0x1da   : > { %v1183_v16 = vadd.f32 %v5752_v15, %v6708_v21  ;;  %v1174_v18 = vpop.f32.mrb[73].mxu0 }
 0x1db   : > { %v1175_v19 = vadd.f32 %v6708_v21, %v1174_v18  ;;  %v5753_v22 = vpop.f32.mrb[74].mxu0 }
 0x1dc   : > { %v1186_v23 = vadd.f32 %v5753_v22, %v6708_v21  ;;  %v1177_v24 = vpop.f32.mrb[75].mxu0  ;;  %v1291_v26 = vmax.f32 %v1183_v16, 0.0 }
 0x1dd   : > { %v1178_v25 = vadd.f32 %v6708_v21, %v1177_v24  ;;  %v1289_v28 = vmax.f32 %v1175_v19, 0.0 }
 0x1de   : > { %v1292_v27 = vmax.f32 %v1186_v23, 0.0 }
 0x1df   : > { %v1290_v29 = vmax.f32 %v1178_v25, 0.0 }
 0x1e0   : > { %v1320_v33 = vpack.c.bf16 %v1292_v27, %v1291_v26 }
 0x1e1   : > { %v1319_v34 = vpack.c.bf16 %v1290_v29, %v1289_v28 }
 0x1e3   : > { %5784 = vmatprep.mubr.msk.bf16.mxu0 %vm1087_vm3, %v1319_v34 }
 0x1e4   : > { %5785 = vmatmul.mubr.msk.bf16.gmra.mrb[104].mxu0 %vm1087_vm3, %v1320_v33 }
 0x1e9   : > { %v5756_v35 = vpop.f32.mrb[76].mxu0 }
 0x1ea   : > { %v1199_v36 = vadd.f32 %v5756_v35, %v6708_v21  ;;  %v1190_v37 = vpop.f32.mrb[77].mxu0 }
 0x1eb   : > { %v1191_v38 = vadd.f32 %v6708_v21, %v1190_v37  ;;  %v5757_v40 = vpop.f32.mrb[78].mxu0 }
 0x1ec   : > { %v1202_v42 = vadd.f32 %v5757_v40, %v6708_v21  ;;  %v1193_v44 = vpop.f32.mrb[79].mxu0  ;;  %v1295_v46 = vmax.f32 %v1199_v36, 0.0 }
 0x1ed   : > { %v1194_v45 = vadd.f32 %v6708_v21, %v1193_v44  ;;  %v1293_v49 = vmax.f32 %v1191_v38, 0.0 }
 0x1ee   : > { %v1296_v47 = vmax.f32 %v1202_v42, 0.0 }
 0x1ef   : > { %v1294_v50 = vmax.f32 %v1194_v45, 0.0 }
 0x1f0   : > { %v1322_v52 = vpack.c.bf16 %v1296_v47, %v1295_v46 }
 0x1f1   : > { %v1321_v53 = vpack.c.bf16 %v1294_v50, %v1293_v49 }
 0x1f3   : > { %5788 = vmatprep.mubr.msk.bf16.mxu0 %vm1087_vm3, %v1321_v53 }
 0x1f4   : > { %5789 = vmatmul.mubr.msk.bf16.gmra.mrb[108].mxu0 %vm1087_vm3, %v1322_v52 }
 0x1f9   : > { %v5760_v55 = vpop.f32.mrb[80].mxu0 }
 0x1fa   : > { %v1215_v56 = vadd.f32 %v5760_v55, %v6708_v21  ;;  %v1206_v58 = vpop.f32.mrb[81].mxu0 }
 0x1fb   : > { %v1207_v59 = vadd.f32 %v6708_v21, %v1206_v58  ;;  %v5761_v62 = vpop.f32.mrb[82].mxu0 }
 0x1fc   : > { %v1218_v63 = vadd.f32 %v5761_v62, %v6708_v21  ;;  %v1209_v0 = vpop.f32.mrb[83].mxu0  ;;  %v1299_v3 = vmax.f32 %v1215_v56, 0.0 }
 0x1fd   : > { %v1210_v1 = vadd.f32 %v6708_v21, %v1209_v0  ;;  %v1297_v5 = vmax.f32 %v1207_v59, 0.0 }
 0x1fe   : > { %v1300_v4 = vmax.f32 %v1218_v63, 0.0 }
 0x1ff   : > { %v1298_v6 = vmax.f32 %v1210_v1, 0.0 }
 0x200   : > { %v1324_v8 = vpack.c.bf16 %v1300_v4, %v1299_v3 }
 0x201   : > { %v1323_v9 = vpack.c.bf16 %v1298_v6, %v1297_v5  ;;  %v925_v6 = vshll.u32 %v6598_v30, 16 }
 0x203   : > { %5792 = vmatprep.mubr.msk.bf16.mxu1 %vm1087_vm3, %v1323_v9 }
 0x204   : > { %5793 = vmatmul.mubr.msk.bf16.vlgmr.msra.gmra.mrb[0].mxu1 %vm1087_vm3, %v1324_v8 }
 0x205   : > { %5813 = vmatpush3.bf16.msra.mxu1 %v1799_v10 }
 0x206   : > { %6352 = vmatprep.subr.msk.bf16.mxu1 %vm1120_vm0, %v6738_v12 }
 0x209   : > { %v5764_v13 = vpop.f32.mrb[84].mxu0 }
 0x20a   : > { %v1231_v14 = vadd.f32 %v5764_v13, %v6708_v21  ;;  %v1222_v15 = vpop.f32.mrb[85].mxu0 }
 0x20b   : > { %v1223_v16 = vadd.f32 %v6708_v21, %v1222_v15  ;;  %v5765_v60 = vpop.f32.mrb[86].mxu0 }
 0x20c   : > { %v1234_v18 = vadd.f32 %v5765_v60, %v6708_v21  ;;  %v1225_v19 = vpop.f32.mrb[87].mxu0  ;;  %v1303_v23 = vmax.f32 %v1231_v14, 0.0  ;;  %v927_v60 = vrot.slane %v925_v6, 1 }
 0x20d   : > { %v1226_v22 = vadd.f32 %v6708_v21, %v1225_v19  ;;  %v1301_v25 = vmax.f32 %v1223_v16, 0.0 }
 0x20e   : > { %v1304_v24 = vmax.f32 %v1234_v18, 0.0 }
 0x20f   : > { %v1302_v26 = vmax.f32 %v1226_v22, 0.0 }
 0x210   : > { %v1326_v27 = vpack.c.bf16 %v1304_v24, %v1303_v23  ;;  %v923_v23 = vshrl.u32 %v6598_v30, 16 }
 0x211   : > { %v1325_v28 = vpack.c.bf16 %v1302_v26, %v1301_v25  ;;  %v932_v26 = vshll.u32 %v6604_v39, 16 }
 0x213   : > { %5796 = vmatprep.mubr.msk.bf16.mxu1 %vm1087_vm3, %v1325_v28  ;;  %v928_v28 = vor.u32 %v927_v60, %v923_v23  ;;  %v972_v60 = vshrl.u32 %v6640_v31, 16 }
 0x214   : > { %5797 = vmatmul.mubr.msk.bf16.gmra.mrb[4].mxu1 %vm1087_vm3, %v1326_v27 }
 0x219   : > { %v5768_v29 = vpop.f32.mrb[88].mxu0 }
 0x21a   : > { %v1247_v33 = vadd.f32 %v5768_v29, %v6708_v21  ;;  %v1238_v34 = vpop.f32.mrb[89].mxu0  ;;  %v939_v29 = vshll.u32 %v6610_v48, 16 }
 0x21b   : > { %v1239_v35 = vadd.f32 %v6708_v21, %v1238_v34  ;;  %v5769_v36 = vpop.f32.mrb[90].mxu0 }
 0x21c   : > { %v1250_v37 = vadd.f32 %v5769_v36, %v6708_v21  ;;  %v1241_v38 = vpop.f32.mrb[91].mxu0  ;;  %v1307_v42 = vmax.f32 %v1247_v33, 0.0  ;;  %v6777_v36 = vsel %vm6769_vm6, %v928_v28, 0 }
 0x21d   : > { %v1242_v40 = vadd.f32 %v6708_v21, %v1241_v38  ;;  %v1305_v45 = vmax.f32 %v1239_v35, 0.0  ;;  %v934_v35 = vrot.slane %v932_v26, 1  ;;  %v930_v38 = vshrl.u32 %v6604_v39, 16 }
 0x21e   : > { %v1308_v44 = vmax.f32 %v1250_v37, 0.0  ;;  %v941_v37 = vrot.slane %v939_v29, 1  ;;  %v986_v29 = vshrl.u32 %v6652_v51, 16 }
 0x21f   : > { %v1306_v46 = vmax.f32 %v1242_v40, 0.0  ;;  %v937_v40 = vshrl.u32 %v6610_v48, 16 }
 0x220   : > { %v1328_v47 = vpack.c.bf16 %v1308_v44, %v1307_v42  ;;  %v935_v42 = vor.u32 %v934_v35, %v930_v38  ;;  %v946_v44 = vshll.u32 %v6616_v57, 16 }
 0x221   : > { %v1327_v49 = vpack.c.bf16 %v1306_v46, %v1305_v45  ;;  %v942_v45 = vor.u32 %v941_v37, %v937_v40  ;;  %v953_v46 = vshll.u32 %v6622_v2, 16  ;;  %v1002_v37 = vshll.u32 %v6664_v7, 16 }
 0x222   : > { %v1009_v40 = vshll.u32 %v6670_v17, 16 }
 0x223   : > { %5800 = vmatprep.mubr.msk.bf16.mxu1 %vm1087_vm3, %v1327_v49  ;;  %v6789_v49 = vsel %vm6769_vm6, %v935_v42, 0 }
 0x224   : > { %5801 = vmatmul.mubr.msk.bf16.gmra.mrb[8].mxu1 %vm1087_vm3, %v1328_v47  ;;  %v1963_v47 = vsel %vm1120_vm0, %v6738_v12, 0  ;;  %v951_v12 = vshrl.u32 %v6622_v2, 16 }
 0x229   : > { %v5772_v50 = vpop.f32.mrb[92].mxu0 }
 0x22a   : > { %v1263_v52 = vadd.f32 %v5772_v50, %v6708_v21  ;;  %v1254_v53 = vpop.f32.mrb[93].mxu0  ;;  %v948_v50 = vrot.slane %v946_v44, 1  ;;  %v1004_v44 = vrot.slane %v1002_v37, 1 }
 0x22b   : > { %v1255_v55 = vadd.f32 %v6708_v21, %v1254_v53  ;;  %v5773_v56 = vpop.f32.mrb[94].mxu0  ;;  %v955_v53 = vrot.slane %v953_v46, 1  ;;  %v1011_v46 = vrot.slane %v1009_v40, 1 }
 0x22c   : > { %v1266_v58 = vadd.f32 %v5773_v56, %v6708_v21  ;;  %v1257_v59 = vpop.f32.mrb[95].mxu0  ;;  %v1311_v63 = vmax.f32 %v1263_v52, 0.0  ;;  %v6795_v52 = vsel %vm6769_vm6, %v942_v45, 0 }
 0x22d   : > { %v1258_v62 = vadd.f32 %v6708_v21, %v1257_v59  ;;  %v1309_v1 = vmax.f32 %v1255_v55, 0.0  ;;  %v944_v55 = vshrl.u32 %v6616_v57, 16  ;;  %v956_v59 = vor.u32 %v955_v53, %v951_v12 }
 0x22e   : > { %v1312_v0 = vmax.f32 %v1266_v58, 0.0  ;;  %v960_v58 = vshll.u32 %v6628_v11, 16 }
 0x22f   : > { %v1310_v3 = vmax.f32 %v1258_v62, 0.0  ;;  %v949_v56 = vor.u32 %v948_v50, %v944_v55  ;;  %v967_v62 = vshll.u32 %v6634_v20, 16  ;;  %v1007_v50 = vshrl.u32 %v6670_v17, 16 }
 0x230   : > { %v1330_v4 = vpack.c.bf16 %v1312_v0, %v1311_v63  ;;  %v962_v0 = vrot.slane %v960_v58, 1  ;;  %v1016_v55 = vshll.u32 %v6682_v32, 16 }
 0x231   : > { %v1329_v5 = vpack.c.bf16 %v1310_v3, %v1309_v1  ;;  %v6805_v63 = vsel %vm6769_vm6, %v949_v56, 0  ;;  %v6811_v1 = vsel %vm6769_vm6, %v956_v59, 0  ;;  %v969_v3 = vrot.slane %v967_v62, 1 }
 0x232   : > { %v1012_v12 = vor.u32 %v1011_v46, %v1007_v50  ;;  %v1023_v56 = vshll.u32 %v6688_v43, 16  ;;  %v1018_v59 = vrot.slane %v1016_v55, 1 }
 0x233   : > { %5804 = vmatprep.mubr.msk.bf16.mxu1 %vm1087_vm3, %v1329_v5  ;;  %v965_v5 = vshrl.u32 %v6634_v20, 16 }
 0x234   : > { %5805 = vmatmul.mubr.msk.bf16.gmra.mrb[12].mxu1 %vm1087_vm3, %v1330_v4  ;;  %v958_v4 = vshrl.u32 %v6628_v11, 16  ;;  %v6875_v62 = vsel %vm6769_vm6, %v1012_v12, 0 }
 0x236   : > { %v963_v6 = vor.u32 %v962_v0, %v958_v4  ;;  %v1025_v0 = vrot.slane %v1023_v56, 1  ;;  %v1021_v4 = vshrl.u32 %v6688_v43, 16 }
 0x239   : > { %v5776_v8 = vpop.f32.mrb[96].mxu0 }
 0x23a   : > { %v1279_v9 = vadd.f32 %v5776_v8, %v6708_v21  ;;  %v1270_v10 = vpop.f32.mrb[97].mxu0  ;;  %v974_v8 = vshll.u32 %v6640_v31, 16 }
 0x23b   : > { %v1271_v13 = vadd.f32 %v6708_v21, %v1270_v10  ;;  %v5777_v14 = vpop.f32.mrb[98].mxu0  ;;  %v981_v10 = vshll.u32 %v6646_v41, 16 }
 0x23c   : > { %v1282_v15 = vadd.f32 %v5777_v14, %v6708_v21  ;;  %v1273_v16 = vpop.f32.mrb[99].mxu0  ;;  %v1315_v19 = vmax.f32 %v1279_v9, 0.0  ;;  %v970_v9 = vor.u32 %v969_v3, %v965_v5  ;;  %v976_v14 = vrot.slane %v974_v8, 1 }
 0x23d   : > { %v1274_v18 = vadd.f32 %v6708_v21, %v1273_v16  ;;  %v1313_v24 = vmax.f32 %v1271_v13, 0.0  ;;  %v6821_v13 = vsel %vm6769_vm6, %v963_v6, 0  ;;  %v983_v16 = vrot.slane %v981_v10, 1 }
 0x23e   : > { %v1316_v22 = vmax.f32 %v1282_v15, 0.0  ;;  %v6827_v15 = vsel %vm6769_vm6, %v970_v9, 0  ;;  %v1014_v3 = vshrl.u32 %v6682_v32, 16  ;;  %v1030_v6 = vshll.u32 %v6694_v54, 16 }
 0x23f   : > { %v1314_v25 = vmax.f32 %v1274_v18, 0.0  ;;  %v979_v18 = vshrl.u32 %v6646_v41, 16  ;;  %v1026_v8 = vor.u32 %v1025_v0, %v1021_v4 }
 0x240   : > { %v1332_v27 = vpack.c.bf16 %v1316_v22, %v1315_v19  ;;  %v977_v19 = vor.u32 %v976_v14, %v972_v60  ;;  %v988_v22 = vshll.u32 %v6652_v51, 16  ;;  %v1019_v5 = vor.u32 %v1018_v59, %v1014_v3 }
 0x241   : > { %v1331_v33 = vpack.c.bf16 %v1314_v25, %v1313_v24  ;;  %v984_v23 = vor.u32 %v983_v16, %v979_v18  ;;  %v995_v24 = vshll.u32 %v6658_v61, 16  ;;  %v1032_v10 = vrot.slane %v1030_v6, 1 }
 0x242   : > { %v6837_v25 = vsel %vm6769_vm6, %v977_v19, 0  ;;  %v990_v26 = vrot.slane %v988_v22, 1  ;;  %v6884_v9 = vsel %vm6769_vm6, %v1019_v5, 0  ;;  %v6890_v14 = vsel %vm6769_vm6, %v1026_v8, 0  ;;  %v2213_v19 = vld [vmem:[%s7744_s6] sm:$0x3] }
 0x243   : > { %5808 = vmatprep.mubr.msk.bf16.mxu1 %vm1087_vm3, %v1331_v33  ;;  %v997_v28 = vrot.slane %v995_v24, 1  ;;  %v993_v33 = vshrl.u32 %v6658_v61, 16  ;;  %v1028_v16 = vshrl.u32 %v6694_v54, 16  ;;  %6353 = vmatprep.subr.msk.bf16.mxu0 %vm1120_vm0, %v2213_v19  ;;  %v2270_v22 = vsel %vm1120_vm0, %v2213_v19, 0 }
 0x244   : > { %5809 = vmatmul.mubr.msk.bf16.gmra.mrb[16].mxu1 %vm1087_vm3, %v1332_v27  ;;  %v6843_v27 = vsel %vm6769_vm6, %v984_v23, 0  ;;  %v991_v35 = vor.u32 %v990_v26, %v986_v29  ;;  %5881 = vmatpush3.bf16.msra.mxu0 %v2270_v22  ;;  %v6927_v23 = vld [vmem:[%s7745_s7] ss:$0 sm:$0xff] }
 0x245   : > { %5814 = vmatprep.mubr.msk.bf16.mxu1 %vm1087_vm3, %v6777_v36  ;;  %v998_v38 = vor.u32 %v997_v28, %v993_v33  ;;  %v1033_v60 = vor.u32 %v1032_v10, %v1028_v16 }
 0x246   : > { %v6853_v42 = vsel %vm6769_vm6, %v991_v35, 0 }
 0x247   : > { %v6859_v45 = vsel %vm6769_vm6, %v998_v38, 0  ;;  %v6897_v18 = vsel %vm6769_vm6, %v1033_v60, 0 }
 0x24c   : > { %5815 = vmatmul.mubr.msk.bf16.vlgmr.msra.gmra.mrb[20].mxu1 %vm1087_vm3, %v6789_v49 }
 0x24d   : > { %5847 = vmatpush3.bf16.msra.mxu1 %v1963_v47  ;;  %5818 = vmatprep.mubr.msk.bf16.mxu1 %vm1087_vm3, %v6795_v52  ;;  %v1000_v47 = vshrl.u32 %v6664_v7, 16 }
 0x24f   : > { %v1005_v53 = vor.u32 %v1004_v44, %v1000_v47 }
 0x251   : > { %v6869_v58 = vsel %vm6769_vm6, %v1005_v53, 0 }
 0x254   : > { %5819 = vmatmul.mubr.msk.bf16.gmra.mrb[24].mxu1 %vm1087_vm3, %v6805_v63 }
 0x255   : > { %5822 = vmatprep.mubr.msk.bf16.mxu1 %vm1087_vm3, %v6811_v1 }
 0x25c   : > { %5823 = vmatmul.mubr.msk.bf16.gmra.mrb[28].mxu1 %vm1087_vm3, %v6821_v13 }
 0x25d   : > { %5826 = vmatprep.mubr.msk.bf16.mxu1 %vm1087_vm3, %v6827_v15 }
 0x264   : > { %5827 = vmatmul.mubr.msk.bf16.gmra.mrb[32].mxu1 %vm1087_vm3, %v6837_v25 }
 0x265   : > { %5830 = vmatprep.mubr.msk.bf16.mxu1 %vm1087_vm3, %v6843_v27 }
 0x26c   : > { %5831 = vmatmul.mubr.msk.bf16.gmra.mrb[36].mxu1 %vm1087_vm3, %v6853_v42 }
 0x26d   : > { %5834 = vmatprep.mubr.msk.bf16.mxu1 %vm1087_vm3, %v6859_v45 }
 0x274   : > { %5835 = vmatmul.mubr.msk.bf16.gmra.mrb[40].mxu1 %vm1087_vm3, %v6869_v58 }
 0x275   : > { %5838 = vmatprep.mubr.msk.bf16.mxu1 %vm1087_vm3, %v6875_v62 }
 0x27c   : > { %5839 = vmatmul.mubr.msk.bf16.gmra.mrb[44].mxu1 %vm1087_vm3, %v6884_v9 }
 0x27d   : > { %5842 = vmatprep.mubr.msk.bf16.mxu1 %vm1087_vm3, %v6890_v14 }
 0x284   : > { %5843 = vmatmul.mubr.msk.bf16.gmra.mrb[48].mxu1 %vm1087_vm3, %v6897_v18 }
 0x285   : > { %5848 = vmatprep.mubr.msk.bf16.mxu1 %vm1087_vm3, %v6598_v30 }
 0x28c   : > { %5849 = vmatmul.mubr.msk.bf16.vlgmr.msra.gmra.mrb[20].mxu1 %vm1087_vm3, %v6604_v39 }
 0x28d   : > { %5852 = vmatprep.mubr.msk.bf16.mxu1 %vm1087_vm3, %v6610_v48 }
 0x294   : > { %5853 = vmatmul.mubr.msk.bf16.gmra.mrb[24].mxu1 %vm1087_vm3, %v6616_v57 }
 0x295   : > { %5856 = vmatprep.mubr.msk.bf16.mxu1 %vm1087_vm3, %v6622_v2 }
 0x29c   : > { %5857 = vmatmul.mubr.msk.bf16.gmra.mrb[28].mxu1 %vm1087_vm3, %v6628_v11 }
 0x29d   : > { %5860 = vmatprep.mubr.msk.bf16.mxu1 %vm1087_vm3, %v6634_v20 }
 0x2a4   : > { %5861 = vmatmul.mubr.msk.bf16.gmra.mrb[32].mxu1 %vm1087_vm3, %v6640_v31 }
 0x2a5   : > { %5864 = vmatprep.mubr.msk.bf16.mxu1 %vm1087_vm3, %v6646_v41 }
 0x2a7   : > { %v5782_v24 = vpop.f32.mrb[100].mxu0 }
 0x2a8   : > { %v1435_v26 = vadd.f32 %v5782_v24, %v6927_v23  ;;  %v1426_v28 = vpop.f32.mrb[101].mxu0 }
 0x2a9   : > { %v1427_v29 = vadd.f32 %v6927_v23, %v1426_v28  ;;  %v5783_v33 = vpop.f32.mrb[102].mxu0 }
 0x2aa   : > { %v1555_v35 = vmax.f32 %v1435_v26, 0.0  ;;  %v1438_v37 = vadd.f32 %v5783_v33, %v6927_v23  ;;  %v1429_v38 = vpop.f32.mrb[103].mxu0 }
 0x2ab   : > { %v1553_v40 = vmax.f32 %v1427_v29, 0.0  ;;  %v1430_v44 = vadd.f32 %v6927_v23, %v1429_v38 }
 0x2ac   : > { %v5308_v46 = vpack.c.bf16 %v1555_v35, %v1555_v35  ;;  %v1556_v47 = vmax.f32 %v1438_v37, 0.0  ;;  %5865 = vmatmul.mubr.msk.bf16.gmra.mrb[36].mxu1 %vm1087_vm3, %v6652_v51 }
 0x2ad   : > { %v5306_v50 = vpack.c.bf16 %v1553_v40, %v1553_v40  ;;  %v1554_v53 = vmax.f32 %v1430_v44, 0.0  ;;  %5868 = vmatprep.mubr.msk.bf16.mxu1 %vm1087_vm3, %v6658_v61 }
 0x2ae   : > { %1716 = vst.msk [vmem:[%s6936_s20 + $0x8] sm:$0xf] %vm1713_vm7, %v5308_v46  ;;  %v5309_v55 = vpack.c.bf16 %v1556_v47, %v1556_v47 }
 0x2af   : > { %1714 = vst.msk [vmem:[%s6936_s20] sm:$0xf] %vm1713_vm7, %v5306_v50  ;;  %v5307_v12 = vpack.c.bf16 %v1554_v53, %v1554_v53 }
 0x2b0   : > { %1717 = vst.msk [vmem:[%s6936_s20 + $0xc] sm:$0xf] %vm1713_vm7, %v5309_v55 }
 0x2b1   : > { %1715 = vst.msk [vmem:[%s6936_s20 + $0x4] sm:$0xf] %vm1713_vm7, %v5307_v12 }
 0x2b4   : > { %5869 = vmatmul.mubr.msk.bf16.gmra.mrb[40].mxu1 %vm1087_vm3, %v6664_v7 }
 0x2b5   : > { %5872 = vmatprep.mubr.msk.bf16.mxu1 %vm1087_vm3, %v6670_v17 }
 0x2b7   : > { %v5786_v56 = vpop.f32.mrb[104].mxu0 }
 0x2b8   : > { %v1451_v59 = vadd.f32 %v5786_v56, %v6927_v23  ;;  %v1442_v0 = vpop.f32.mrb[105].mxu0 }
 0x2b9   : > { %v1443_v3 = vadd.f32 %v6927_v23, %v1442_v0  ;;  %v5787_v4 = vpop.f32.mrb[106].mxu0 }
 0x2ba   : > { %v1559_v5 = vmax.f32 %v1451_v59, 0.0  ;;  %v1454_v6 = vadd.f32 %v5787_v4, %v6927_v23  ;;  %v1445_v8 = vpop.f32.mrb[107].mxu0 }
 0x2bb   : > { %v1557_v10 = vmax.f32 %v1443_v3, 0.0  ;;  %v1446_v16 = vadd.f32 %v6927_v23, %v1445_v8 }
 0x2bc   : > { %v5312_v60 = vpack.c.bf16 %v1559_v5, %v1559_v5  ;;  %v1560_v19 = vmax.f32 %v1454_v6, 0.0  ;;  %5873 = vmatmul.mubr.msk.bf16.gmra.mrb[44].mxu1 %vm1087_vm3, %v6682_v32 }
 0x2bd   : > { %v5310_v22 = vpack.c.bf16 %v1557_v10, %v1557_v10  ;;  %v1558_v24 = vmax.f32 %v1446_v16, 0.0  ;;  %5876 = vmatprep.mubr.msk.bf16.mxu1 %vm1087_vm3, %v6688_v43 }
 0x2be   : > { %1720 = vst.msk [vmem:[%s6936_s20 + $0x18] sm:$0xf] %vm1713_vm7, %v5312_v60  ;;  %v5313_v26 = vpack.c.bf16 %v1560_v19, %v1560_v19 }
 0x2bf   : > { %1718 = vst.msk [vmem:[%s6936_s20 + $0x10] sm:$0xf] %vm1713_vm7, %v5310_v22  ;;  %v5311_v28 = vpack.c.bf16 %v1558_v24, %v1558_v24 }
 0x2c0   : > { %1721 = vst.msk [vmem:[%s6936_s20 + $0x1c] sm:$0xf] %vm1713_vm7, %v5313_v26 }
 0x2c1   : > { %1719 = vst.msk [vmem:[%s6936_s20 + $0x14] sm:$0xf] %vm1713_vm7, %v5311_v28 }
 0x2c4   : > { %5877 = vmatmul.mubr.msk.bf16.gmra.mrb[48].mxu1 %vm1087_vm3, %v6694_v54 }
 0x2c7   : > { %v5790_v29 = vpop.f32.mrb[108].mxu0 }
 0x2c8   : > { %v1467_v33 = vadd.f32 %v5790_v29, %v6927_v23  ;;  %v1458_v35 = vpop.f32.mrb[109].mxu0 }
 0x2c9   : > { %v1459_v37 = vadd.f32 %v6927_v23, %v1458_v35  ;;  %v5791_v38 = vpop.f32.mrb[110].mxu0 }
 0x2ca   : > { %v1563_v40 = vmax.f32 %v1467_v33, 0.0  ;;  %v1470_v44 = vadd.f32 %v5791_v38, %v6927_v23  ;;  %v1461_v46 = vpop.f32.mrb[111].mxu0 }
 0x2cb   : > { %v1561_v47 = vmax.f32 %v1459_v37, 0.0  ;;  %v1462_v50 = vadd.f32 %v6927_v23, %v1461_v46 }
 0x2cc   : > { %v5316_v53 = vpack.c.bf16 %v1563_v40, %v1563_v40  ;;  %v1564_v55 = vmax.f32 %v1470_v44, 0.0 }
 0x2cd   : > { %v5314_v12 = vpack.c.bf16 %v1561_v47, %v1561_v47  ;;  %v1562_v56 = vmax.f32 %v1462_v50, 0.0 }
 0x2ce   : > { %1724 = vst.msk [vmem:[%s6936_s20 + $0x28] sm:$0xf] %vm1713_vm7, %v5316_v53  ;;  %v5317_v59 = vpack.c.bf16 %v1564_v55, %v1564_v55 }
 0x2cf   : > { %1722 = vst.msk [vmem:[%s6936_s20 + $0x20] sm:$0xf] %vm1713_vm7, %v5314_v12  ;;  %v5315_v0 = vpack.c.bf16 %v1562_v56, %v1562_v56 }
 0x2d0   : > { %1725 = vst.msk [vmem:[%s6936_s20 + $0x2c] sm:$0xf] %vm1713_vm7, %v5317_v59 }
 0x2d1   : > { %1723 = vst.msk [vmem:[%s6936_s20 + $0x24] sm:$0xf] %vm1713_vm7, %v5315_v0 }
 0x2d7   : > { %v5794_v3 = vpop.f32.mrb[0].mxu1 }
 0x2d8   : > { %v1483_v4 = vadd.f32 %v5794_v3, %v6927_v23  ;;  %v1474_v5 = vpop.f32.mrb[1].mxu1 }
 0x2d9   : > { %v1475_v6 = vadd.f32 %v6927_v23, %v1474_v5  ;;  %v5795_v8 = vpop.f32.mrb[2].mxu1  ;;  %v7006_v5 = vld [vmem:[%s7742_s4 + $0x2] sm:$0x3] }
 0x2da   : > { %v1567_v10 = vmax.f32 %v1483_v4, 0.0  ;;  %v1486_v16 = vadd.f32 %v5795_v8, %v6927_v23  ;;  %v1477_v60 = vpop.f32.mrb[3].mxu1  ;;  %6354 = vmatprep.subr.msk.bf16.mxu0 %vm1120_vm0, %v7006_v5 }
 0x2db   : > { %v1565_v19 = vmax.f32 %v1475_v6, 0.0  ;;  %v1478_v22 = vadd.f32 %v6927_v23, %v1477_v60 }
 0x2dc   : > { %v5320_v24 = vpack.c.bf16 %v1567_v10, %v1567_v10  ;;  %v1568_v26 = vmax.f32 %v1486_v16, 0.0 }
 0x2dd   : > { %v5318_v28 = vpack.c.bf16 %v1565_v19, %v1565_v19  ;;  %v1566_v29 = vmax.f32 %v1478_v22, 0.0 }
 0x2de   : > { %1728 = vst.msk [vmem:[%s6936_s20 + $0x38] sm:$0xf] %vm1713_vm7, %v5320_v24  ;;  %v5321_v33 = vpack.c.bf16 %v1568_v26, %v1568_v26 }
 0x2df   : > { %1726 = vst.msk [vmem:[%s6936_s20 + $0x30] sm:$0xf] %vm1713_vm7, %v5318_v28  ;;  %v5319_v35 = vpack.c.bf16 %v1566_v29, %v1566_v29 }
 0x2e0   : > { %1729 = vst.msk [vmem:[%s6936_s20 + $0x3c] sm:$0xf] %vm1713_vm7, %v5321_v33 }
 0x2e1   : > { %1727 = vst.msk [vmem:[%s6936_s20 + $0x34] sm:$0xf] %vm1713_vm7, %v5319_v35 }
 0x2e7   : > { %v5798_v37 = vpop.f32.mrb[4].mxu1 }
 0x2e8   : > { %v1499_v38 = vadd.f32 %v5798_v37, %v6927_v23  ;;  %v1490_v40 = vpop.f32.mrb[5].mxu1 }
 0x2e9   : > { %v1491_v44 = vadd.f32 %v6927_v23, %v1490_v40  ;;  %v5799_v46 = vpop.f32.mrb[6].mxu1 }
 0x2ea   : > { %v1571_v47 = vmax.f32 %v1499_v38, 0.0  ;;  %v1502_v50 = vadd.f32 %v5799_v46, %v6927_v23  ;;  %v1493_v53 = vpop.f32.mrb[7].mxu1 }
 0x2eb   : > { %v1569_v55 = vmax.f32 %v1491_v44, 0.0  ;;  %v1494_v12 = vadd.f32 %v6927_v23, %v1493_v53 }
 0x2ec   : > { %v5324_v56 = vpack.c.bf16 %v1571_v47, %v1571_v47  ;;  %v1572_v59 = vmax.f32 %v1502_v50, 0.0 }
 0x2ed   : > { %v5322_v0 = vpack.c.bf16 %v1569_v55, %v1569_v55  ;;  %v1570_v3 = vmax.f32 %v1494_v12, 0.0 }
 0x2ee   : > { %1732 = vst.msk [vmem:[%s6936_s20 + $0x48] sm:$0xf] %vm1713_vm7, %v5324_v56  ;;  %v5325_v4 = vpack.c.bf16 %v1572_v59, %v1572_v59 }
 0x2ef   : > { %1730 = vst.msk [vmem:[%s6936_s20 + $0x40] sm:$0xf] %vm1713_vm7, %v5322_v0  ;;  %v5323_v6 = vpack.c.bf16 %v1570_v3, %v1570_v3 }
 0x2f0   : > { %1733 = vst.msk [vmem:[%s6936_s20 + $0x4c] sm:$0xf] %vm1713_vm7, %v5325_v4 }
 0x2f1   : > { %1731 = vst.msk [vmem:[%s6936_s20 + $0x44] sm:$0xf] %vm1713_vm7, %v5323_v6 }
 0x2f7   : > { %v5802_v8 = vpop.f32.mrb[8].mxu1 }
 0x2f8   : > { %v1515_v10 = vadd.f32 %v5802_v8, %v6927_v23  ;;  %v1506_v16 = vpop.f32.mrb[9].mxu1 }
 0x2f9   : > { %v1507_v60 = vadd.f32 %v6927_v23, %v1506_v16  ;;  %v5803_v19 = vpop.f32.mrb[10].mxu1 }
 0x2fa   : > { %v1575_v22 = vmax.f32 %v1515_v10, 0.0  ;;  %v1518_v24 = vadd.f32 %v5803_v19, %v6927_v23  ;;  %v1509_v26 = vpop.f32.mrb[11].mxu1 }
 0x2fb   : > { %v1573_v28 = vmax.f32 %v1507_v60, 0.0  ;;  %v1510_v29 = vadd.f32 %v6927_v23, %v1509_v26 }
 0x2fc   : > { %v5328_v33 = vpack.c.bf16 %v1575_v22, %v1575_v22  ;;  %v1576_v35 = vmax.f32 %v1518_v24, 0.0 }
 0x2fd   : > { %v5326_v37 = vpack.c.bf16 %v1573_v28, %v1573_v28  ;;  %v1574_v38 = vmax.f32 %v1510_v29, 0.0 }
 0x2fe   : > { %1736 = vst.msk [vmem:[%s6936_s20 + $0x58] sm:$0xf] %vm1713_vm7, %v5328_v33  ;;  %v5329_v40 = vpack.c.bf16 %v1576_v35, %v1576_v35 }
 0x2ff   : > { %1734 = vst.msk [vmem:[%s6936_s20 + $0x50] sm:$0xf] %vm1713_vm7, %v5326_v37  ;;  %v5327_v44 = vpack.c.bf16 %v1574_v38, %v1574_v38 }
 0x300   : > { %1737 = vst.msk [vmem:[%s6936_s20 + $0x5c] sm:$0xf] %vm1713_vm7, %v5329_v40 }
 0x301   : > { %1735 = vst.msk [vmem:[%s6936_s20 + $0x54] sm:$0xf] %vm1713_vm7, %v5327_v44 }
 0x307   : > { %v5806_v46 = vpop.f32.mrb[12].mxu1 }
 0x308   : > { %v1531_v47 = vadd.f32 %v5806_v46, %v6927_v23  ;;  %v1522_v50 = vpop.f32.mrb[13].mxu1 }
 0x309   : > { %v1523_v53 = vadd.f32 %v6927_v23, %v1522_v50  ;;  %v5807_v55 = vpop.f32.mrb[14].mxu1 }
 0x30a   : > { %v1579_v12 = vmax.f32 %v1531_v47, 0.0  ;;  %v1534_v56 = vadd.f32 %v5807_v55, %v6927_v23  ;;  %v1525_v59 = vpop.f32.mrb[15].mxu1 }
 0x30b   : > { %v1577_v0 = vmax.f32 %v1523_v53, 0.0  ;;  %v1526_v3 = vadd.f32 %v6927_v23, %v1525_v59 }
 0x30c   : > { %v5332_v4 = vpack.c.bf16 %v1579_v12, %v1579_v12  ;;  %v1580_v6 = vmax.f32 %v1534_v56, 0.0 }
 0x30d   : > { %v5330_v8 = vpack.c.bf16 %v1577_v0, %v1577_v0  ;;  %v1578_v10 = vmax.f32 %v1526_v3, 0.0 }
 0x30e   : > { %1740 = vst.msk [vmem:[%s6936_s20 + $0x68] sm:$0xf] %vm1713_vm7, %v5332_v4  ;;  %v5333_v16 = vpack.c.bf16 %v1580_v6, %v1580_v6 }
 0x30f   : > { %1738 = vst.msk [vmem:[%s6936_s20 + $0x60] sm:$0xf] %vm1713_vm7, %v5330_v8  ;;  %v5331_v60 = vpack.c.bf16 %v1578_v10, %v1578_v10 }
 0x310   : > { %1741 = vst.msk [vmem:[%s6936_s20 + $0x6c] sm:$0xf] %vm1713_vm7, %v5333_v16 }
 0x311   : > { %1739 = vst.msk [vmem:[%s6936_s20 + $0x64] sm:$0xf] %vm1713_vm7, %v5331_v60 }
 0x317   : > { %v5810_v19 = vpop.f32.mrb[16].mxu1 }
 0x318   : > { %v1547_v22 = vadd.f32 %v5810_v19, %v6927_v23  ;;  %v1538_v24 = vpop.f32.mrb[17].mxu1 }
 0x319   : > { %v1539_v26 = vadd.f32 %v6927_v23, %v1538_v24  ;;  %v5811_v28 = vpop.f32.mrb[18].mxu1 }
 0x31a   : > { %v1583_v29 = vmax.f32 %v1547_v22, 0.0  ;;  %v1550_v33 = vadd.f32 %v5811_v28, %v6927_v23  ;;  %v1541_v35 = vpop.f32.mrb[19].mxu1 }
 0x31b   : > { %v1581_v37 = vmax.f32 %v1539_v26, 0.0  ;;  %v1542_v38 = vadd.f32 %v6927_v23, %v1541_v35 }
 0x31c   : > { %v5336_v40 = vpack.c.bf16 %v1583_v29, %v1583_v29  ;;  %v1584_v44 = vmax.f32 %v1550_v33, 0.0  ;;  %v2633_v29 = vsel %vm1120_vm0, %v7006_v5, 0 }
 0x31d   : > { %v5334_v46 = vpack.c.bf16 %v1581_v37, %v1581_v37  ;;  %v1582_v47 = vmax.f32 %v1542_v38, 0.0  ;;  %v7064_v37 = vld [vmem:[%s7742_s4 + $0xe] sm:$0x3] }
 0x31e   : > { %1744 = vst.msk [vmem:[%s6936_s20 + $0x78] sm:$0xf] %vm1713_vm7, %v5336_v40  ;;  %v5337_v50 = vpack.c.bf16 %v1584_v44, %v1584_v44 }
 0x31f   : > { %1742 = vst.msk [vmem:[%s6936_s20 + $0x70] sm:$0xf] %vm1713_vm7, %v5334_v46  ;;  %v5335_v53 = vpack.c.bf16 %v1582_v47, %v1582_v47 }
 0x320   : > { %1745 = vst.msk [vmem:[%s6936_s20 + $0x7c] sm:$0xf] %vm1713_vm7, %v5337_v50 }
 0x321   : > { %1743 = vst.msk [vmem:[%s6936_s20 + $0x74] sm:$0xf] %vm1713_vm7, %v5335_v53 }
 0x35f   : > { %v5850_v55 = vpop.f32.mrb[20].mxu1 }
 0x360   : > { %v2135_v12 = vadd.f32 %v5850_v55, %v6708_v21  ;;  %v1999_v56 = vpop.f32.mrb[21].mxu1 }
 0x361   : > { %v2133_v59 = vadd.f32 %v6708_v21, %v1999_v56  ;;  %v5851_v0 = vpop.f32.mrb[22].mxu1 }
 0x362   : > { %v2136_v3 = vadd.f32 %v5851_v0, %v6708_v21  ;;  %v2002_v4 = vpop.f32.mrb[23].mxu1  ;;  %v2167_v8 = vmax.f32 %v2135_v12, 0.0 }
 0x363   : > { %v2134_v6 = vadd.f32 %v6708_v21, %v2002_v4  ;;  %v2165_v16 = vmax.f32 %v2133_v59, 0.0 }
 0x364   : > { %v2168_v10 = vmax.f32 %v2136_v3, 0.0 }
 0x365   : > { %v2166_v60 = vmax.f32 %v2134_v6, 0.0 }
 0x366   : > { %v2198_v19 = vpack.c.bf16 %v2168_v10, %v2167_v8 }
 0x367   : > { %v2197_v22 = vpack.c.bf16 %v2166_v60, %v2165_v16  ;;  %v5854_v24 = vpop.f32.mrb[24].mxu1 }
 0x368   : > { %v2139_v26 = vadd.f32 %v5854_v24, %v6708_v21  ;;  %v2015_v28 = vpop.f32.mrb[25].mxu1 }
 0x369   : > { %v2137_v33 = vadd.f32 %v6708_v21, %v2015_v28  ;;  %v5855_v35 = vpop.f32.mrb[26].mxu1  ;;  %5882 = vmatprep.mubr.msk.bf16.mxu0 %vm1087_vm3, %v2197_v22 }
 0x36a   : > { %v2140_v38 = vadd.f32 %v5855_v35, %v6708_v21  ;;  %v2018_v40 = vpop.f32.mrb[27].mxu1  ;;  %5883 = vmatmul.mubr.msk.bf16.vlgmr.msra.gmra.mrb[112].mxu0 %vm1087_vm3, %v2198_v19  ;;  %v2171_v46 = vmax.f32 %v2139_v26, 0.0 }
 0x36b   : > { %v2138_v44 = vadd.f32 %v6708_v21, %v2018_v40  ;;  %5915 = vmatpush3.bf16.msra.mxu0 %v2633_v29  ;;  %v2169_v47 = vmax.f32 %v2137_v33, 0.0 }
 0x36c   : > { %v2172_v5 = vmax.f32 %v2140_v38, 0.0  ;;  %6355 = vmatprep.subr.msk.bf16.mxu0 %vm1120_vm0, %v7064_v37 }
 0x36d   : > { %v2170_v50 = vmax.f32 %v2138_v44, 0.0 }
 0x36e   : > { %v2200_v53 = vpack.c.bf16 %v2172_v5, %v2171_v46 }
 0x36f   : > { %v2199_v55 = vpack.c.bf16 %v2170_v50, %v2169_v47  ;;  %v5858_v12 = vpop.f32.mrb[28].mxu1 }
 0x370   : > { %v2143_v56 = vadd.f32 %v5858_v12, %v6708_v21  ;;  %v2031_v59 = vpop.f32.mrb[29].mxu1 }
 0x371   : > { %v2141_v0 = vadd.f32 %v6708_v21, %v2031_v59  ;;  %v5859_v3 = vpop.f32.mrb[30].mxu1  ;;  %5886 = vmatprep.mubr.msk.bf16.mxu0 %vm1087_vm3, %v2199_v55 }
 0x372   : > { %v2144_v4 = vadd.f32 %v5859_v3, %v6708_v21  ;;  %v2034_v6 = vpop.f32.mrb[31].mxu1  ;;  %5887 = vmatmul.mubr.msk.bf16.gmra.mrb[116].mxu0 %vm1087_vm3, %v2200_v53  ;;  %v2175_v10 = vmax.f32 %v2143_v56, 0.0 }
 0x373   : > { %v2142_v8 = vadd.f32 %v6708_v21, %v2034_v6  ;;  %v2173_v60 = vmax.f32 %v2141_v0, 0.0 }
 0x374   : > { %v2176_v16 = vmax.f32 %v2144_v4, 0.0 }
 0x375   : > { %v2174_v19 = vmax.f32 %v2142_v8, 0.0 }
 0x376   : > { %v2202_v22 = vpack.c.bf16 %v2176_v16, %v2175_v10 }
 0x377   : > { %v2201_v24 = vpack.c.bf16 %v2174_v19, %v2173_v60  ;;  %v5862_v26 = vpop.f32.mrb[32].mxu1 }
 0x378   : > { %v2147_v28 = vadd.f32 %v5862_v26, %v6708_v21  ;;  %v2047_v29 = vpop.f32.mrb[33].mxu1 }
 0x379   : > { %v2145_v33 = vadd.f32 %v6708_v21, %v2047_v29  ;;  %v5863_v35 = vpop.f32.mrb[34].mxu1  ;;  %5890 = vmatprep.mubr.msk.bf16.mxu0 %vm1087_vm3, %v2201_v24 }
 0x37a   : > { %v2148_v38 = vadd.f32 %v5863_v35, %v6708_v21  ;;  %v2050_v40 = vpop.f32.mrb[35].mxu1  ;;  %5891 = vmatmul.mubr.msk.bf16.gmra.mrb[120].mxu0 %vm1087_vm3, %v2202_v22  ;;  %v2179_v46 = vmax.f32 %v2147_v28, 0.0 }
 0x37b   : > { %v2146_v44 = vadd.f32 %v6708_v21, %v2050_v40  ;;  %v2177_v47 = vmax.f32 %v2145_v33, 0.0 }
 0x37c   : > { %v2180_v5 = vmax.f32 %v2148_v38, 0.0 }
 0x37d   : > { %v2178_v50 = vmax.f32 %v2146_v44, 0.0 }
 0x37e   : > { %v2204_v53 = vpack.c.bf16 %v2180_v5, %v2179_v46 }
 0x37f   : > { %v2203_v55 = vpack.c.bf16 %v2178_v50, %v2177_v47  ;;  %v5866_v12 = vpop.f32.mrb[36].mxu1 }
 0x380   : > { %v2151_v56 = vadd.f32 %v5866_v12, %v6708_v21  ;;  %v2063_v59 = vpop.f32.mrb[37].mxu1 }
 0x381   : > { %v2149_v0 = vadd.f32 %v6708_v21, %v2063_v59  ;;  %v5867_v3 = vpop.f32.mrb[38].mxu1  ;;  %5894 = vmatprep.mubr.msk.bf16.mxu0 %vm1087_vm3, %v2203_v55 }
 0x382   : > { %v2152_v4 = vadd.f32 %v5867_v3, %v6708_v21  ;;  %v2066_v6 = vpop.f32.mrb[39].mxu1  ;;  %5895 = vmatmul.mubr.msk.bf16.gmra.mrb[124].mxu0 %vm1087_vm3, %v2204_v53  ;;  %v2183_v10 = vmax.f32 %v2151_v56, 0.0  ;;  %v6408_v56 = vld [vmem:[%s7743_s5] ss:$0 sm:$0xff] }
 0x383   : > { %v2150_v8 = vadd.f32 %v6708_v21, %v2066_v6  ;;  %v2181_v60 = vmax.f32 %v2149_v0, 0.0 }
 0x384   : > { %v2184_v16 = vmax.f32 %v2152_v4, 0.0 }
 0x385   : > { %v2182_v19 = vmax.f32 %v2150_v8, 0.0 }
 0x386   : > { %v2206_v22 = vpack.c.bf16 %v2184_v16, %v2183_v10 }
 0x387   : > { %v2205_v24 = vpack.c.bf16 %v2182_v19, %v2181_v60  ;;  %v5870_v26 = vpop.f32.mrb[40].mxu1 }
 0x388   : > { %v2155_v28 = vadd.f32 %v5870_v26, %v6708_v21  ;;  %v2079_v29 = vpop.f32.mrb[41].mxu1 }
 0x389   : > { %v2153_v33 = vadd.f32 %v6708_v21, %v2079_v29  ;;  %v5871_v35 = vpop.f32.mrb[42].mxu1  ;;  %5898 = vmatprep.mubr.msk.bf16.mxu0 %vm1087_vm3, %v2205_v24 }
 0x38a   : > { %v2156_v38 = vadd.f32 %v5871_v35, %v6708_v21  ;;  %v2082_v40 = vpop.f32.mrb[43].mxu1  ;;  %5899 = vmatmul.mubr.msk.bf16.gmra.mrb[128].mxu0 %vm1087_vm3, %v2206_v22  ;;  %v2187_v46 = vmax.f32 %v2155_v28, 0.0 }
 0x38b   : > { %v2154_v44 = vadd.f32 %v6708_v21, %v2082_v40  ;;  %v2185_v47 = vmax.f32 %v2153_v33, 0.0 }
 0x38c   : > { %v2188_v5 = vmax.f32 %v2156_v38, 0.0 }
 0x38d   : > { %v2186_v50 = vmax.f32 %v2154_v44, 0.0 }
 0x38e   : > { %v2208_v53 = vpack.c.bf16 %v2188_v5, %v2187_v46 }
 0x38f   : > { %v2207_v55 = vpack.c.bf16 %v2186_v50, %v2185_v47  ;;  %v5874_v12 = vpop.f32.mrb[44].mxu1 }
 0x390   : > { %v2159_v59 = vadd.f32 %v6408_v56, %v5874_v12  ;;  %v2095_v0 = vpop.f32.mrb[45].mxu1  ;;  %v2797_v12 = vsel %vm1120_vm0, %v7064_v37, 0  ;;  %v6435_v37 = vmov 0.0|0.0  }
 0x391   : > { %v2157_v3 = vadd.f32 %v6408_v56, %v2095_v0  ;;  %v5875_v4 = vpop.f32.mrb[46].mxu1  ;;  %5902 = vmatprep.mubr.msk.bf16.mxu0 %vm1087_vm3, %v2207_v55 }
 0x392   : > { %v2160_v6 = vadd.f32 %v6408_v56, %v5875_v4  ;;  %v2098_v8 = vpop.f32.mrb[47].mxu1  ;;  %5903 = vmatmul.mubr.msk.bf16.gmra.mrb[132].mxu0 %vm1087_vm3, %v2208_v53  ;;  %v2191_v10 = vmax.f32 %v2159_v59, 0.0 }
 0x393   : > { %v2158_v21 = vadd.f32 %v6408_v56, %v2098_v8  ;;  %v2189_v60 = vmax.f32 %v2157_v3, 0.0 }
 0x394   : > { %v2192_v16 = vmax.f32 %v2160_v6, 0.0 }
 0x395   : > { %v2190_v19 = vmax.f32 %v2158_v21, 0.0 }
 0x396   : > { %v2210_v22 = vpack.c.bf16 %v2192_v16, %v2191_v10 }
 0x397   : > { %v2209_v24 = vpack.c.bf16 %v2190_v19, %v2189_v60  ;;  %v5878_v26 = vpop.f32.mrb[48].mxu1 }
 0x398   : > { %v2163_v28 = vadd.f32 %v6408_v56, %v5878_v26  ;;  %v2111_v29 = vpop.f32.mrb[49].mxu1 }
 0x399   : > { %v2161_v33 = vadd.f32 %v6408_v56, %v2111_v29  ;;  %v5879_v35 = vpop.f32.mrb[50].mxu1  ;;  %5906 = vmatprep.mubr.msk.bf16.mxu0 %vm1087_vm3, %v2209_v24 }
 0x39a   : > { %v2164_v38 = vadd.f32 %v6408_v56, %v5879_v35  ;;  %v2114_v40 = vpop.f32.mrb[51].mxu1  ;;  %5907 = vmatmul.mubr.msk.bf16.gmra.mrb[136].mxu0 %vm1087_vm3, %v2210_v22  ;;  %v2195_v46 = vmax.f32 %v2163_v28, 0.0 }
 0x39b   : > { %v2162_v44 = vadd.f32 %v6408_v56, %v2114_v40  ;;  %v2193_v47 = vmax.f32 %v2161_v33, 0.0  ;;  %v3047_v56 = vld [vmem:[%s7744_s6] sm:$0x3] }
 0x39c   : > { %v2196_v5 = vmax.f32 %v2164_v38, 0.0  ;;  %6356 = vmatprep.subr.msk.bf16.mxu1 %vm1120_vm0, %v3047_v56  ;;  %v3104_v59 = vsel %vm1120_vm0, %v3047_v56, 0 }
 0x39d   : > { %v2194_v50 = vmax.f32 %v2162_v44, 0.0  ;;  %5983 = vmatpush3.bf16.msra.mxu1 %v3104_v59 }
 0x39e   : > { %v2212_v53 = vpack.c.bf16 %v2196_v5, %v2195_v46 }
 0x39f   : > { %v2211_v55 = vpack.c.bf16 %v2194_v50, %v2193_v47 }
 0x3a1   : > { %5910 = vmatprep.mubr.msk.bf16.mxu0 %vm1087_vm3, %v2211_v55 }
 0x3a2   : > { %5911 = vmatmul.mubr.msk.bf16.gmra.mrb[140].mxu0 %vm1087_vm3, %v2212_v53 }
 0x3a3   : > { %5916 = vmatprep.mubr.msk.bf16.mxu0 %vm1087_vm3, %v6604_v39 }
 0x3aa   : > { %5917 = vmatmul.mubr.msk.bf16.vlgmr.msra.gmra.mrb[144].mxu0 %vm1087_vm3, %v6610_v48 }
 0x3ab   : > { %5949 = vmatpush3.bf16.msra.mxu0 %v2797_v12  ;;  %5920 = vmatprep.mubr.msk.bf16.mxu0 %vm1087_vm3, %v6616_v57 }
 0x3b2   : > { %5921 = vmatmul.mubr.msk.bf16.gmra.mrb[148].mxu0 %vm1087_vm3, %v6622_v2 }
 0x3b3   : > { %5924 = vmatprep.mubr.msk.bf16.mxu0 %vm1087_vm3, %v6628_v11 }
 0x3ba   : > { %5925 = vmatmul.mubr.msk.bf16.gmra.mrb[152].mxu0 %vm1087_vm3, %v6634_v20 }
 0x3bb   : > { %5928 = vmatprep.mubr.msk.bf16.mxu0 %vm1087_vm3, %v6640_v31 }
 0x3c2   : > { %5929 = vmatmul.mubr.msk.bf16.gmra.mrb[156].mxu0 %vm1087_vm3, %v6646_v41 }
 0x3c3   : > { %5932 = vmatprep.mubr.msk.bf16.mxu0 %vm1087_vm3, %v6652_v51 }
 0x3ca   : > { %5933 = vmatmul.mubr.msk.bf16.gmra.mrb[160].mxu0 %vm1087_vm3, %v6658_v61 }
 0x3cb   : > { %5936 = vmatprep.mubr.msk.bf16.mxu0 %vm1087_vm3, %v6664_v7 }
 0x3d2   : > { %5937 = vmatmul.mubr.msk.bf16.gmra.mrb[164].mxu0 %vm1087_vm3, %v6670_v17 }
 0x3d3   : > { %5940 = vmatprep.mubr.msk.bf16.mxu0 %vm1087_vm3, %v6682_v32 }
 0x3da   : > { %5941 = vmatmul.mubr.msk.bf16.gmra.mrb[168].mxu0 %vm1087_vm3, %v6688_v43 }
 0x3db   : > { %5944 = vmatprep.mubr.msk.bf16.mxu0 %vm1087_vm3, %v6694_v54 }
 0x3e2   : > { %5945 = vmatmul.mubr.bf16.gmra.mrb[172].mxu0 %v6435_v37 }
 0x3e3   : > { %5950 = vmatprep.mubr.msk.bf16.mxu0 %vm1087_vm3, %v6598_v30 }
 0x3ea   : > { %5951 = vmatmul.mubr.msk.bf16.vlgmr.msra.gmra.mrb[144].mxu0 %vm1087_vm3, %v6604_v39 }
 0x3eb   : > { %5954 = vmatprep.mubr.msk.bf16.mxu0 %vm1087_vm3, %v6610_v48 }
 0x3f2   : > { %5955 = vmatmul.mubr.msk.bf16.gmra.mrb[148].mxu0 %vm1087_vm3, %v6616_v57 }
 0x3f3   : > { %5958 = vmatprep.mubr.msk.bf16.mxu0 %vm1087_vm3, %v6622_v2 }
 0x3fa   : > { %5959 = vmatmul.mubr.msk.bf16.gmra.mrb[152].mxu0 %vm1087_vm3, %v6628_v11 }
 0x3fb   : > { %5962 = vmatprep.mubr.msk.bf16.mxu0 %vm1087_vm3, %v6634_v20 }
 0x402   : > { %5963 = vmatmul.mubr.msk.bf16.gmra.mrb[156].mxu0 %vm1087_vm3, %v6640_v31 }
 0x403   : > { %5966 = vmatprep.mubr.msk.bf16.mxu0 %vm1087_vm3, %v6646_v41 }
 0x40a   : > { %5967 = vmatmul.mubr.msk.bf16.gmra.mrb[160].mxu0 %vm1087_vm3, %v6652_v51 }
 0x40b   : > { %5970 = vmatprep.mubr.msk.bf16.mxu0 %vm1087_vm3, %v6658_v61 }
 0x412   : > { %5971 = vmatmul.mubr.msk.bf16.gmra.mrb[164].mxu0 %vm1087_vm3, %v6664_v7 }
 0x413   : > { %5974 = vmatprep.mubr.msk.bf16.mxu0 %vm1087_vm3, %v6670_v17 }
 0x41a   : > { %5975 = vmatmul.mubr.msk.bf16.gmra.mrb[168].mxu0 %vm1087_vm3, %v6682_v32 }
 0x41b   : > { %5978 = vmatprep.mubr.msk.bf16.mxu0 %vm1087_vm3, %v6688_v43 }
 0x422   : > { %5979 = vmatmul.mubr.msk.bf16.gmra.mrb[172].mxu0 %vm1087_vm3, %v6694_v54 }
 0x43d   : > { %v5884_v0 = vpop.f32.mrb[112].mxu0 }
 0x43e   : > { %v2315_v3 = vadd.f32 %v5884_v0, %v6927_v23  ;;  %v2306_v4 = vpop.f32.mrb[113].mxu0 }
 0x43f   : > { %v2307_v6 = vadd.f32 %v6927_v23, %v2306_v4  ;;  %v5885_v8 = vpop.f32.mrb[114].mxu0  ;;  %v7195_v4 = vld [vmem:[%s7742_s4 + $0xc] sm:$0x3] }
 0x440   : > { %v2435_v21 = vmax.f32 %v2315_v3, 0.0  ;;  %v2318_v10 = vadd.f32 %v5885_v8, %v6927_v23  ;;  %v2309_v16 = vpop.f32.mrb[115].mxu0  ;;  %6357 = vmatprep.subr.msk.bf16.mxu1 %vm1120_vm0, %v7195_v4 }
 0x441   : > { %v2433_v60 = vmax.f32 %v2307_v6, 0.0  ;;  %v2310_v19 = vadd.f32 %v6927_v23, %v2309_v16 }
 0x442   : > { %v5340_v22 = vpack.c.bf16 %v2435_v21, %v2435_v21  ;;  %v2436_v24 = vmax.f32 %v2318_v10, 0.0 }
 0x443   : > { %v5338_v26 = vpack.c.bf16 %v2433_v60, %v2433_v60  ;;  %v2434_v28 = vmax.f32 %v2310_v19, 0.0 }
 0x444   : > { %5007 = vst.msk [vmem:[%s6936_s20 + $0x88] sm:$0xf] %vm1713_vm7, %v5340_v22  ;;  %v5341_v29 = vpack.c.bf16 %v2436_v24, %v2436_v24 }
 0x445   : > { %5005 = vst.msk [vmem:[%s6936_s20 + $0x80] sm:$0xf] %vm1713_vm7, %v5338_v26  ;;  %v5339_v33 = vpack.c.bf16 %v2434_v28, %v2434_v28  ;;  %v5888_v35 = vpop.f32.mrb[116].mxu0 }
 0x446   : > { %5008 = vst.msk [vmem:[%s6936_s20 + $0x8c] sm:$0xf] %vm1713_vm7, %v5341_v29  ;;  %v2331_v38 = vadd.f32 %v5888_v35, %v6927_v23  ;;  %v2322_v40 = vpop.f32.mrb[117].mxu0 }
 0x447   : > { %5006 = vst.msk [vmem:[%s6936_s20 + $0x84] sm:$0xf] %vm1713_vm7, %v5339_v33  ;;  %v2323_v44 = vadd.f32 %v6927_v23, %v2322_v40  ;;  %v5889_v46 = vpop.f32.mrb[118].mxu0 }
 0x448   : > { %v2439_v5 = vmax.f32 %v2331_v38, 0.0  ;;  %v2334_v47 = vadd.f32 %v5889_v46, %v6927_v23  ;;  %v2325_v50 = vpop.f32.mrb[119].mxu0 }
 0x449   : > { %v2437_v53 = vmax.f32 %v2323_v44, 0.0  ;;  %v2326_v55 = vadd.f32 %v6927_v23, %v2325_v50 }
 0x44a   : > { %v5344_v12 = vpack.c.bf16 %v2439_v5, %v2439_v5  ;;  %v2440_v56 = vmax.f32 %v2334_v47, 0.0 }
 0x44b   : > { %v5342_v59 = vpack.c.bf16 %v2437_v53, %v2437_v53  ;;  %v2438_v0 = vmax.f32 %v2326_v55, 0.0 }
 0x44c   : > { %5011 = vst.msk [vmem:[%s6936_s20 + $0x98] sm:$0xf] %vm1713_vm7, %v5344_v12  ;;  %v5345_v3 = vpack.c.bf16 %v2440_v56, %v2440_v56 }
 0x44d   : > { %5009 = vst.msk [vmem:[%s6936_s20 + $0x90] sm:$0xf] %vm1713_vm7, %v5342_v59  ;;  %v5343_v6 = vpack.c.bf16 %v2438_v0, %v2438_v0  ;;  %v5892_v8 = vpop.f32.mrb[120].mxu0 }
 0x44e   : > { %5012 = vst.msk [vmem:[%s6936_s20 + $0x9c] sm:$0xf] %vm1713_vm7, %v5345_v3  ;;  %v2347_v21 = vadd.f32 %v5892_v8, %v6927_v23  ;;  %v2338_v10 = vpop.f32.mrb[121].mxu0 }
 0x44f   : > { %5010 = vst.msk [vmem:[%s6936_s20 + $0x94] sm:$0xf] %vm1713_vm7, %v5343_v6  ;;  %v2339_v16 = vadd.f32 %v6927_v23, %v2338_v10  ;;  %v5893_v60 = vpop.f32.mrb[122].mxu0 }
 0x450   : > { %v2443_v19 = vmax.f32 %v2347_v21, 0.0  ;;  %v2350_v22 = vadd.f32 %v5893_v60, %v6927_v23  ;;  %v2341_v24 = vpop.f32.mrb[123].mxu0 }
 0x451   : > { %v2441_v26 = vmax.f32 %v2339_v16, 0.0  ;;  %v2342_v28 = vadd.f32 %v6927_v23, %v2341_v24 }
 0x452   : > { %v5348_v29 = vpack.c.bf16 %v2443_v19, %v2443_v19  ;;  %v2444_v33 = vmax.f32 %v2350_v22, 0.0 }
 0x453   : > { %v5346_v35 = vpack.c.bf16 %v2441_v26, %v2441_v26  ;;  %v2442_v38 = vmax.f32 %v2342_v28, 0.0 }
 0x454   : > { %5015 = vst.msk [vmem:[%s6936_s20 + $0xa8] sm:$0xf] %vm1713_vm7, %v5348_v29  ;;  %v5349_v40 = vpack.c.bf16 %v2444_v33, %v2444_v33 }
 0x455   : > { %5013 = vst.msk [vmem:[%s6936_s20 + $0xa0] sm:$0xf] %vm1713_vm7, %v5346_v35  ;;  %v5347_v44 = vpack.c.bf16 %v2442_v38, %v2442_v38  ;;  %v5896_v46 = vpop.f32.mrb[124].mxu0 }
 0x456   : > { %5016 = vst.msk [vmem:[%s6936_s20 + $0xac] sm:$0xf] %vm1713_vm7, %v5349_v40  ;;  %v2363_v5 = vadd.f32 %v5896_v46, %v6927_v23  ;;  %v2354_v47 = vpop.f32.mrb[125].mxu0 }
 0x457   : > { %5014 = vst.msk [vmem:[%s6936_s20 + $0xa4] sm:$0xf] %vm1713_vm7, %v5347_v44  ;;  %v2355_v50 = vadd.f32 %v6927_v23, %v2354_v47  ;;  %v5897_v53 = vpop.f32.mrb[126].mxu0 }
 0x458   : > { %v2447_v55 = vmax.f32 %v2363_v5, 0.0  ;;  %v2366_v12 = vadd.f32 %v5897_v53, %v6927_v23  ;;  %v2357_v56 = vpop.f32.mrb[127].mxu0 }
 0x459   : > { %v2445_v59 = vmax.f32 %v2355_v50, 0.0  ;;  %v2358_v0 = vadd.f32 %v6927_v23, %v2357_v56 }
 0x45a   : > { %v5352_v3 = vpack.c.bf16 %v2447_v55, %v2447_v55  ;;  %v2448_v6 = vmax.f32 %v2366_v12, 0.0 }
 0x45b   : > { %v5350_v8 = vpack.c.bf16 %v2445_v59, %v2445_v59  ;;  %v2446_v21 = vmax.f32 %v2358_v0, 0.0 }
 0x45c   : > { %5019 = vst.msk [vmem:[%s6936_s20 + $0xb8] sm:$0xf] %vm1713_vm7, %v5352_v3  ;;  %v5353_v10 = vpack.c.bf16 %v2448_v6, %v2448_v6 }
 0x45d   : > { %5017 = vst.msk [vmem:[%s6936_s20 + $0xb0] sm:$0xf] %vm1713_vm7, %v5350_v8  ;;  %v5351_v16 = vpack.c.bf16 %v2446_v21, %v2446_v21  ;;  %v5900_v60 = vpop.f32.mrb[128].mxu0 }
 0x45e   : > { %5020 = vst.msk [vmem:[%s6936_s20 + $0xbc] sm:$0xf] %vm1713_vm7, %v5353_v10  ;;  %v2379_v19 = vadd.f32 %v5900_v60, %v6927_v23  ;;  %v2370_v22 = vpop.f32.mrb[129].mxu0 }
 0x45f   : > { %5018 = vst.msk [vmem:[%s6936_s20 + $0xb4] sm:$0xf] %vm1713_vm7, %v5351_v16  ;;  %v2371_v24 = vadd.f32 %v6927_v23, %v2370_v22  ;;  %v5901_v26 = vpop.f32.mrb[130].mxu0 }
 0x460   : > { %v2451_v28 = vmax.f32 %v2379_v19, 0.0  ;;  %v2382_v29 = vadd.f32 %v5901_v26, %v6927_v23  ;;  %v2373_v33 = vpop.f32.mrb[131].mxu0 }
 0x461   : > { %v2449_v35 = vmax.f32 %v2371_v24, 0.0  ;;  %v2374_v38 = vadd.f32 %v6927_v23, %v2373_v33 }
 0x462   : > { %v5356_v40 = vpack.c.bf16 %v2451_v28, %v2451_v28  ;;  %v2452_v44 = vmax.f32 %v2382_v29, 0.0 }
 0x463   : > { %v5354_v46 = vpack.c.bf16 %v2449_v35, %v2449_v35  ;;  %v2450_v5 = vmax.f32 %v2374_v38, 0.0 }
 0x464   : > { %5023 = vst.msk [vmem:[%s6936_s20 + $0xc8] sm:$0xf] %vm1713_vm7, %v5356_v40  ;;  %v5357_v47 = vpack.c.bf16 %v2452_v44, %v2452_v44 }
 0x465   : > { %5021 = vst.msk [vmem:[%s6936_s20 + $0xc0] sm:$0xf] %vm1713_vm7, %v5354_v46  ;;  %v5355_v50 = vpack.c.bf16 %v2450_v5, %v2450_v5  ;;  %v5904_v53 = vpop.f32.mrb[132].mxu0 }
 0x466   : > { %5024 = vst.msk [vmem:[%s6936_s20 + $0xcc] sm:$0xf] %vm1713_vm7, %v5357_v47  ;;  %v2395_v55 = vadd.f32 %v5904_v53, %v6927_v23  ;;  %v2386_v12 = vpop.f32.mrb[133].mxu0 }
 0x467   : > { %5022 = vst.msk [vmem:[%s6936_s20 + $0xc4] sm:$0xf] %vm1713_vm7, %v5355_v50  ;;  %v2387_v56 = vadd.f32 %v6927_v23, %v2386_v12  ;;  %v5905_v59 = vpop.f32.mrb[134].mxu0 }
 0x468   : > { %v2455_v0 = vmax.f32 %v2395_v55, 0.0  ;;  %v2398_v3 = vadd.f32 %v5905_v59, %v6927_v23  ;;  %v2389_v6 = vpop.f32.mrb[135].mxu0 }
 0x469   : > { %v2453_v8 = vmax.f32 %v2387_v56, 0.0  ;;  %v2390_v21 = vadd.f32 %v6927_v23, %v2389_v6 }
 0x46a   : > { %v5360_v10 = vpack.c.bf16 %v2455_v0, %v2455_v0  ;;  %v2456_v16 = vmax.f32 %v2398_v3, 0.0 }
 0x46b   : > { %v5358_v60 = vpack.c.bf16 %v2453_v8, %v2453_v8  ;;  %v2454_v19 = vmax.f32 %v2390_v21, 0.0 }
 0x46c   : > { %5027 = vst.msk [vmem:[%s6936_s20 + $0xd8] sm:$0xf] %vm1713_vm7, %v5360_v10  ;;  %v5361_v22 = vpack.c.bf16 %v2456_v16, %v2456_v16 }
 0x46d   : > { %5025 = vst.msk [vmem:[%s6936_s20 + $0xd0] sm:$0xf] %vm1713_vm7, %v5358_v60  ;;  %v5359_v24 = vpack.c.bf16 %v2454_v19, %v2454_v19  ;;  %v5908_v26 = vpop.f32.mrb[136].mxu0 }
 0x46e   : > { %5028 = vst.msk [vmem:[%s6936_s20 + $0xdc] sm:$0xf] %vm1713_vm7, %v5361_v22  ;;  %v2411_v28 = vadd.f32 %v5908_v26, %v6927_v23  ;;  %v2402_v29 = vpop.f32.mrb[137].mxu0 }
 0x46f   : > { %5026 = vst.msk [vmem:[%s6936_s20 + $0xd4] sm:$0xf] %vm1713_vm7, %v5359_v24  ;;  %v2403_v33 = vadd.f32 %v6927_v23, %v2402_v29  ;;  %v5909_v35 = vpop.f32.mrb[138].mxu0 }
 0x470   : > { %v2459_v38 = vmax.f32 %v2411_v28, 0.0  ;;  %v2414_v40 = vadd.f32 %v5909_v35, %v6927_v23  ;;  %v2405_v44 = vpop.f32.mrb[139].mxu0  ;;  %v7280_v35 = vld [vmem:[%s7743_s5] ss:$0 sm:$0xff] }
 0x471   : > { %v2457_v46 = vmax.f32 %v2403_v33, 0.0  ;;  %v2406_v5 = vadd.f32 %v6927_v23, %v2405_v44 }
 0x472   : > { %v5364_v47 = vpack.c.bf16 %v2459_v38, %v2459_v38  ;;  %v2460_v50 = vmax.f32 %v2414_v40, 0.0 }
 0x473   : > { %v5362_v53 = vpack.c.bf16 %v2457_v46, %v2457_v46  ;;  %v2458_v55 = vmax.f32 %v2406_v5, 0.0 }
 0x474   : > { %5031 = vst.msk [vmem:[%s6936_s20 + $0xe8] sm:$0xf] %vm1713_vm7, %v5364_v47  ;;  %v5365_v12 = vpack.c.bf16 %v2460_v50, %v2460_v50 }
 0x475   : > { %5029 = vst.msk [vmem:[%s6936_s20 + $0xe0] sm:$0xf] %vm1713_vm7, %v5362_v53  ;;  %v5363_v56 = vpack.c.bf16 %v2458_v55, %v2458_v55  ;;  %v5912_v59 = vpop.f32.mrb[140].mxu0 }
 0x476   : > { %5032 = vst.msk [vmem:[%s6936_s20 + $0xec] sm:$0xf] %vm1713_vm7, %v5365_v12  ;;  %v2427_v0 = vadd.f32 %v5912_v59, %v6927_v23  ;;  %v2418_v3 = vpop.f32.mrb[141].mxu0 }
 0x477   : > { %5030 = vst.msk [vmem:[%s6936_s20 + $0xe4] sm:$0xf] %vm1713_vm7, %v5363_v56  ;;  %v2419_v6 = vadd.f32 %v6927_v23, %v2418_v3  ;;  %v5913_v8 = vpop.f32.mrb[142].mxu0 }
 0x478   : > { %v2463_v21 = vmax.f32 %v2427_v0, 0.0  ;;  %v2430_v10 = vadd.f32 %v5913_v8, %v6927_v23  ;;  %v2421_v16 = vpop.f32.mrb[143].mxu0 }
 0x479   : > { %v2461_v60 = vmax.f32 %v2419_v6, 0.0  ;;  %v2422_v19 = vadd.f32 %v6927_v23, %v2421_v16 }
 0x47a   : > { %v5368_v22 = vpack.c.bf16 %v2463_v21, %v2463_v21  ;;  %v2464_v24 = vmax.f32 %v2430_v10, 0.0  ;;  %v3465_v21 = vsel %vm1120_vm0, %v7195_v4, 0 }
 0x47b   : > { %v5366_v26 = vpack.c.bf16 %v2461_v60, %v2461_v60  ;;  %v2462_v28 = vmax.f32 %v2422_v19, 0.0  ;;  %v7294_v60 = vld [vmem:[%s7742_s4 + $0x10] sm:$0x3] }
 0x47c   : > { %5035 = vst.msk [vmem:[%s6936_s20 + $0xf8] sm:$0xf] %vm1713_vm7, %v5368_v22  ;;  %v5369_v29 = vpack.c.bf16 %v2464_v24, %v2464_v24 }
 0x47d   : > { %5033 = vst.msk [vmem:[%s6936_s20 + $0xf0] sm:$0xf] %vm1713_vm7, %v5366_v26  ;;  %v5367_v33 = vpack.c.bf16 %v2462_v28, %v2462_v28 }
 0x47e   : > { %5036 = vst.msk [vmem:[%s6936_s20 + $0xfc] sm:$0xf] %vm1713_vm7, %v5369_v29 }
 0x47f   : > { %5034 = vst.msk [vmem:[%s6936_s20 + $0xf4] sm:$0xf] %vm1713_vm7, %v5367_v33 }
 0x4bd   : > { %v5952_v23 = vpop.f32.mrb[144].mxu0 }
 0x4be   : > { %v2969_v38 = vadd.f32 %v5952_v23, %v7280_v35  ;;  %v2833_v40 = vpop.f32.mrb[145].mxu0 }
 0x4bf   : > { %v2967_v44 = vadd.f32 %v7280_v35, %v2833_v40  ;;  %v5953_v46 = vpop.f32.mrb[146].mxu0 }
 0x4c0   : > { %v2970_v5 = vadd.f32 %v5953_v46, %v7280_v35  ;;  %v2836_v47 = vpop.f32.mrb[147].mxu0  ;;  %v3001_v53 = vmax.f32 %v2969_v38, 0.0 }
 0x4c1   : > { %v2968_v50 = vadd.f32 %v7280_v35, %v2836_v47  ;;  %v2999_v12 = vmax.f32 %v2967_v44, 0.0 }
 0x4c2   : > { %v3002_v55 = vmax.f32 %v2970_v5, 0.0 }
 0x4c3   : > { %v3000_v56 = vmax.f32 %v2968_v50, 0.0 }
 0x4c4   : > { %v3032_v59 = vpack.c.bf16 %v3002_v55, %v3001_v53 }
 0x4c5   : > { %v3031_v0 = vpack.c.bf16 %v3000_v56, %v2999_v12  ;;  %v5956_v3 = vpop.f32.mrb[148].mxu0 }
 0x4c6   : > { %v2973_v6 = vadd.f32 %v5956_v3, %v7280_v35  ;;  %v2849_v8 = vpop.f32.mrb[149].mxu0 }
 0x4c7   : > { %v2971_v10 = vadd.f32 %v7280_v35, %v2849_v8  ;;  %v5957_v16 = vpop.f32.mrb[150].mxu0  ;;  %5984 = vmatprep.mubr.msk.bf16.mxu1 %vm1087_vm3, %v3031_v0 }
 0x4c8   : > { %v2974_v19 = vadd.f32 %v5957_v16, %v7280_v35  ;;  %v2852_v22 = vpop.f32.mrb[151].mxu0  ;;  %5985 = vmatmul.mubr.msk.bf16.vlgmr.msra.gmra.mrb[52].mxu1 %vm1087_vm3, %v3032_v59  ;;  %v3005_v26 = vmax.f32 %v2973_v6, 0.0 }
 0x4c9   : > { %v2972_v24 = vadd.f32 %v7280_v35, %v2852_v22  ;;  %6017 = vmatpush3.bf16.msra.mxu1 %v3465_v21  ;;  %v3003_v28 = vmax.f32 %v2971_v10, 0.0 }
 0x4ca   : > { %v3006_v4 = vmax.f32 %v2974_v19, 0.0  ;;  %6358 = vmatprep.subr.msk.bf16.mxu1 %vm1120_vm0, %v7294_v60 }
 0x4cb   : > { %v3004_v29 = vmax.f32 %v2972_v24, 0.0 }
 0x4cc   : > { %v3034_v33 = vpack.c.bf16 %v3006_v4, %v3005_v26 }
 0x4cd   : > { %v3033_v23 = vpack.c.bf16 %v3004_v29, %v3003_v28  ;;  %v5960_v38 = vpop.f32.mrb[152].mxu0 }
 0x4ce   : > { %v2977_v40 = vadd.f32 %v5960_v38, %v7280_v35  ;;  %v2865_v44 = vpop.f32.mrb[153].mxu0 }
 0x4cf   : > { %v2975_v46 = vadd.f32 %v7280_v35, %v2865_v44  ;;  %v5961_v5 = vpop.f32.mrb[154].mxu0  ;;  %5988 = vmatprep.mubr.msk.bf16.mxu1 %vm1087_vm3, %v3033_v23 }
 0x4d0   : > { %v2978_v47 = vadd.f32 %v5961_v5, %v7280_v35  ;;  %v2868_v50 = vpop.f32.mrb[155].mxu0  ;;  %5989 = vmatmul.mubr.msk.bf16.gmra.mrb[56].mxu1 %vm1087_vm3, %v3034_v33  ;;  %v3009_v55 = vmax.f32 %v2977_v40, 0.0 }
 0x4d1   : > { %v2976_v53 = vadd.f32 %v7280_v35, %v2868_v50  ;;  %v3007_v56 = vmax.f32 %v2975_v46, 0.0 }
 0x4d2   : > { %v3010_v12 = vmax.f32 %v2978_v47, 0.0 }
 0x4d3   : > { %v3008_v59 = vmax.f32 %v2976_v53, 0.0 }
 0x4d4   : > { %v3036_v0 = vpack.c.bf16 %v3010_v12, %v3009_v55 }
 0x4d5   : > { %v3035_v3 = vpack.c.bf16 %v3008_v59, %v3007_v56  ;;  %v5964_v6 = vpop.f32.mrb[156].mxu0 }
 0x4d6   : > { %v2981_v8 = vadd.f32 %v5964_v6, %v7280_v35  ;;  %v2881_v21 = vpop.f32.mrb[157].mxu0 }
 0x4d7   : > { %v2979_v10 = vadd.f32 %v7280_v35, %v2881_v21  ;;  %v5965_v16 = vpop.f32.mrb[158].mxu0  ;;  %5992 = vmatprep.mubr.msk.bf16.mxu1 %vm1087_vm3, %v3035_v3 }
 0x4d8   : > { %v2982_v19 = vadd.f32 %v5965_v16, %v7280_v35  ;;  %v2884_v22 = vpop.f32.mrb[159].mxu0  ;;  %5993 = vmatmul.mubr.msk.bf16.gmra.mrb[60].mxu1 %vm1087_vm3, %v3036_v0  ;;  %v3013_v26 = vmax.f32 %v2981_v8, 0.0 }
 0x4d9   : > { %v2980_v24 = vadd.f32 %v7280_v35, %v2884_v22  ;;  %v3011_v28 = vmax.f32 %v2979_v10, 0.0 }
 0x4da   : > { %v3014_v4 = vmax.f32 %v2982_v19, 0.0 }
 0x4db   : > { %v3012_v29 = vmax.f32 %v2980_v24, 0.0 }
 0x4dc   : > { %v3038_v33 = vpack.c.bf16 %v3014_v4, %v3013_v26 }
 0x4dd   : > { %v3037_v23 = vpack.c.bf16 %v3012_v29, %v3011_v28  ;;  %v5968_v38 = vpop.f32.mrb[160].mxu0 }
 0x4de   : > { %v2985_v40 = vadd.f32 %v5968_v38, %v7280_v35  ;;  %v2897_v44 = vpop.f32.mrb[161].mxu0 }
 0x4df   : > { %v2983_v46 = vadd.f32 %v7280_v35, %v2897_v44  ;;  %v5969_v5 = vpop.f32.mrb[162].mxu0  ;;  %5996 = vmatprep.mubr.msk.bf16.mxu1 %vm1087_vm3, %v3037_v23 }
 0x4e0   : > { %v2986_v47 = vadd.f32 %v5969_v5, %v7280_v35  ;;  %v2900_v50 = vpop.f32.mrb[163].mxu0  ;;  %5997 = vmatmul.mubr.msk.bf16.gmra.mrb[64].mxu1 %vm1087_vm3, %v3038_v33  ;;  %v3017_v55 = vmax.f32 %v2985_v40, 0.0 }
 0x4e1   : > { %v2984_v53 = vadd.f32 %v7280_v35, %v2900_v50  ;;  %v3015_v56 = vmax.f32 %v2983_v46, 0.0 }
 0x4e2   : > { %v3018_v12 = vmax.f32 %v2986_v47, 0.0 }
 0x4e3   : > { %v3016_v59 = vmax.f32 %v2984_v53, 0.0 }
 0x4e4   : > { %v3040_v0 = vpack.c.bf16 %v3018_v12, %v3017_v55 }
 0x4e5   : > { %v3039_v3 = vpack.c.bf16 %v3016_v59, %v3015_v56  ;;  %v5972_v6 = vpop.f32.mrb[164].mxu0 }
 0x4e6   : > { %v2989_v8 = vadd.f32 %v5972_v6, %v7280_v35  ;;  %v2913_v21 = vpop.f32.mrb[165].mxu0 }
 0x4e7   : > { %v2987_v10 = vadd.f32 %v7280_v35, %v2913_v21  ;;  %v5973_v16 = vpop.f32.mrb[166].mxu0  ;;  %6000 = vmatprep.mubr.msk.bf16.mxu1 %vm1087_vm3, %v3039_v3 }
 0x4e8   : > { %v2990_v19 = vadd.f32 %v5973_v16, %v7280_v35  ;;  %v2916_v22 = vpop.f32.mrb[167].mxu0  ;;  %6001 = vmatmul.mubr.msk.bf16.gmra.mrb[68].mxu1 %vm1087_vm3, %v3040_v0  ;;  %v3021_v26 = vmax.f32 %v2989_v8, 0.0 }
 0x4e9   : > { %v2988_v24 = vadd.f32 %v7280_v35, %v2916_v22  ;;  %v3019_v28 = vmax.f32 %v2987_v10, 0.0 }
 0x4ea   : > { %v3022_v4 = vmax.f32 %v2990_v19, 0.0 }
 0x4eb   : > { %v3020_v29 = vmax.f32 %v2988_v24, 0.0 }
 0x4ec   : > { %v3042_v33 = vpack.c.bf16 %v3022_v4, %v3021_v26 }
 0x4ed   : > { %v3041_v23 = vpack.c.bf16 %v3020_v29, %v3019_v28  ;;  %v5976_v38 = vpop.f32.mrb[168].mxu0 }
 0x4ee   : > { %v2993_v40 = vadd.f32 %v5976_v38, %v7280_v35  ;;  %v2929_v44 = vpop.f32.mrb[169].mxu0  ;;  %v3629_v38 = vsel %vm1120_vm0, %v7294_v60, 0  ;;  %v3990_v60 = vld [vmem:[%s7742_s4] sm:$0x3] }
 0x4ef   : > { %v2991_v46 = vadd.f32 %v7280_v35, %v2929_v44  ;;  %v5977_v5 = vpop.f32.mrb[170].mxu0  ;;  %6004 = vmatprep.mubr.msk.bf16.mxu1 %vm1087_vm3, %v3041_v23 }
 0x4f0   : > { %v2994_v47 = vadd.f32 %v5977_v5, %v7280_v35  ;;  %v2932_v50 = vpop.f32.mrb[171].mxu0  ;;  %6005 = vmatmul.mubr.msk.bf16.gmra.mrb[72].mxu1 %vm1087_vm3, %v3042_v33  ;;  %v3025_v55 = vmax.f32 %v2993_v40, 0.0  ;;  %v5186_v40 = vld [vmem:[%s7742_s4 + $0x4] sm:$0x3] }
 0x4f1   : > { %v2992_v53 = vadd.f32 %v7280_v35, %v2932_v50  ;;  %v3023_v56 = vmax.f32 %v2991_v46, 0.0  ;;  %v3995_v46 = vsel %vm1120_vm0, %v3990_v60, 0 }
 0x4f2   : > { %v3026_v12 = vmax.f32 %v2994_v47, 0.0 }
 0x4f3   : > { %v3024_v59 = vmax.f32 %v2992_v53, 0.0 }
 0x4f4   : > { %v3044_v0 = vpack.c.bf16 %v3026_v12, %v3025_v55 }
 0x4f5   : > { %v3043_v3 = vpack.c.bf16 %v3024_v59, %v3023_v56  ;;  %v5980_v6 = vpop.f32.mrb[172].mxu0 }
 0x4f6   : > { %v2997_v8 = vadd.f32 %v5980_v6, %v7280_v35  ;;  %v2945_v21 = vpop.f32.mrb[173].mxu0 }
 0x4f7   : > { %v2995_v10 = vadd.f32 %v7280_v35, %v2945_v21  ;;  %v5981_v16 = vpop.f32.mrb[174].mxu0  ;;  %6008 = vmatprep.mubr.msk.bf16.mxu1 %vm1087_vm3, %v3043_v3 }
 0x4f8   : > { %v2998_v19 = vadd.f32 %v5981_v16, %v7280_v35  ;;  %v2948_v22 = vpop.f32.mrb[175].mxu0  ;;  %6009 = vmatmul.mubr.msk.bf16.gmra.mrb[76].mxu1 %vm1087_vm3, %v3044_v0  ;;  %v3029_v26 = vmax.f32 %v2997_v8, 0.0 }
 0x4f9   : > { %v2996_v24 = vadd.f32 %v7280_v35, %v2948_v22  ;;  %v3027_v28 = vmax.f32 %v2995_v10, 0.0 }
 0x4fa   : > { %v3030_v4 = vmax.f32 %v2998_v19, 0.0 }
 0x4fb   : > { %v3028_v29 = vmax.f32 %v2996_v24, 0.0 }
 0x4fc   : > { %v3046_v33 = vpack.c.bf16 %v3030_v4, %v3029_v26 }
 0x4fd   : > { %v3045_v23 = vpack.c.bf16 %v3028_v29, %v3027_v28 }
 0x4ff   : > { %6012 = vmatprep.mubr.msk.bf16.mxu1 %vm1087_vm3, %v3045_v23 }
 0x500   : > { %6013 = vmatmul.mubr.msk.bf16.gmra.mrb[80].mxu1 %vm1087_vm3, %v3046_v33 }
 0x501   : > { %6018 = vmatprep.mubr.msk.bf16.mxu1 %vm1087_vm3, %v6777_v36  ;;  %v3795_v36 = vsel %vm1120_vm0, %v5186_v40, 0 }
 0x508   : > { %6019 = vmatmul.mubr.msk.bf16.vlgmr.msra.gmra.mrb[84].mxu1 %vm1087_vm3, %v6789_v49 }
 0x509   : > { %6051 = vmatpush3.bf16.msra.mxu1 %v3629_v38  ;;  %6022 = vmatprep.mubr.msk.bf16.mxu1 %vm1087_vm3, %v6795_v52 }
 0x50a   : > { %6359 = vmatprep.subr.msk.bf16.mxu1 %vm1120_vm0, %v5186_v40 }
 0x510   : > { %6023 = vmatmul.mubr.msk.bf16.gmra.mrb[88].mxu1 %vm1087_vm3, %v6805_v63 }
 0x511   : > { %6026 = vmatprep.mubr.msk.bf16.mxu1 %vm1087_vm3, %v6811_v1 }
 0x518   : > { %6027 = vmatmul.mubr.msk.bf16.gmra.mrb[92].mxu1 %vm1087_vm3, %v6821_v13 }
 0x519   : > { %6030 = vmatprep.mubr.msk.bf16.mxu1 %vm1087_vm3, %v6827_v15 }
 0x520   : > { %6031 = vmatmul.mubr.msk.bf16.gmra.mrb[96].mxu1 %vm1087_vm3, %v6837_v25 }
 0x521   : > { %6034 = vmatprep.mubr.msk.bf16.mxu1 %vm1087_vm3, %v6843_v27 }
 0x528   : > { %6035 = vmatmul.mubr.msk.bf16.gmra.mrb[100].mxu1 %vm1087_vm3, %v6853_v42 }
 0x529   : > { %6038 = vmatprep.mubr.msk.bf16.mxu1 %vm1087_vm3, %v6859_v45 }
 0x530   : > { %6039 = vmatmul.mubr.msk.bf16.gmra.mrb[104].mxu1 %vm1087_vm3, %v6869_v58 }
 0x531   : > { %6042 = vmatprep.mubr.msk.bf16.mxu1 %vm1087_vm3, %v6875_v62 }
 0x538   : > { %6043 = vmatmul.mubr.msk.bf16.gmra.mrb[108].mxu1 %vm1087_vm3, %v6884_v9 }
 0x539   : > { %6046 = vmatprep.mubr.msk.bf16.mxu1 %vm1087_vm3, %v6890_v14 }
 0x540   : > { %6047 = vmatmul.mubr.msk.bf16.gmra.mrb[112].mxu1 %vm1087_vm3, %v6897_v18 }
 0x541   : > { %6052 = vmatprep.mubr.msk.bf16.mxu1 %vm1087_vm3, %v6598_v30  ;;  %v4277_v30 = vld [vmem:[%s7744_s6] sm:$0x3] }
 0x542   : > { %6361 = vmatprep.subr.msk.bf16.mxu0 %vm1120_vm0, %v4277_v30  ;;  %v4334_v44 = vsel %vm1120_vm0, %v4277_v30, 0 }
 0x543   : > { %6153 = vmatpush3.bf16.msra.mxu0 %v4334_v44 }
 0x548   : > { %6053 = vmatmul.mubr.msk.bf16.vlgmr.msra.gmra.mrb[84].mxu1 %vm1087_vm3, %v6604_v39 }
 0x549   : > { %6085 = vmatpush3.bf16.msra.mxu1 %v3795_v36  ;;  %6056 = vmatprep.mubr.msk.bf16.mxu1 %vm1087_vm3, %v6610_v48 }
 0x54a   : > { %6360 = vmatprep.subr.msk.bf16.mxu1 %vm1120_vm0, %v3990_v60 }
 0x550   : > { %6057 = vmatmul.mubr.msk.bf16.gmra.mrb[88].mxu1 %vm1087_vm3, %v6616_v57 }
 0x551   : > { %6060 = vmatprep.mubr.msk.bf16.mxu1 %vm1087_vm3, %v6622_v2 }
 0x558   : > { %6061 = vmatmul.mubr.msk.bf16.gmra.mrb[92].mxu1 %vm1087_vm3, %v6628_v11 }
 0x559   : > { %6064 = vmatprep.mubr.msk.bf16.mxu1 %vm1087_vm3, %v6634_v20 }
 0x560   : > { %6065 = vmatmul.mubr.msk.bf16.gmra.mrb[96].mxu1 %vm1087_vm3, %v6640_v31 }
 0x561   : > { %6068 = vmatprep.mubr.msk.bf16.mxu1 %vm1087_vm3, %v6646_v41 }
 0x568   : > { %6069 = vmatmul.mubr.msk.bf16.gmra.mrb[100].mxu1 %vm1087_vm3, %v6652_v51 }
 0x569   : > { %6072 = vmatprep.mubr.msk.bf16.mxu1 %vm1087_vm3, %v6658_v61 }
 0x570   : > { %6073 = vmatmul.mubr.msk.bf16.gmra.mrb[104].mxu1 %vm1087_vm3, %v6664_v7 }
 0x571   : > { %6076 = vmatprep.mubr.msk.bf16.mxu1 %vm1087_vm3, %v6670_v17 }
 0x578   : > { %6077 = vmatmul.mubr.msk.bf16.gmra.mrb[108].mxu1 %vm1087_vm3, %v6682_v32 }
 0x579   : > { %6080 = vmatprep.mubr.msk.bf16.mxu1 %vm1087_vm3, %v6688_v43 }
 0x580   : > { %6081 = vmatmul.mubr.msk.bf16.gmra.mrb[112].mxu1 %vm1087_vm3, %v6694_v54 }
 0x581   : > { %6086 = vmatprep.mubr.msk.bf16.mxu1 %vm1087_vm3, %v6604_v39  ;;  %v7437_v39 = vld [vmem:[%s7745_s7] ss:$0 sm:$0xff] }
 0x588   : > { %6087 = vmatmul.mubr.msk.bf16.vlgmr.msra.gmra.mrb[84].mxu1 %vm1087_vm3, %v6610_v48 }
 0x589   : > { %6119 = vmatpush3.bf16.msra.mxu1 %v3995_v46  ;;  %6090 = vmatprep.mubr.msk.bf16.mxu1 %vm1087_vm3, %v6616_v57 }
 0x590   : > { %6091 = vmatmul.mubr.msk.bf16.gmra.mrb[88].mxu1 %vm1087_vm3, %v6622_v2 }
 0x591   : > { %6094 = vmatprep.mubr.msk.bf16.mxu1 %vm1087_vm3, %v6628_v11 }
 0x598   : > { %6095 = vmatmul.mubr.msk.bf16.gmra.mrb[92].mxu1 %vm1087_vm3, %v6634_v20 }
 0x599   : > { %6098 = vmatprep.mubr.msk.bf16.mxu1 %vm1087_vm3, %v6640_v31 }
 0x59b   : > { %v5986_v48 = vpop.f32.mrb[52].mxu1 }
 0x59c   : > { %v3149_v57 = vadd.f32 %v5986_v48, %v7437_v39  ;;  %v3140_v5 = vpop.f32.mrb[53].mxu1 }
 0x59d   : > { %v3141_v2 = vadd.f32 %v7437_v39, %v3140_v5  ;;  %v5987_v11 = vpop.f32.mrb[54].mxu1 }
 0x59e   : > { %v3269_v47 = vmax.f32 %v3149_v57, 0.0  ;;  %v3152_v20 = vadd.f32 %v5987_v11, %v7437_v39  ;;  %v3143_v50 = vpop.f32.mrb[55].mxu1 }
 0x59f   : > { %v3267_v31 = vmax.f32 %v3141_v2, 0.0  ;;  %v3144_v53 = vadd.f32 %v7437_v39, %v3143_v50 }
 0x5a0   : > { %v5372_v55 = vpack.c.bf16 %v3269_v47, %v3269_v47  ;;  %v3270_v12 = vmax.f32 %v3152_v20, 0.0  ;;  %6099 = vmatmul.mubr.msk.bf16.gmra.mrb[96].mxu1 %vm1087_vm3, %v6646_v41 }
 0x5a1   : > { %v5370_v56 = vpack.c.bf16 %v3267_v31, %v3267_v31  ;;  %v3268_v59 = vmax.f32 %v3144_v53, 0.0  ;;  %6102 = vmatprep.mubr.msk.bf16.mxu1 %vm1087_vm3, %v6652_v51 }
 0x5a2   : > { %5122 = vst.msk [vmem:[%s6936_s20 + $0x108] sm:$0xf] %vm1713_vm7, %v5372_v55  ;;  %v5373_v0 = vpack.c.bf16 %v3270_v12, %v3270_v12 }
 0x5a3   : > { %5120 = vst.msk [vmem:[%s6936_s20 + $0x100] sm:$0xf] %vm1713_vm7, %v5370_v56  ;;  %v5371_v3 = vpack.c.bf16 %v3268_v59, %v3268_v59  ;;  %v5990_v6 = vpop.f32.mrb[56].mxu1 }
 0x5a4   : > { %5123 = vst.msk [vmem:[%s6936_s20 + $0x10c] sm:$0xf] %vm1713_vm7, %v5373_v0  ;;  %v3165_v8 = vadd.f32 %v5990_v6, %v7437_v39  ;;  %v3156_v21 = vpop.f32.mrb[57].mxu1 }
 0x5a5   : > { %5121 = vst.msk [vmem:[%s6936_s20 + $0x104] sm:$0xf] %vm1713_vm7, %v5371_v3  ;;  %v3157_v41 = vadd.f32 %v7437_v39, %v3156_v21  ;;  %v5991_v10 = vpop.f32.mrb[58].mxu1 }
 0x5a6   : > { %v3273_v51 = vmax.f32 %v3165_v8, 0.0  ;;  %v3168_v16 = vadd.f32 %v5991_v10, %v7437_v39  ;;  %v3159_v19 = vpop.f32.mrb[59].mxu1 }
 0x5a7   : > { %v3271_v22 = vmax.f32 %v3157_v41, 0.0  ;;  %v3160_v24 = vadd.f32 %v7437_v39, %v3159_v19 }
 0x5a8   : > { %v5376_v26 = vpack.c.bf16 %v3273_v51, %v3273_v51  ;;  %v3274_v4 = vmax.f32 %v3168_v16, 0.0  ;;  %6103 = vmatmul.mubr.msk.bf16.gmra.mrb[100].mxu1 %vm1087_vm3, %v6658_v61 }
 0x5a9   : > { %v5374_v28 = vpack.c.bf16 %v3271_v22, %v3271_v22  ;;  %v3272_v29 = vmax.f32 %v3160_v24, 0.0  ;;  %6106 = vmatprep.mubr.msk.bf16.mxu1 %vm1087_vm3, %v6664_v7 }
 0x5aa   : > { %5126 = vst.msk [vmem:[%s6936_s20 + $0x118] sm:$0xf] %vm1713_vm7, %v5376_v26  ;;  %v5377_v33 = vpack.c.bf16 %v3274_v4, %v3274_v4 }
 0x5ab   : > { %5124 = vst.msk [vmem:[%s6936_s20 + $0x110] sm:$0xf] %vm1713_vm7, %v5374_v28  ;;  %v5375_v23 = vpack.c.bf16 %v3272_v29, %v3272_v29  ;;  %v5994_v38 = vpop.f32.mrb[60].mxu1 }
 0x5ac   : > { %5127 = vst.msk [vmem:[%s6936_s20 + $0x11c] sm:$0xf] %vm1713_vm7, %v5377_v33  ;;  %v3181_v40 = vadd.f32 %v5994_v38, %v7437_v39  ;;  %v3172_v36 = vpop.f32.mrb[61].mxu1 }
 0x5ad   : > { %5125 = vst.msk [vmem:[%s6936_s20 + $0x114] sm:$0xf] %vm1713_vm7, %v5375_v23  ;;  %v3173_v61 = vadd.f32 %v7437_v39, %v3172_v36  ;;  %v5995_v60 = vpop.f32.mrb[62].mxu1 }
 0x5ae   : > { %v3277_v7 = vmax.f32 %v3181_v40, 0.0  ;;  %v3184_v30 = vadd.f32 %v5995_v60, %v7437_v39  ;;  %v3175_v44 = vpop.f32.mrb[63].mxu1 }
 0x5af   : > { %v3275_v46 = vmax.f32 %v3173_v61, 0.0  ;;  %v3176_v48 = vadd.f32 %v7437_v39, %v3175_v44 }
 0x5b0   : > { %v5380_v57 = vpack.c.bf16 %v3277_v7, %v3277_v7  ;;  %v3278_v5 = vmax.f32 %v3184_v30, 0.0  ;;  %6107 = vmatmul.mubr.msk.bf16.gmra.mrb[104].mxu1 %vm1087_vm3, %v6670_v17 }
 0x5b1   : > { %v5378_v2 = vpack.c.bf16 %v3275_v46, %v3275_v46  ;;  %v3276_v11 = vmax.f32 %v3176_v48, 0.0  ;;  %6110 = vmatprep.mubr.msk.bf16.mxu1 %vm1087_vm3, %v6682_v32 }
 0x5b2   : > { %5130 = vst.msk [vmem:[%s6936_s20 + $0x128] sm:$0xf] %vm1713_vm7, %v5380_v57  ;;  %v5381_v47 = vpack.c.bf16 %v3278_v5, %v3278_v5 }
 0x5b3   : > { %5128 = vst.msk [vmem:[%s6936_s20 + $0x120] sm:$0xf] %vm1713_vm7, %v5378_v2  ;;  %v5379_v20 = vpack.c.bf16 %v3276_v11, %v3276_v11  ;;  %v5998_v50 = vpop.f32.mrb[64].mxu1 }
 0x5b4   : > { %5131 = vst.msk [vmem:[%s6936_s20 + $0x12c] sm:$0xf] %vm1713_vm7, %v5381_v47  ;;  %v3197_v31 = vadd.f32 %v5998_v50, %v7437_v39  ;;  %v3188_v53 = vpop.f32.mrb[65].mxu1 }
 0x5b5   : > { %5129 = vst.msk [vmem:[%s6936_s20 + $0x124] sm:$0xf] %vm1713_vm7, %v5379_v20  ;;  %v3189_v17 = vadd.f32 %v7437_v39, %v3188_v53  ;;  %v5999_v55 = vpop.f32.mrb[66].mxu1 }
 0x5b6   : > { %v3281_v32 = vmax.f32 %v3197_v31, 0.0  ;;  %v3200_v12 = vadd.f32 %v5999_v55, %v7437_v39  ;;  %v3191_v56 = vpop.f32.mrb[67].mxu1 }
 0x5b7   : > { %v3279_v59 = vmax.f32 %v3189_v17, 0.0  ;;  %v3192_v0 = vadd.f32 %v7437_v39, %v3191_v56 }
 0x5b8   : > { %v5384_v3 = vpack.c.bf16 %v3281_v32, %v3281_v32  ;;  %v3282_v6 = vmax.f32 %v3200_v12, 0.0  ;;  %6111 = vmatmul.mubr.msk.bf16.gmra.mrb[108].mxu1 %vm1087_vm3, %v6688_v43 }
 0x5b9   : > { %v5382_v8 = vpack.c.bf16 %v3279_v59, %v3279_v59  ;;  %v3280_v21 = vmax.f32 %v3192_v0, 0.0  ;;  %6114 = vmatprep.mubr.msk.bf16.mxu1 %vm1087_vm3, %v6694_v54 }
 0x5ba   : > { %5134 = vst.msk [vmem:[%s6936_s20 + $0x138] sm:$0xf] %vm1713_vm7, %v5384_v3  ;;  %v5385_v41 = vpack.c.bf16 %v3282_v6, %v3282_v6 }
 0x5bb   : > { %5132 = vst.msk [vmem:[%s6936_s20 + $0x130] sm:$0xf] %vm1713_vm7, %v5382_v8  ;;  %v5383_v10 = vpack.c.bf16 %v3280_v21, %v3280_v21  ;;  %v6002_v51 = vpop.f32.mrb[68].mxu1 }
 0x5bc   : > { %5135 = vst.msk [vmem:[%s6936_s20 + $0x13c] sm:$0xf] %vm1713_vm7, %v5385_v41  ;;  %v3213_v16 = vadd.f32 %v6002_v51, %v7437_v39  ;;  %v3204_v19 = vpop.f32.mrb[69].mxu1 }
 0x5bd   : > { %5133 = vst.msk [vmem:[%s6936_s20 + $0x134] sm:$0xf] %vm1713_vm7, %v5383_v10  ;;  %v3205_v43 = vadd.f32 %v7437_v39, %v3204_v19  ;;  %v6003_v22 = vpop.f32.mrb[70].mxu1 }
 0x5be   : > { %v3285_v54 = vmax.f32 %v3213_v16, 0.0  ;;  %v3216_v24 = vadd.f32 %v6003_v22, %v7437_v39  ;;  %v3207_v26 = vpop.f32.mrb[71].mxu1 }
 0x5bf   : > { %v3283_v4 = vmax.f32 %v3205_v43, 0.0  ;;  %v3208_v28 = vadd.f32 %v7437_v39, %v3207_v26 }
 0x5c0   : > { %v5388_v29 = vpack.c.bf16 %v3285_v54, %v3285_v54  ;;  %v3286_v33 = vmax.f32 %v3216_v24, 0.0  ;;  %6115 = vmatmul.mubr.bf16.gmra.mrb[112].mxu1 %v6435_v37 }
 0x5c1   : > { %v5386_v23 = vpack.c.bf16 %v3283_v4, %v3283_v4  ;;  %v3284_v38 = vmax.f32 %v3208_v28, 0.0  ;;  %6120 = vmatprep.mubr.msk.bf16.mxu1 %vm1087_vm3, %v6789_v49 }
 0x5c2   : > { %5138 = vst.msk [vmem:[%s6936_s20 + $0x148] sm:$0xf] %vm1713_vm7, %v5388_v29  ;;  %v5389_v40 = vpack.c.bf16 %v3286_v33, %v3286_v33 }
 0x5c3   : > { %5136 = vst.msk [vmem:[%s6936_s20 + $0x140] sm:$0xf] %vm1713_vm7, %v5386_v23  ;;  %v5387_v36 = vpack.c.bf16 %v3284_v38, %v3284_v38  ;;  %v6006_v61 = vpop.f32.mrb[72].mxu1 }
 0x5c4   : > { %5139 = vst.msk [vmem:[%s6936_s20 + $0x14c] sm:$0xf] %vm1713_vm7, %v5389_v40  ;;  %v3229_v60 = vadd.f32 %v6006_v61, %v7437_v39  ;;  %v3220_v7 = vpop.f32.mrb[73].mxu1 }
 0x5c5   : > { %5137 = vst.msk [vmem:[%s6936_s20 + $0x144] sm:$0xf] %vm1713_vm7, %v5387_v36  ;;  %v3221_v37 = vadd.f32 %v7437_v39, %v3220_v7  ;;  %v6007_v30 = vpop.f32.mrb[74].mxu1 }
 0x5c6   : > { %v3289_v49 = vmax.f32 %v3229_v60, 0.0  ;;  %v3232_v44 = vadd.f32 %v6007_v30, %v7437_v39  ;;  %v3223_v46 = vpop.f32.mrb[75].mxu1 }
 0x5c7   : > { %v3287_v48 = vmax.f32 %v3221_v37, 0.0  ;;  %v3224_v57 = vadd.f32 %v7437_v39, %v3223_v46 }
 0x5c8   : > { %v5392_v5 = vpack.c.bf16 %v3289_v49, %v3289_v49  ;;  %v3290_v2 = vmax.f32 %v3232_v44, 0.0  ;;  %6121 = vmatmul.mubr.msk.bf16.vlgmr.msra.gmra.mrb[84].mxu1 %vm1087_vm3, %v6795_v52 }
 0x5c9   : > { %v5390_v11 = vpack.c.bf16 %v3287_v48, %v3287_v48  ;;  %v3288_v47 = vmax.f32 %v3224_v57, 0.0  ;;  %6124 = vmatprep.mubr.msk.bf16.mxu1 %vm1087_vm3, %v6805_v63 }
 0x5ca   : > { %5142 = vst.msk [vmem:[%s6936_s20 + $0x158] sm:$0xf] %vm1713_vm7, %v5392_v5  ;;  %v5393_v20 = vpack.c.bf16 %v3290_v2, %v3290_v2 }
 0x5cb   : > { %5140 = vst.msk [vmem:[%s6936_s20 + $0x150] sm:$0xf] %vm1713_vm7, %v5390_v11  ;;  %v5391_v50 = vpack.c.bf16 %v3288_v47, %v3288_v47  ;;  %v6010_v31 = vpop.f32.mrb[76].mxu1 }
 0x5cc   : > { %5143 = vst.msk [vmem:[%s6936_s20 + $0x15c] sm:$0xf] %vm1713_vm7, %v5393_v20  ;;  %v3245_v53 = vadd.f32 %v6010_v31, %v7437_v39  ;;  %v3236_v17 = vpop.f32.mrb[77].mxu1 }
 0x5cd   : > { %5141 = vst.msk [vmem:[%s6936_s20 + $0x154] sm:$0xf] %vm1713_vm7, %v5391_v50  ;;  %v3237_v52 = vadd.f32 %v7437_v39, %v3236_v17  ;;  %v6011_v55 = vpop.f32.mrb[78].mxu1 }
 0x5ce   : > { %v3293_v63 = vmax.f32 %v3245_v53, 0.0  ;;  %v3248_v32 = vadd.f32 %v6011_v55, %v7437_v39  ;;  %v3239_v12 = vpop.f32.mrb[79].mxu1 }
 0x5cf   : > { %v3291_v56 = vmax.f32 %v3237_v52, 0.0  ;;  %v3240_v59 = vadd.f32 %v7437_v39, %v3239_v12 }
 0x5d0   : > { %v5396_v0 = vpack.c.bf16 %v3293_v63, %v3293_v63  ;;  %v3294_v3 = vmax.f32 %v3248_v32, 0.0  ;;  %6125 = vmatmul.mubr.msk.bf16.gmra.mrb[88].mxu1 %vm1087_vm3, %v6811_v1 }
 0x5d1   : > { %v5394_v6 = vpack.c.bf16 %v3291_v56, %v3291_v56  ;;  %v3292_v8 = vmax.f32 %v3240_v59, 0.0  ;;  %6128 = vmatprep.mubr.msk.bf16.mxu1 %vm1087_vm3, %v6821_v13 }
 0x5d2   : > { %5146 = vst.msk [vmem:[%s6936_s20 + $0x168] sm:$0xf] %vm1713_vm7, %v5396_v0  ;;  %v5397_v21 = vpack.c.bf16 %v3294_v3, %v3294_v3 }
 0x5d3   : > { %5144 = vst.msk [vmem:[%s6936_s20 + $0x160] sm:$0xf] %vm1713_vm7, %v5394_v6  ;;  %v5395_v41 = vpack.c.bf16 %v3292_v8, %v3292_v8  ;;  %v6014_v10 = vpop.f32.mrb[80].mxu1 }
 0x5d4   : > { %5147 = vst.msk [vmem:[%s6936_s20 + $0x16c] sm:$0xf] %vm1713_vm7, %v5397_v21  ;;  %v3261_v51 = vadd.f32 %v6014_v10, %v7437_v39  ;;  %v3252_v16 = vpop.f32.mrb[81].mxu1 }
 0x5d5   : > { %5145 = vst.msk [vmem:[%s6936_s20 + $0x164] sm:$0xf] %vm1713_vm7, %v5395_v41  ;;  %v3253_v1 = vadd.f32 %v7437_v39, %v3252_v16  ;;  %v6015_v19 = vpop.f32.mrb[82].mxu1 }
 0x5d6   : > { %v3297_v13 = vmax.f32 %v3261_v51, 0.0  ;;  %v3264_v43 = vadd.f32 %v6015_v19, %v7437_v39  ;;  %v3255_v22 = vpop.f32.mrb[83].mxu1 }
 0x5d7   : > { %v3295_v54 = vmax.f32 %v3253_v1, 0.0  ;;  %v3256_v24 = vadd.f32 %v7437_v39, %v3255_v22 }
 0x5d8   : > { %v5400_v26 = vpack.c.bf16 %v3297_v13, %v3297_v13  ;;  %v3298_v4 = vmax.f32 %v3264_v43, 0.0  ;;  %6129 = vmatmul.mubr.msk.bf16.gmra.mrb[92].mxu1 %vm1087_vm3, %v6827_v15  ;;  %v6436_v15 = vmov 0  }
 0x5d9   : > { %v5398_v28 = vpack.c.bf16 %v3295_v54, %v3295_v54  ;;  %v3296_v29 = vmax.f32 %v3256_v24, 0.0  ;;  %6132 = vmatprep.mubr.msk.bf16.mxu1 %vm1087_vm3, %v6837_v25  ;;  %v1039_v25 = vrot.slane %v6436_v15, 1 }
 0x5da   : > { %5150 = vst.msk [vmem:[%s6936_s20 + $0x178] sm:$0xf] %vm1713_vm7, %v5400_v26  ;;  %v5401_v33 = vpack.c.bf16 %v3298_v4, %v3298_v4 }
 0x5db   : > { %5148 = vst.msk [vmem:[%s6936_s20 + $0x170] sm:$0xf] %vm1713_vm7, %v5398_v28  ;;  %v5399_v23 = vpack.c.bf16 %v3296_v29, %v3296_v29 }
 0x5dc   : > { %5151 = vst.msk [vmem:[%s6936_s20 + $0x17c] sm:$0xf] %vm1713_vm7, %v5401_v33 }
 0x5dd   : > { %5149 = vst.msk [vmem:[%s6936_s20 + $0x174] sm:$0xf] %vm1713_vm7, %v5399_v23 }
 0x5e0   : > { %6133 = vmatmul.mubr.msk.bf16.gmra.mrb[96].mxu1 %vm1087_vm3, %v6843_v27  ;;  %v1077_v27 = vsel %vm6769_vm6, %v1039_v25, 0 }
 0x5e1   : > { %6136 = vmatprep.mubr.msk.bf16.mxu1 %vm1087_vm3, %v6853_v42 }
 0x5e8   : > { %6137 = vmatmul.mubr.msk.bf16.gmra.mrb[100].mxu1 %vm1087_vm3, %v6859_v45 }
 0x5e9   : > { %6140 = vmatprep.mubr.msk.bf16.mxu1 %vm1087_vm3, %v6869_v58 }
 0x5f0   : > { %6141 = vmatmul.mubr.msk.bf16.gmra.mrb[104].mxu1 %vm1087_vm3, %v6875_v62 }
 0x5f1   : > { %6144 = vmatprep.mubr.msk.bf16.mxu1 %vm1087_vm3, %v6884_v9 }
 0x5f8   : > { %6145 = vmatmul.mubr.msk.bf16.gmra.mrb[108].mxu1 %vm1087_vm3, %v6890_v14 }
 0x5f9   : > { %6148 = vmatprep.mubr.msk.bf16.mxu1 %vm1087_vm3, %v6897_v18 }
 0x600   : > { %6149 = vmatmul.mubr.msk.bf16.gmra.mrb[112].mxu1 %vm1087_vm3, %v1077_v27 }
 0x69b   : > { %v6122_v42 = vpop.f32.mrb[84].mxu1 }
 0x69c   : > { %v4199_v45 = vadd.f32 %v6122_v42, %v7280_v35  ;;  %v4031_v58 = vpop.f32.mrb[85].mxu1 }
 0x69d   : > { %v4197_v62 = vadd.f32 %v7280_v35, %v4031_v58  ;;  %v6123_v9 = vpop.f32.mrb[86].mxu1 }
 0x69e   : > { %v4200_v38 = vadd.f32 %v6123_v9, %v7280_v35  ;;  %v4034_v14 = vpop.f32.mrb[87].mxu1  ;;  %v4231_v18 = vmax.f32 %v4199_v45, 0.0 }
 0x69f   : > { %v4198_v40 = vadd.f32 %v7280_v35, %v4034_v14  ;;  %v4229_v61 = vmax.f32 %v4197_v62, 0.0 }
 0x6a0   : > { %v4232_v36 = vmax.f32 %v4200_v38, 0.0 }
 0x6a1   : > { %v4230_v60 = vmax.f32 %v4198_v40, 0.0 }
 0x6a2   : > { %v4262_v34 = vpack.c.bf16 %v4232_v36, %v4231_v18 }
 0x6a3   : > { %v4261_v7 = vpack.c.bf16 %v4230_v60, %v4229_v61  ;;  %v6126_v37 = vpop.f32.mrb[88].mxu1 }
 0x6a4   : > { %v4203_v30 = vadd.f32 %v6126_v37, %v7280_v35  ;;  %v4047_v49 = vpop.f32.mrb[89].mxu1 }
 0x6a5   : > { %v4201_v44 = vadd.f32 %v7280_v35, %v4047_v49  ;;  %v6127_v46 = vpop.f32.mrb[90].mxu1  ;;  %6154 = vmatprep.mubr.msk.bf16.mxu0 %vm1087_vm3, %v4261_v7 }
 0x6a6   : > { %v4204_v48 = vadd.f32 %v6127_v46, %v7280_v35  ;;  %v4050_v57 = vpop.f32.mrb[91].mxu1  ;;  %6155 = vmatmul.mubr.msk.bf16.vlgmr.msra.gmra.mrb[176].mxu0 %vm1087_vm3, %v4262_v34  ;;  %v4235_v2 = vmax.f32 %v4203_v30, 0.0 }
 0x6a7   : > { %v4202_v5 = vadd.f32 %v7280_v35, %v4050_v57  ;;  %v4233_v47 = vmax.f32 %v4201_v44, 0.0 }
 0x6a8   : > { %v4236_v11 = vmax.f32 %v4204_v48, 0.0 }
 0x6a9   : > { %v4234_v20 = vmax.f32 %v4202_v5, 0.0 }
 0x6aa   : > { %v4264_v50 = vpack.c.bf16 %v4236_v11, %v4235_v2 }
 0x6ab   : > { %v4263_v31 = vpack.c.bf16 %v4234_v20, %v4233_v47  ;;  %v6130_v53 = vpop.f32.mrb[92].mxu1 }
 0x6ac   : > { %v4207_v17 = vadd.f32 %v6130_v53, %v7280_v35  ;;  %v4063_v52 = vpop.f32.mrb[93].mxu1 }
 0x6ad   : > { %v4205_v55 = vadd.f32 %v7280_v35, %v4063_v52  ;;  %v6131_v63 = vpop.f32.mrb[94].mxu1  ;;  %6158 = vmatprep.mubr.msk.bf16.mxu0 %vm1087_vm3, %v4263_v31 }
 0x6ae   : > { %v4208_v32 = vadd.f32 %v6131_v63, %v7280_v35  ;;  %v4066_v12 = vpop.f32.mrb[95].mxu1  ;;  %6159 = vmatmul.mubr.msk.bf16.gmra.mrb[180].mxu0 %vm1087_vm3, %v4264_v50  ;;  %v4239_v59 = vmax.f32 %v4207_v17, 0.0 }
 0x6af   : > { %v4206_v56 = vadd.f32 %v7280_v35, %v4066_v12  ;;  %v4237_v3 = vmax.f32 %v4205_v55, 0.0 }
 0x6b0   : > { %v4240_v0 = vmax.f32 %v4208_v32, 0.0 }
 0x6b1   : > { %v4238_v6 = vmax.f32 %v4206_v56, 0.0 }
 0x6b2   : > { %v4266_v8 = vpack.c.bf16 %v4240_v0, %v4239_v59 }
 0x6b3   : > { %v4265_v21 = vpack.c.bf16 %v4238_v6, %v4237_v3  ;;  %v6134_v41 = vpop.f32.mrb[96].mxu1 }
 0x6b4   : > { %v4211_v10 = vadd.f32 %v6134_v41, %v7280_v35  ;;  %v4079_v51 = vpop.f32.mrb[97].mxu1 }
 0x6b5   : > { %v4209_v16 = vadd.f32 %v7280_v35, %v4079_v51  ;;  %v6135_v1 = vpop.f32.mrb[98].mxu1  ;;  %6162 = vmatprep.mubr.msk.bf16.mxu0 %vm1087_vm3, %v4265_v21 }
 0x6b6   : > { %v4212_v19 = vadd.f32 %v6135_v1, %v7280_v35  ;;  %v4082_v13 = vpop.f32.mrb[99].mxu1  ;;  %6163 = vmatmul.mubr.msk.bf16.gmra.mrb[184].mxu0 %vm1087_vm3, %v4266_v8  ;;  %v4243_v22 = vmax.f32 %v4211_v10, 0.0 }
 0x6b7   : > { %v4210_v43 = vadd.f32 %v7280_v35, %v4082_v13  ;;  %v4241_v24 = vmax.f32 %v4209_v16, 0.0 }
 0x6b8   : > { %v4244_v54 = vmax.f32 %v4212_v19, 0.0 }
 0x6b9   : > { %v4242_v26 = vmax.f32 %v4210_v43, 0.0 }
 0x6ba   : > { %v4268_v4 = vpack.c.bf16 %v4244_v54, %v4243_v22 }
 0x6bb   : > { %v4267_v28 = vpack.c.bf16 %v4242_v26, %v4241_v24  ;;  %v6138_v29 = vpop.f32.mrb[100].mxu1 }
 0x6bc   : > { %v4215_v33 = vadd.f32 %v6138_v29, %v7280_v35  ;;  %v4095_v23 = vpop.f32.mrb[101].mxu1 }
 0x6bd   : > { %v4213_v15 = vadd.f32 %v7280_v35, %v4095_v23  ;;  %v6139_v25 = vpop.f32.mrb[102].mxu1  ;;  %6166 = vmatprep.mubr.msk.bf16.mxu0 %vm1087_vm3, %v4267_v28 }
 0x6be   : > { %v4216_v27 = vadd.f32 %v6139_v25, %v7280_v35  ;;  %v4098_v42 = vpop.f32.mrb[103].mxu1  ;;  %6167 = vmatmul.mubr.msk.bf16.gmra.mrb[188].mxu0 %vm1087_vm3, %v4268_v4  ;;  %v4247_v58 = vmax.f32 %v4215_v33, 0.0 }
 0x6bf   : > { %v4214_v45 = vadd.f32 %v7280_v35, %v4098_v42  ;;  %v4245_v9 = vmax.f32 %v4213_v15, 0.0 }
 0x6c0   : > { %v4248_v62 = vmax.f32 %v4216_v27, 0.0 }
 0x6c1   : > { %v4246_v38 = vmax.f32 %v4214_v45, 0.0 }
 0x6c2   : > { %v4270_v14 = vpack.c.bf16 %v4248_v62, %v4247_v58 }
 0x6c3   : > { %v4269_v40 = vpack.c.bf16 %v4246_v38, %v4245_v9  ;;  %v6142_v18 = vpop.f32.mrb[104].mxu1 }
 0x6c4   : > { %v4219_v36 = vadd.f32 %v6142_v18, %v7280_v35  ;;  %v4111_v61 = vpop.f32.mrb[105].mxu1 }
 0x6c5   : > { %v4217_v60 = vadd.f32 %v7280_v35, %v4111_v61  ;;  %v6143_v34 = vpop.f32.mrb[106].mxu1  ;;  %6170 = vmatprep.mubr.msk.bf16.mxu0 %vm1087_vm3, %v4269_v40 }
 0x6c6   : > { %v4220_v7 = vadd.f32 %v6143_v34, %v7280_v35  ;;  %v4114_v37 = vpop.f32.mrb[107].mxu1  ;;  %6171 = vmatmul.mubr.msk.bf16.gmra.mrb[192].mxu0 %vm1087_vm3, %v4270_v14  ;;  %v4251_v49 = vmax.f32 %v4219_v36, 0.0 }
 0x6c7   : > { %v4218_v30 = vadd.f32 %v7280_v35, %v4114_v37  ;;  %v4249_v46 = vmax.f32 %v4217_v60, 0.0 }
 0x6c8   : > { %v4252_v44 = vmax.f32 %v4220_v7, 0.0 }
 0x6c9   : > { %v4250_v48 = vmax.f32 %v4218_v30, 0.0 }
 0x6ca   : > { %v4272_v57 = vpack.c.bf16 %v4252_v44, %v4251_v49 }
 0x6cb   : > { %v4271_v5 = vpack.c.bf16 %v4250_v48, %v4249_v46  ;;  %v6146_v2 = vpop.f32.mrb[108].mxu1 }
 0x6cc   : > { %v4223_v11 = vadd.f32 %v6146_v2, %v7280_v35  ;;  %v4127_v47 = vpop.f32.mrb[109].mxu1 }
 0x6cd   : > { %v4221_v20 = vadd.f32 %v7280_v35, %v4127_v47  ;;  %v6147_v50 = vpop.f32.mrb[110].mxu1  ;;  %6174 = vmatprep.mubr.msk.bf16.mxu0 %vm1087_vm3, %v4271_v5 }
 0x6ce   : > { %v4224_v31 = vadd.f32 %v6147_v50, %v7280_v35  ;;  %v4130_v53 = vpop.f32.mrb[111].mxu1  ;;  %6175 = vmatmul.mubr.msk.bf16.gmra.mrb[196].mxu0 %vm1087_vm3, %v4272_v57  ;;  %v4255_v52 = vmax.f32 %v4223_v11, 0.0 }
 0x6cf   : > { %v4222_v17 = vadd.f32 %v7280_v35, %v4130_v53  ;;  %v4253_v63 = vmax.f32 %v4221_v20, 0.0 }
 0x6d0   : > { %v4256_v55 = vmax.f32 %v4224_v31, 0.0 }
 0x6d1   : > { %v4254_v32 = vmax.f32 %v4222_v17, 0.0 }
 0x6d2   : > { %v4274_v12 = vpack.c.bf16 %v4256_v55, %v4255_v52 }
 0x6d3   : > { %v4273_v56 = vpack.c.bf16 %v4254_v32, %v4253_v63  ;;  %v6150_v59 = vpop.f32.mrb[112].mxu1 }
 0x6d4   : > { %v4227_v0 = vadd.f32 %v6150_v59, %v7280_v35  ;;  %v4143_v3 = vpop.f32.mrb[113].mxu1 }
 0x6d5   : > { %v4225_v6 = vadd.f32 %v7280_v35, %v4143_v3  ;;  %v6151_v8 = vpop.f32.mrb[114].mxu1  ;;  %6178 = vmatprep.mubr.msk.bf16.mxu0 %vm1087_vm3, %v4273_v56 }
 0x6d6   : > { %v4228_v21 = vadd.f32 %v6151_v8, %v7280_v35  ;;  %v4146_v41 = vpop.f32.mrb[115].mxu1  ;;  %6179 = vmatmul.mubr.msk.bf16.gmra.mrb[200].mxu0 %vm1087_vm3, %v4274_v12  ;;  %v4259_v51 = vmax.f32 %v4227_v0, 0.0 }
 0x6d7   : > { %v4226_v10 = vadd.f32 %v7280_v35, %v4146_v41  ;;  %v4257_v1 = vmax.f32 %v4225_v6, 0.0 }
 0x6d8   : > { %v4260_v16 = vmax.f32 %v4228_v21, 0.0 }
 0x6d9   : > { %v4258_v19 = vmax.f32 %v4226_v10, 0.0 }
 0x6da   : > { %v4276_v13 = vpack.c.bf16 %v4260_v16, %v4259_v51 }
 0x6db   : > { %v4275_v43 = vpack.c.bf16 %v4258_v19, %v4257_v1 }
 0x6dd   : > { %6182 = vmatprep.mubr.msk.bf16.mxu0 %vm1087_vm3, %v4275_v43 }
 0x6de   : > { %6183 = vmatmul.mubr.msk.bf16.gmra.mrb[204].mxu0 %vm1087_vm3, %v4276_v13 }
 0x779   : > { %v6156_v22 = vpop.f32.mrb[176].mxu0 }
 0x77a   : > { %v4379_v54 = vadd.f32 %v6156_v22, %v7437_v39  ;;  %v4370_v24 = vpop.f32.mrb[177].mxu0 }
 0x77b   : > { %v4371_v26 = vadd.f32 %v7437_v39, %v4370_v24  ;;  %v6157_v35 = vpop.f32.mrb[178].mxu0 }
 0x77c   : > { %v4499_v4 = vmax.f32 %v4379_v54, 0.0  ;;  %v4382_v28 = vadd.f32 %v6157_v35, %v7437_v39  ;;  %v4373_v29 = vpop.f32.mrb[179].mxu0 }
 0x77d   : > { %v4497_v33 = vmax.f32 %v4371_v26, 0.0  ;;  %v4374_v23 = vadd.f32 %v7437_v39, %v4373_v29 }
 0x77e   : > { %v5404_v15 = vpack.c.bf16 %v4499_v4, %v4499_v4  ;;  %v4500_v25 = vmax.f32 %v4382_v28, 0.0 }
 0x77f   : > { %v5402_v27 = vpack.c.bf16 %v4497_v33, %v4497_v33  ;;  %v4498_v42 = vmax.f32 %v4374_v23, 0.0 }
 0x780   : > { %5270 = vst.msk [vmem:[%s6936_s20 + $0x188] sm:$0xf] %vm1713_vm7, %v5404_v15  ;;  %v5405_v45 = vpack.c.bf16 %v4500_v25, %v4500_v25 }
 0x781   : > { %5268 = vst.msk [vmem:[%s6936_s20 + $0x180] sm:$0xf] %vm1713_vm7, %v5402_v27  ;;  %v5403_v58 = vpack.c.bf16 %v4498_v42, %v4498_v42  ;;  %v6160_v62 = vpop.f32.mrb[180].mxu0 }
 0x782   : > { %5271 = vst.msk [vmem:[%s6936_s20 + $0x18c] sm:$0xf] %vm1713_vm7, %v5405_v45  ;;  %v4395_v9 = vadd.f32 %v6160_v62, %v7437_v39  ;;  %v4386_v38 = vpop.f32.mrb[181].mxu0 }
 0x783   : > { %5269 = vst.msk [vmem:[%s6936_s20 + $0x184] sm:$0xf] %vm1713_vm7, %v5403_v58  ;;  %v4387_v14 = vadd.f32 %v7437_v39, %v4386_v38  ;;  %v6161_v40 = vpop.f32.mrb[182].mxu0 }
 0x784   : > { %v4503_v18 = vmax.f32 %v4395_v9, 0.0  ;;  %v4398_v36 = vadd.f32 %v6161_v40, %v7437_v39  ;;  %v4389_v61 = vpop.f32.mrb[183].mxu0 }
 0x785   : > { %v4501_v60 = vmax.f32 %v4387_v14, 0.0  ;;  %v4390_v34 = vadd.f32 %v7437_v39, %v4389_v61 }
 0x786   : > { %v5408_v7 = vpack.c.bf16 %v4503_v18, %v4503_v18  ;;  %v4504_v37 = vmax.f32 %v4398_v36, 0.0 }
 0x787   : > { %v5406_v30 = vpack.c.bf16 %v4501_v60, %v4501_v60  ;;  %v4502_v49 = vmax.f32 %v4390_v34, 0.0 }
 0x788   : > { %5274 = vst.msk [vmem:[%s6936_s20 + $0x198] sm:$0xf] %vm1713_vm7, %v5408_v7  ;;  %v5409_v44 = vpack.c.bf16 %v4504_v37, %v4504_v37 }
 0x789   : > { %5272 = vst.msk [vmem:[%s6936_s20 + $0x190] sm:$0xf] %vm1713_vm7, %v5406_v30  ;;  %v5407_v46 = vpack.c.bf16 %v4502_v49, %v4502_v49  ;;  %v6164_v48 = vpop.f32.mrb[184].mxu0 }
 0x78a   : > { %5275 = vst.msk [vmem:[%s6936_s20 + $0x19c] sm:$0xf] %vm1713_vm7, %v5409_v44  ;;  %v4411_v57 = vadd.f32 %v6164_v48, %v7437_v39  ;;  %v4402_v5 = vpop.f32.mrb[185].mxu0 }
 0x78b   : > { %5273 = vst.msk [vmem:[%s6936_s20 + $0x194] sm:$0xf] %vm1713_vm7, %v5407_v46  ;;  %v4403_v2 = vadd.f32 %v7437_v39, %v4402_v5  ;;  %v6165_v11 = vpop.f32.mrb[186].mxu0 }
 0x78c   : > { %v4507_v47 = vmax.f32 %v4411_v57, 0.0  ;;  %v4414_v20 = vadd.f32 %v6165_v11, %v7437_v39  ;;  %v4405_v50 = vpop.f32.mrb[187].mxu0 }
 0x78d   : > { %v4505_v31 = vmax.f32 %v4403_v2, 0.0  ;;  %v4406_v53 = vadd.f32 %v7437_v39, %v4405_v50 }
 0x78e   : > { %v5412_v17 = vpack.c.bf16 %v4507_v47, %v4507_v47  ;;  %v4508_v52 = vmax.f32 %v4414_v20, 0.0 }
 0x78f   : > { %v5410_v55 = vpack.c.bf16 %v4505_v31, %v4505_v31  ;;  %v4506_v63 = vmax.f32 %v4406_v53, 0.0 }
 0x790   : > { %5278 = vst.msk [vmem:[%s6936_s20 + $0x1a8] sm:$0xf] %vm1713_vm7, %v5412_v17  ;;  %v5413_v32 = vpack.c.bf16 %v4508_v52, %v4508_v52 }
 0x791   : > { %5276 = vst.msk [vmem:[%s6936_s20 + $0x1a0] sm:$0xf] %vm1713_vm7, %v5410_v55  ;;  %v5411_v12 = vpack.c.bf16 %v4506_v63, %v4506_v63  ;;  %v6168_v56 = vpop.f32.mrb[188].mxu0 }
 0x792   : > { %5279 = vst.msk [vmem:[%s6936_s20 + $0x1ac] sm:$0xf] %vm1713_vm7, %v5413_v32  ;;  %v4427_v59 = vadd.f32 %v6168_v56, %v7437_v39  ;;  %v4418_v0 = vpop.f32.mrb[189].mxu0 }
 0x793   : > { %5277 = vst.msk [vmem:[%s6936_s20 + $0x1a4] sm:$0xf] %vm1713_vm7, %v5411_v12  ;;  %v4419_v3 = vadd.f32 %v7437_v39, %v4418_v0  ;;  %v6169_v6 = vpop.f32.mrb[190].mxu0 }
 0x794   : > { %v4511_v8 = vmax.f32 %v4427_v59, 0.0  ;;  %v4430_v21 = vadd.f32 %v6169_v6, %v7437_v39  ;;  %v4421_v41 = vpop.f32.mrb[191].mxu0 }
 0x795   : > { %v4509_v10 = vmax.f32 %v4419_v3, 0.0  ;;  %v4422_v51 = vadd.f32 %v7437_v39, %v4421_v41 }
 0x796   : > { %v5416_v16 = vpack.c.bf16 %v4511_v8, %v4511_v8  ;;  %v4512_v1 = vmax.f32 %v4430_v21, 0.0 }
 0x797   : > { %v5414_v19 = vpack.c.bf16 %v4509_v10, %v4509_v10  ;;  %v4510_v13 = vmax.f32 %v4422_v51, 0.0 }
 0x798   : > { %5282 = vst.msk [vmem:[%s6936_s20 + $0x1b8] sm:$0xf] %vm1713_vm7, %v5416_v16  ;;  %v5417_v43 = vpack.c.bf16 %v4512_v1, %v4512_v1 }
 0x799   : > { %5280 = vst.msk [vmem:[%s6936_s20 + $0x1b0] sm:$0xf] %vm1713_vm7, %v5414_v19  ;;  %v5415_v22 = vpack.c.bf16 %v4510_v13, %v4510_v13  ;;  %v6172_v54 = vpop.f32.mrb[192].mxu0 }
 0x79a   : > { %5283 = vst.msk [vmem:[%s6936_s20 + $0x1bc] sm:$0xf] %vm1713_vm7, %v5417_v43  ;;  %v4443_v24 = vadd.f32 %v6172_v54, %v7437_v39  ;;  %v4434_v26 = vpop.f32.mrb[193].mxu0 }
 0x79b   : > { %5281 = vst.msk [vmem:[%s6936_s20 + $0x1b4] sm:$0xf] %vm1713_vm7, %v5415_v22  ;;  %v4435_v35 = vadd.f32 %v7437_v39, %v4434_v26  ;;  %v6173_v4 = vpop.f32.mrb[194].mxu0 }
 0x79c   : > { %v4515_v28 = vmax.f32 %v4443_v24, 0.0  ;;  %v4446_v29 = vadd.f32 %v6173_v4, %v7437_v39  ;;  %v4437_v33 = vpop.f32.mrb[195].mxu0 }
 0x79d   : > { %v4513_v23 = vmax.f32 %v4435_v35, 0.0  ;;  %v4438_v15 = vadd.f32 %v7437_v39, %v4437_v33 }
 0x79e   : > { %v5420_v25 = vpack.c.bf16 %v4515_v28, %v4515_v28  ;;  %v4516_v27 = vmax.f32 %v4446_v29, 0.0 }
 0x79f   : > { %v5418_v42 = vpack.c.bf16 %v4513_v23, %v4513_v23  ;;  %v4514_v45 = vmax.f32 %v4438_v15, 0.0 }
 0x7a0   : > { %5286 = vst.msk [vmem:[%s6936_s20 + $0x1c8] sm:$0xf] %vm1713_vm7, %v5420_v25  ;;  %v5421_v58 = vpack.c.bf16 %v4516_v27, %v4516_v27 }
 0x7a1   : > { %5284 = vst.msk [vmem:[%s6936_s20 + $0x1c0] sm:$0xf] %vm1713_vm7, %v5418_v42  ;;  %v5419_v62 = vpack.c.bf16 %v4514_v45, %v4514_v45  ;;  %v6176_v9 = vpop.f32.mrb[196].mxu0 }
 0x7a2   : > { %5287 = vst.msk [vmem:[%s6936_s20 + $0x1cc] sm:$0xf] %vm1713_vm7, %v5421_v58  ;;  %v4459_v38 = vadd.f32 %v6176_v9, %v7437_v39  ;;  %v4450_v14 = vpop.f32.mrb[197].mxu0 }
 0x7a3   : > { %5285 = vst.msk [vmem:[%s6936_s20 + $0x1c4] sm:$0xf] %vm1713_vm7, %v5419_v62  ;;  %v4451_v40 = vadd.f32 %v7437_v39, %v4450_v14  ;;  %v6177_v18 = vpop.f32.mrb[198].mxu0 }
 0x7a4   : > { %v4519_v36 = vmax.f32 %v4459_v38, 0.0  ;;  %v4462_v61 = vadd.f32 %v6177_v18, %v7437_v39  ;;  %v4453_v60 = vpop.f32.mrb[199].mxu0 }
 0x7a5   : > { %v4517_v34 = vmax.f32 %v4451_v40, 0.0  ;;  %v4454_v7 = vadd.f32 %v7437_v39, %v4453_v60 }
 0x7a6   : > { %v5424_v37 = vpack.c.bf16 %v4519_v36, %v4519_v36  ;;  %v4520_v30 = vmax.f32 %v4462_v61, 0.0 }
 0x7a7   : > { %v5422_v49 = vpack.c.bf16 %v4517_v34, %v4517_v34  ;;  %v4518_v44 = vmax.f32 %v4454_v7, 0.0 }
 0x7a8   : > { %5290 = vst.msk [vmem:[%s6936_s20 + $0x1d8] sm:$0xf] %vm1713_vm7, %v5424_v37  ;;  %v5425_v46 = vpack.c.bf16 %v4520_v30, %v4520_v30 }
 0x7a9   : > { %5288 = vst.msk [vmem:[%s6936_s20 + $0x1d0] sm:$0xf] %vm1713_vm7, %v5422_v49  ;;  %v5423_v48 = vpack.c.bf16 %v4518_v44, %v4518_v44  ;;  %v6180_v57 = vpop.f32.mrb[200].mxu0 }
 0x7aa   : > { %5291 = vst.msk [vmem:[%s6936_s20 + $0x1dc] sm:$0xf] %vm1713_vm7, %v5425_v46  ;;  %v4475_v5 = vadd.f32 %v6180_v57, %v7437_v39  ;;  %v4466_v2 = vpop.f32.mrb[201].mxu0 }
 0x7ab   : > { %5289 = vst.msk [vmem:[%s6936_s20 + $0x1d4] sm:$0xf] %vm1713_vm7, %v5423_v48  ;;  %v4467_v11 = vadd.f32 %v7437_v39, %v4466_v2  ;;  %v6181_v47 = vpop.f32.mrb[202].mxu0 }
 0x7ac   : > { %v4523_v20 = vmax.f32 %v4475_v5, 0.0  ;;  %v4478_v50 = vadd.f32 %v6181_v47, %v7437_v39  ;;  %v4469_v31 = vpop.f32.mrb[203].mxu0 }
 0x7ad   : > { %v4521_v53 = vmax.f32 %v4467_v11, 0.0  ;;  %v4470_v17 = vadd.f32 %v7437_v39, %v4469_v31 }
 0x7ae   : > { %v5428_v52 = vpack.c.bf16 %v4523_v20, %v4523_v20  ;;  %v4524_v55 = vmax.f32 %v4478_v50, 0.0 }
 0x7af   : > { %v5426_v63 = vpack.c.bf16 %v4521_v53, %v4521_v53  ;;  %v4522_v32 = vmax.f32 %v4470_v17, 0.0 }
 0x7b0   : > { %5294 = vst.msk [vmem:[%s6936_s20 + $0x1e8] sm:$0xf] %vm1713_vm7, %v5428_v52  ;;  %v5429_v12 = vpack.c.bf16 %v4524_v55, %v4524_v55 }
 0x7b1   : > { %5292 = vst.msk [vmem:[%s6936_s20 + $0x1e0] sm:$0xf] %vm1713_vm7, %v5426_v63  ;;  %v5427_v56 = vpack.c.bf16 %v4522_v32, %v4522_v32  ;;  %v6184_v59 = vpop.f32.mrb[204].mxu0 }
 0x7b2   : > { %5295 = vst.msk [vmem:[%s6936_s20 + $0x1ec] sm:$0xf] %vm1713_vm7, %v5429_v12  ;;  %v4491_v0 = vadd.f32 %v6184_v59, %v7437_v39  ;;  %v4482_v3 = vpop.f32.mrb[205].mxu0 }
 0x7b3   : > { %5293 = vst.msk [vmem:[%s6936_s20 + $0x1e4] sm:$0xf] %vm1713_vm7, %v5427_v56  ;;  %v4483_v6 = vadd.f32 %v7437_v39, %v4482_v3  ;;  %v6185_v8 = vpop.f32.mrb[206].mxu0 }
 0x7b4   : > { %v4527_v21 = vmax.f32 %v4491_v0, 0.0  ;;  %v4494_v41 = vadd.f32 %v6185_v8, %v7437_v39  ;;  %v4485_v10 = vpop.f32.mrb[207].mxu0 }
 0x7b5   : > { %v4525_v51 = vmax.f32 %v4483_v6, 0.0  ;;  %v4486_v16 = vadd.f32 %v7437_v39, %v4485_v10 }
 0x7b6   : > { %v5432_v1 = vpack.c.bf16 %v4527_v21, %v4527_v21  ;;  %v4528_v19 = vmax.f32 %v4494_v41, 0.0 }
 0x7b7   : > { %v5430_v13 = vpack.c.bf16 %v4525_v51, %v4525_v51  ;;  %v4526_v43 = vmax.f32 %v4486_v16, 0.0 }
 0x7b8   : > { %5298 = vst.msk [vmem:[%s6936_s20 + $0x1f8] sm:$0xf] %vm1713_vm7, %v5432_v1  ;;  %v5433_v22 = vpack.c.bf16 %v4528_v19, %v4528_v19 }
 0x7b9   : > { %5296 = vst.msk [vmem:[%s6936_s20 + $0x1f0] sm:$0xf] %vm1713_vm7, %v5430_v13  ;;  %v5431_v54 = vpack.c.bf16 %v4526_v43, %v4526_v43 }
 0x7ba   : > { %5299 = vst.msk [vmem:[%s6936_s20 + $0x1fc] sm:$0xf] %vm1713_vm7, %v5433_v22 }
 0x7bb   : > { %5297 = vst.msk [vmem:[%s6936_s20 + $0x1f4] sm:$0xf] %vm1713_vm7, %v5431_v54 }
 0x7bc PF: > { %s18_s29 = sadd.s32 1, %s6431_s29   ;;  %s7749_s27 = smov %s6427_s28 }
 0x7bd   : > { %p15_p5 = scmp.ge.s32.totalorder %s18_s29, 4   ;;  %s7750_s28 = smov %s7752_s30 }
 0x7bf   :  { %17 = sbr.rel (!%p15_p5) target bundleno = 2 (0x2), region = 96 }

</bundles_post_ra>
